<compile_context>
chip_gen: v5e
topology: v5e:2x2
jax: 0.10.0
libtpu: 0.0.40
codegen_flags: <defaults>
</compile_context>

<pallas_src>
import numpy as np
import jax
import jax.numpy as jnp
from jax.experimental import pallas as pl
from jax.experimental.pallas import tpu as pltpu


# --------------------------------------------------------------------------------------
# Kernel: one grid step == one (batch block, block of `time_block` decode timesteps).
# --------------------------------------------------------------------------------------
def _build_step_kernel(time_block, use_mxu_awe):
    Tt = time_block

    def kernel(
        # time-invariant inputs (single-buffered in fast mode)
        dl_ref,        # (Bt, 1)      int32 : decode lengths (batch_size_t semantics)
        att1_ref,      # (Bt, P, A)   f32   : hoisted enc-attention projection
        enc_ref,       # (Bt, P, E)   bf16  : encoder features
        # per-time-block input
        gemb_ref,      # (Tt, Bt, 4D) f32   : hoisted emb @ W_ih[:Em]
        # initial state
        h0_ref, c0_ref,              # (Bt, D) f32
        # resident weights
        w_da_ref, b_da_ref,          # decoder_att : (D, A) bf16, (1, A) f32
        w_fa_ref, b_fa_ref,          # att scorer  : (1, A) f32,  (1, 1) f32
        w_fb_ref, b_fb_ref,          # f_beta      : (D, E) bf16, (1, E) f32
        w_ia_ref,                    # W_ih[Em:]   : (E, 4D) bf16  (awe part)
        w_hh_ref,                    # W_hh        : (D, 4D) bf16
        b_lstm_ref,                  # (1, 4D) f32
        # outputs
        alpha_ref,     # (Tt, Bt, P) f32
        hout_ref,      # (Tt, Bt, D) f32
        # scratch (recurrent state, carried across the time grid axis)
        h_s, c_s,      # (Bt, D) f32
    ):
        tb = pl.program_id(1)

        @pl.when(tb == 0)
        def _():
            h_s[...] = h0_ref[...]
            c_s[...] = c0_ref[...]

        D = h_s.shape[1]
        att1 = att1_ref[...]                  # (Bt, P, A) f32
        enc_bf = enc_ref[...]                 # (Bt, P, E) bf16
        dl = dl_ref[...]                      # (Bt, 1)    int32

        w_da = w_da_ref[...]
        b_da = b_da_ref[...]
        w_fa = w_fa_ref[...]
        b_fa = b_fa_ref[...]
        w_fb = w_fb_ref[...]
        b_fb = b_fb_ref[...]
        w_ia = w_ia_ref[...]
        w_hh = w_hh_ref[...]
        b_lstm = b_lstm_ref[...]

        # Unrolled block of Tt sequential timesteps (amortizes per-grid-step overhead).
        for s in range(Tt):
            t_glob = tb * Tt + s
            mask = (dl > t_glob).astype(jnp.float32)          # (Bt, 1): rows still active

            h = h_s[...]
            c = c_s[...]
            h_bf = h.astype(jnp.bfloat16)

            # ---------------- soft attention (enc projection hoisted) ----------------
            att2 = jnp.dot(h_bf, w_da, preferred_element_type=jnp.float32) + b_da
            sc = jnp.maximum(att1 + att2[:, None, :], 0.0)                 # ReLU
            scores = jnp.sum(sc * w_fa[None, :, :], axis=-1) + b_fa        # (Bt, P)

            m = jnp.max(scores, axis=1, keepdims=True)
            e = jnp.exp(scores - m)
            alpha = e * pl.reciprocal(jnp.sum(e, axis=1, keepdims=True), approx=True)

            if use_mxu_awe:
                # batched matvec on the MXU: (Bt,1,P) x (Bt,P,E) -> (Bt,E)
                awe = jnp.einsum(
                    'bqp,bpe->bqe',
                    alpha[:, None, :].astype(jnp.bfloat16), enc_bf,
                    preferred_element_type=jnp.float32)[:, 0, :]
            else:
                awe = jnp.sum(alpha[:, :, None] * enc_bf.astype(jnp.float32), axis=1)

            gate = jax.nn.sigmoid(
                jnp.dot(h_bf, w_fb, preferred_element_type=jnp.float32) + b_fb)
            awe = gate * awe

            # ---------------- recurrent cell (LSTMCell, gate order i,f,g,o) ----------
            gates = (gemb_ref[s]
                     + jnp.dot(awe.astype(jnp.bfloat16), w_ia,
                               preferred_element_type=jnp.float32)
                     + jnp.dot(h_bf, w_hh, preferred_element_type=jnp.float32)
                     + b_lstm)                                             # (Bt, 4D)
            i_g = jax.nn.sigmoid(gates[:, 0:D])
            f_g = jax.nn.sigmoid(gates[:, D:2 * D])
            g_g = jnp.tanh(gates[:, 2 * D:3 * D])
            o_g = jax.nn.sigmoid(gates[:, 3 * D:4 * D])
            c_new = f_g * c + i_g * g_g
            h_new = o_g * jnp.tanh(c_new)

            # only active rows (b < batch_size_t) update their state
            h_upd = mask * h_new + (1.0 - mask) * h
            c_upd = mask * c_new + (1.0 - mask) * c
            h_s[...] = h_upd
            c_s[...] = c_upd

            alpha_ref[s] = alpha          # masked outside the kernel
            hout_ref[s] = h_upd           # fc / masking applied outside the kernel

    return kernel


# --------------------------------------------------------------------------------------
# pallas_call wrapper
# --------------------------------------------------------------------------------------
def run_decoder_kernel(dl, att1, enc_bf, gates_emb, h0, c0, kw,
                       *, time_block=4, batch_block=None, fast=True):
    Tpad, B, G4 = gates_emb.shape
    P, E = enc_bf.shape[1], enc_bf.shape[2]
    A = att1.shape[2]
    D = h0.shape[1]
    Bt = B if batch_block is None else batch_block   # set B//2 (multiple of 8) for v7x 2-TC
    nb = B // Bt
    nt = Tpad // time_block

    def inv(shape, index_map):
        # time-invariant operand: single-buffer when supported to halve resident VMEM
        if fast:
            return pl.BlockSpec(shape, index_map, pipeline_mode=pl.Buffered(1))
        return pl.BlockSpec(shape, index_map)

    in_specs = [
        inv((Bt, 1), lambda b, t: (b, 0)),                # decode lengths
        inv((Bt, P, A), lambda b, t: (b, 0, 0)),          # hoisted enc-attention projection
        inv((Bt, P, E), lambda b, t: (b, 0, 0)),          # encoder features (bf16)
        pl.BlockSpec((time_block, Bt, G4), lambda b, t: (t, b, 0)),   # hoisted emb gate term
        inv((Bt, D), lambda b, t: (b, 0)),                # h0
        inv((Bt, D), lambda b, t: (b, 0)),                # c0
        inv((D, A), lambda b, t: (0, 0)),                 # decoder_att W (bf16)
        inv((1, A), lambda b, t: (0, 0)),                 # decoder_att b
        inv((1, A), lambda b, t: (0, 0)),                 # attention scorer W
        inv((1, 1), lambda b, t: (0, 0)),                 # attention scorer b
        inv((D, E), lambda b, t: (0, 0)),                 # f_beta W (bf16)
        inv((1, E), lambda b, t: (0, 0)),                 # f_beta b
        inv((E, G4), lambda b, t: (0, 0)),                # W_ih[Em:] (awe part, bf16)
        inv((D, G4), lambda b, t: (0, 0)),                # W_hh (bf16)
        inv((1, G4), lambda b, t: (0, 0)),                # LSTM bias
    ]
    out_specs = [
        pl.BlockSpec((time_block, Bt, P), lambda b, t: (t, b, 0)),
        pl.BlockSpec((time_block, Bt, D), lambda b, t: (t, b, 0)),
    ]
    out_shape = (
        jax.ShapeDtypeStruct((Tpad, B, P), jnp.float32),
        jax.ShapeDtypeStruct((Tpad, B, D), jnp.float32),
    )

    kernel = _build_step_kernel(time_block, use_mxu_awe=fast)

    outs = pl.pallas_call(
        kernel,
        grid=(nb, nt),
        in_specs=in_specs,
        out_specs=out_specs,
        out_shape=out_shape,
        scratch_shapes=[pltpu.VMEM((Bt, D), jnp.float32),
                        pltpu.VMEM((Bt, D), jnp.float32)],
        compiler_params=pltpu.CompilerParams(
            dimension_semantics=("parallel", "arbitrary"),   # batch parallel / time carried
            vmem_limit_bytes=48 * 1024 * 1024),
    )(dl, att1, enc_bf, gates_emb, h0, c0,
      kw["w_dec_att"], kw["b_dec_att"],
      kw["w_full_att"], kw["b_full_att"],
      kw["w_f_beta"], kw["b_f_beta"],
      kw["w_ih_awe"], kw["w_hh"], kw["b_lstm"])
    return jax.block_until_ready(outs)


# --------------------------------------------------------------------------------------
# Parameter init (deterministic, shapes per the module's __init__)
# --------------------------------------------------------------------------------------
def init_params(key, vocab_size, encoder_dim, decoder_dim, attention_dim, embed_dim):
    ks = jax.random.split(key, 20)
    u = lambda k, shape, sc: jax.random.uniform(k, shape, jnp.float32, -sc, sc)
    return dict(
        embedding=u(ks[0], (vocab_size, embed_dim), 0.1),          # init_weights: U(-0.1, 0.1)
        w_enc_att=u(ks[1], (encoder_dim, attention_dim), 0.1),
        b_enc_att=u(ks[2], (1, attention_dim), 0.1),
        w_dec_att=u(ks[3], (decoder_dim, attention_dim), 0.1),
        b_dec_att=u(ks[4], (1, attention_dim), 0.1),
        w_full_att=u(ks[5], (1, attention_dim), 0.1),
        b_full_att=u(ks[6], (1, 1), 0.1),
        w_init_h=u(ks[7], (encoder_dim, decoder_dim), 0.1),
        b_init_h=u(ks[8], (1, decoder_dim), 0.1),
        w_init_c=u(ks[9], (encoder_dim, decoder_dim), 0.1),
        b_init_c=u(ks[10], (1, decoder_dim), 0.1),
        w_f_beta=u(ks[11], (decoder_dim, encoder_dim), 0.1),
        b_f_beta=u(ks[12], (1, encoder_dim), 0.1),
        w_ih=u(ks[13], (embed_dim + encoder_dim, 4 * decoder_dim), 0.1),
        w_hh=u(ks[14], (decoder_dim, 4 * decoder_dim), 0.1),
        b_lstm=u(ks[15], (1, 4 * decoder_dim), 0.1),
        w_fc=u(ks[16], (decoder_dim, vocab_size), 0.1),             # init_weights: U(-0.1, 0.1)
        b_fc=jnp.zeros((1, vocab_size), jnp.float32),               # init_weights: fill_(0)
    )


# --------------------------------------------------------------------------------------
# Full forward (host glue + hoisted XLA matmuls + kernel)
# --------------------------------------------------------------------------------------
def decoder_forward(params, vocab, encoder_out, encoded_captions, caption_lengths,
                    *, time_block=4):
    B = encoder_out.shape[0]
    E = encoder_out.shape[-1]
    enc = encoder_out.reshape(B, -1, E)                 # (B, num_pixels, E)

    # sort by caption length, descending (host glue)
    lens = np.asarray(caption_lengths).reshape(B)
    sort_ind = np.argsort(-lens, kind="stable")
    lens_sorted = lens[sort_ind]
    enc = enc[jnp.asarray(sort_ind)]
    caps = encoded_captions[jnp.asarray(sort_ind)]

    decode_lengths = lens_sorted - 1
    T = int(decode_lengths.max())
    Tpad = ((T + time_block - 1) // time_block) * time_block

    Em = params["embedding"].shape[1]

    # ---------------- hoisted, time-invariant work (one-shot XLA matmuls) -------------
    # encoder-side attention projection (was the largest per-step matmul)
    att1 = jnp.einsum('bpe,ea->bpa', enc, params["w_enc_att"]) + params["b_enc_att"][0]

    # embedding contribution to the LSTM gates for all T steps at once
    emb = params["embedding"][caps]                      # (B, L, Em)
    emb_t = jnp.transpose(emb[:, :T, :], (1, 0, 2))      # (T, B, Em)
    emb_t = jnp.pad(emb_t, ((0, Tpad - T), (0, 0), (0, 0)))
    gates_emb = jnp.einsum('tbe,eg->tbg', emb_t, params["w_ih"][:Em])    # (Tpad, B, 4D)

    # init hidden state from mean encoder features
    mean_enc = jnp.mean(enc, axis=1)
    h0 = mean_enc @ params["w_init_h"] + params["b_init_h"][0]
    c0 = mean_enc @ params["w_init_c"] + params["b_init_c"][0]

    dl = jnp.asarray(decode_lengths, dtype=jnp.int32).reshape(B, 1)

    # bf16 operands for in-kernel MXU matmuls (f32 accumulation, f32 h/c state)
    kw = dict(
        w_dec_att=params["w_dec_att"].astype(jnp.bfloat16),
        b_dec_att=params["b_dec_att"],
        w_full_att=params["w_full_att"],
        b_full_att=params["b_full_att"],
        w_f_beta=params["w_f_beta"].astype(jnp.bfloat16),
        b_f_beta=params["b_f_beta"],
        w_ih_awe=params["w_ih"][Em:].astype(jnp.bfloat16),
        w_hh=params["w_hh"].astype(jnp.bfloat16),
        b_lstm=params["b_lstm"],
    )
    enc_bf = enc.astype(jnp.bfloat16)

    try:
        alpha_all, hout_all = run_decoder_kernel(
            dl, att1, enc_bf, gates_emb, h0, c0, kw,
            time_block=time_block, fast=True)
    except Exception:
        # fallback without pl.Buffered(1) single-buffering / batched-MXU awe einsum
        alpha_all, hout_all = run_decoder_kernel(
            dl, att1, enc_bf, gates_emb, h0, c0, kw,
            time_block=time_block, fast=False)

    alpha_t = alpha_all[:T]                              # (T, B, P)
    hout_t = hout_all[:T]                                # (T, B, D)

    # batch_size_t mask applied outside the kernel (pred/alpha zeroing)
    mask = jnp.asarray(
        (decode_lengths[None, :] > np.arange(T)[:, None]).astype(np.float32)
    ).reshape(T, B, 1)

    # hoisted vocabulary projection: one big (T*B, D) x (D, V) matmul
    preds_t = jnp.einsum('tbd,dv->tbv', hout_t, params["w_fc"]) + params["b_fc"][0]
    predictions = jnp.transpose(preds_t * mask, (1, 0, 2))   # (B, T, V)
    alphas = jnp.transpose(alpha_t * mask, (1, 0, 2))        # (B, T, P)

    # data-dependent hidden_states gathering (host glue)
    caps_np = np.asarray(caps)
    h_np = np.asarray(hout_t)
    td_id, gt_id = vocab["<td>"], vocab[">"]
    hidden_states = [[] for _ in range(B)]
    for t in range(T):
        bt = int((decode_lengths > t).sum())
        for i in range(bt):
            if caps_np[i, t] in (td_id, gt_id):
                hidden_states[i].append(h_np[t, i])

    return (predictions, caps, [int(x) for x in decode_lengths], alphas,
            hidden_states, jnp.asarray(sort_ind))


# --------------------------------------------------------------------------------------
if __name__ == "__main__":
    # small shapes consistent with the module
    B = 2
    enc_image_size = 4          # num_pixels = 16
    encoder_dim = 32
    attention_dim = 32
    embed_dim = 16
    decoder_dim = 32
    max_cap_len = 8

    # vocab (includes the '<td>' and '>' tokens the forward pass inspects)
    base_toks = ["<pad>", "<start>", "<end>", "<unk>", "<td>", ">"]
    vocab = {t: i for i, t in enumerate(base_toks + [f"w{i}" for i in range(34)])}
    vocab_size = len(vocab)     # 40

    key = jax.random.PRNGKey(0)
    kp, ke, kc = jax.random.split(key, 3)

    params = init_params(kp, vocab_size, encoder_dim, decoder_dim, attention_dim, embed_dim)

    encoder_out = jax.random.normal(
        ke, (B, enc_image_size, enc_image_size, encoder_dim), jnp.float32)
    encoded_captions = jax.random.randint(kc, (B, max_cap_len), 0, vocab_size, jnp.int32)
    caption_lengths = jnp.array([[6], [8]], dtype=jnp.int32)

    out = decoder_forward(params, vocab, encoder_out, encoded_captions, caption_lengths,
                          time_block=4)
    predictions, caps_sorted, decode_lengths, alphas, hidden_states, sort_ind = out

    jax.block_until_ready(predictions)
    jax.block_until_ready(alphas)

    assert predictions.shape == (B, max(decode_lengths), vocab_size)
    assert alphas.shape == (B, max(decode_lengths), enc_image_size * enc_image_size)
    print("KERNEL_OK")
</pallas_src>

<mosaic_0001>
module attributes {stable_mosaic.version = 11 : i64} {
  func.func @kernel(%arg0: i32, %arg1: i32, %arg2: memref<2x1xi32, #tpu.memory_space<vmem>>, %arg3: memref<2x16x32xf32, #tpu.memory_space<vmem>>, %arg4: memref<2x16x32xbf16, #tpu.memory_space<vmem>>, %arg5: memref<4x2x128xf32, #tpu.memory_space<vmem>>, %arg6: memref<2x32xf32, #tpu.memory_space<vmem>>, %arg7: memref<2x32xf32, #tpu.memory_space<vmem>>, %arg8: memref<32x32xbf16, #tpu.memory_space<vmem>>, %arg9: memref<1x32xf32, #tpu.memory_space<vmem>>, %arg10: memref<1x32xf32, #tpu.memory_space<vmem>>, %arg11: memref<1x1xf32, #tpu.memory_space<vmem>>, %arg12: memref<32x32xbf16, #tpu.memory_space<vmem>>, %arg13: memref<1x32xf32, #tpu.memory_space<vmem>>, %arg14: memref<32x128xbf16, #tpu.memory_space<vmem>>, %arg15: memref<32x128xbf16, #tpu.memory_space<vmem>>, %arg16: memref<1x128xf32, #tpu.memory_space<vmem>>, %arg17: memref<4x2x16xf32, #tpu.memory_space<vmem>>, %arg18: memref<4x2x32xf32, #tpu.memory_space<vmem>>, %arg19: memref<2x32xf32, #tpu.memory_space<vmem>>, %arg20: memref<2x32xf32, #tpu.memory_space<vmem>>) attributes {dimension_semantics = [#tpu.dimension_semantics<parallel>, #tpu.dimension_semantics<arbitrary>], iteration_bounds = array<i64: 1, 2>, scalar_prefetch = 0 : i64, scratch_operands = 2 : i64, tpu.core_type = #tpu.core_type<tc>, window_params = [{pipeline_mode = #tpu.pipeline_mode<synchronous>, transform_indices = @transform_0, window_bounds = array<i64: 2, 1>}, {pipeline_mode = #tpu.pipeline_mode<synchronous>, transform_indices = @transform_1, window_bounds = array<i64: 2, 16, 32>}, {pipeline_mode = #tpu.pipeline_mode<synchronous>, transform_indices = @transform_2, window_bounds = array<i64: 2, 16, 32>}, {transform_indices = @transform_3, window_bounds = array<i64: 4, 2, 128>}, {pipeline_mode = #tpu.pipeline_mode<synchronous>, transform_indices = @transform_4, window_bounds = array<i64: 2, 32>}, {pipeline_mode = #tpu.pipeline_mode<synchronous>, transform_indices = @transform_5, window_bounds = array<i64: 2, 32>}, {pipeline_mode = #tpu.pipeline_mode<synchronous>, transform_indices = @transform_6, window_bounds = array<i64: 32, 32>}, {pipeline_mode = #tpu.pipeline_mode<synchronous>, transform_indices = @transform_7, window_bounds = array<i64: 1, 32>}, {pipeline_mode = #tpu.pipeline_mode<synchronous>, transform_indices = @transform_8, window_bounds = array<i64: 1, 32>}, {pipeline_mode = #tpu.pipeline_mode<synchronous>, transform_indices = @transform_9, window_bounds = array<i64: 1, 1>}, {pipeline_mode = #tpu.pipeline_mode<synchronous>, transform_indices = @transform_10, window_bounds = array<i64: 32, 32>}, {pipeline_mode = #tpu.pipeline_mode<synchronous>, transform_indices = @transform_11, window_bounds = array<i64: 1, 32>}, {pipeline_mode = #tpu.pipeline_mode<synchronous>, transform_indices = @transform_12, window_bounds = array<i64: 32, 128>}, {pipeline_mode = #tpu.pipeline_mode<synchronous>, transform_indices = @transform_13, window_bounds = array<i64: 32, 128>}, {pipeline_mode = #tpu.pipeline_mode<synchronous>, transform_indices = @transform_14, window_bounds = array<i64: 1, 128>}, {transform_indices = @transform_15, window_bounds = array<i64: 4, 2, 16>}, {transform_indices = @transform_16, window_bounds = array<i64: 4, 2, 32>}]} {
    %c0_i32 = arith.constant 0 : i32
    %0 = arith.cmpi eq, %arg1, %c0_i32 : i32
    %1 = arith.extui %0 : i1 to i32
    %c0_i32_0 = arith.constant 0 : i32
    %2 = arith.cmpi ne, %1, %c0_i32_0 : i32
    scf.if %2 {
      %c0_154 = arith.constant 0 : index
      %c0_155 = arith.constant 0 : index
      %423 = vector.load %arg6[%c0_154, %c0_155] : memref<2x32xf32, #tpu.memory_space<vmem>>, vector<2x32xf32>
      %c0_156 = arith.constant 0 : index
      %c0_157 = arith.constant 0 : index
      %424 = vector.load %arg19[%c0_156, %c0_157] : memref<2x32xf32, #tpu.memory_space<vmem>>, vector<2x32xf32>
      tpu.vector_store %arg19[%c0_156, %c0_157], %423 {strides = array<i32>} : memref<2x32xf32, #tpu.memory_space<vmem>>, vector<2x32xf32>,
      %c0_158 = arith.constant 0 : index
      %c0_159 = arith.constant 0 : index
      %425 = vector.load %arg7[%c0_158, %c0_159] : memref<2x32xf32, #tpu.memory_space<vmem>>, vector<2x32xf32>
      %c0_160 = arith.constant 0 : index
      %c0_161 = arith.constant 0 : index
      %426 = vector.load %arg20[%c0_160, %c0_161] : memref<2x32xf32, #tpu.memory_space<vmem>>, vector<2x32xf32>
      tpu.vector_store %arg20[%c0_160, %c0_161], %425 {strides = array<i32>} : memref<2x32xf32, #tpu.memory_space<vmem>>, vector<2x32xf32>,
    } else {
    }
    %c0 = arith.constant 0 : index
    %c0_1 = arith.constant 0 : index
    %c0_2 = arith.constant 0 : index
    %3 = vector.load %arg3[%c0, %c0_1, %c0_2] : memref<2x16x32xf32, #tpu.memory_space<vmem>>, vector<2x16x32xf32>
    %c0_3 = arith.constant 0 : index
    %c0_4 = arith.constant 0 : index
    %c0_5 = arith.constant 0 : index
    %4 = vector.load %arg4[%c0_3, %c0_4, %c0_5] : memref<2x16x32xbf16, #tpu.memory_space<vmem>>, vector<2x16x32xbf16>
    %c0_6 = arith.constant 0 : index
    %c0_7 = arith.constant 0 : index
    %5 = vector.load %arg2[%c0_6, %c0_7] : memref<2x1xi32, #tpu.memory_space<vmem>>, vector<2x1xi32>
    %c0_8 = arith.constant 0 : index
    %c0_9 = arith.constant 0 : index
    %6 = vector.load %arg8[%c0_8, %c0_9] : memref<32x32xbf16, #tpu.memory_space<vmem>>, vector<32x32xbf16>
    %c0_10 = arith.constant 0 : index
    %c0_11 = arith.constant 0 : index
    %7 = vector.load %arg9[%c0_10, %c0_11] : memref<1x32xf32, #tpu.memory_space<vmem>>, vector<1x32xf32>
    %c0_12 = arith.constant 0 : index
    %c0_13 = arith.constant 0 : index
    %8 = vector.load %arg10[%c0_12, %c0_13] : memref<1x32xf32, #tpu.memory_space<vmem>>, vector<1x32xf32>
    %c0_14 = arith.constant 0 : index
    %c0_15 = arith.constant 0 : index
    %9 = vector.load %arg11[%c0_14, %c0_15] : memref<1x1xf32, #tpu.memory_space<vmem>>, vector<1x1xf32>
    %c0_16 = arith.constant 0 : index
    %c0_17 = arith.constant 0 : index
    %10 = vector.load %arg12[%c0_16, %c0_17] : memref<32x32xbf16, #tpu.memory_space<vmem>>, vector<32x32xbf16>
    %c0_18 = arith.constant 0 : index
    %c0_19 = arith.constant 0 : index
    %11 = vector.load %arg13[%c0_18, %c0_19] : memref<1x32xf32, #tpu.memory_space<vmem>>, vector<1x32xf32>
    %c0_20 = arith.constant 0 : index
    %c0_21 = arith.constant 0 : index
    %12 = vector.load %arg14[%c0_20, %c0_21] : memref<32x128xbf16, #tpu.memory_space<vmem>>, vector<32x128xbf16>
    %c0_22 = arith.constant 0 : index
    %c0_23 = arith.constant 0 : index
    %13 = vector.load %arg15[%c0_22, %c0_23] : memref<32x128xbf16, #tpu.memory_space<vmem>>, vector<32x128xbf16>
    %c0_24 = arith.constant 0 : index
    %c0_25 = arith.constant 0 : index
    %14 = vector.load %arg16[%c0_24, %c0_25] : memref<1x128xf32, #tpu.memory_space<vmem>>, vector<1x128xf32>
    %c4_i32 = arith.constant 4 : i32
    %15 = arith.muli %arg1, %c4_i32 : i32
    %c0_i32_26 = arith.constant 0 : i32
    %16 = arith.addi %15, %c0_i32_26 : i32
    %17 = vector.broadcast %16 : i32 to vector<2x1xi32>
    %18 = arith.cmpi sgt, %5, %17 : vector<2x1xi32>
    %19 = arith.extui %18 : vector<2x1xi1> to vector<2x1xi32>
    %20 = arith.sitofp %19 : vector<2x1xi32> to vector<2x1xf32>
    %c0_27 = arith.constant 0 : index
    %c0_28 = arith.constant 0 : index
    %21 = vector.load %arg19[%c0_27, %c0_28] : memref<2x32xf32, #tpu.memory_space<vmem>>, vector<2x32xf32>
    %c0_29 = arith.constant 0 : index
    %c0_30 = arith.constant 0 : index
    %22 = vector.load %arg20[%c0_29, %c0_30] : memref<2x32xf32, #tpu.memory_space<vmem>>, vector<2x32xf32>
    %23 = arith.truncf %21 : vector<2x32xf32> to vector<2x32xbf16>
    %cst = arith.constant dense<0.000000e+00> : vector<2x32xf32>
    %24 = tpu.matmul %23, %6, %cst {dimension_numbers = #tpu.dot_dimension_numbers<[1], [0], [0], [1], [0, 0, 1, 1], [], []>} : vector<2x32xbf16>, vector<32x32xbf16>, vector<2x32xf32> -> vector<2x32xf32>
    %25 = vector.broadcast %7 : vector<1x32xf32> to vector<2x32xf32>
    %26 = arith.addf %24, %25 : vector<2x32xf32>
    %27 = vector.shape_cast %26 : vector<2x32xf32> to vector<2x1x32xf32>
    %28 = vector.broadcast %27 : vector<2x1x32xf32> to vector<2x16x32xf32>
    %29 = arith.addf %3, %28 : vector<2x16x32xf32>
    %cst_31 = arith.constant 0.000000e+00 : f32
    %30 = vector.broadcast %cst_31 : f32 to vector<2x16x32xf32>
    %31 = arith.maximumf %29, %30 : vector<2x16x32xf32>
    %32 = vector.shape_cast %8 : vector<1x32xf32> to vector<1x1x32xf32>
    %33 = vector.broadcast %32 : vector<1x1x32xf32> to vector<2x16x32xf32>
    %34 = arith.mulf %31, %33 : vector<2x16x32xf32>
    %cst_32 = arith.constant dense<0.000000e+00> : vector<2x16xf32>
    %35 = vector.multi_reduction <add>, %34, %cst_32 [2] : vector<2x16x32xf32> to vector<2x16xf32>
    %36 = vector.broadcast %9 : vector<1x1xf32> to vector<2x16xf32>
    %37 = arith.addf %35, %36 : vector<2x16xf32>
    %cst_33 = arith.constant dense<0xFF800000> : vector<2xf32>
    %38 = vector.multi_reduction <maximumf>, %37, %cst_33 [1] : vector<2x16xf32> to vector<2xf32>
    %39 = vector.shape_cast %38 : vector<2xf32> to vector<2x1xf32>
    %40 = vector.broadcast %39 : vector<2x1xf32> to vector<2x16xf32>
    %41 = arith.subf %37, %40 : vector<2x16xf32>
    %42 = math.exp %41 : vector<2x16xf32>
    %cst_34 = arith.constant dense<0.000000e+00> : vector<2xf32>
    %43 = vector.multi_reduction <add>, %42, %cst_34 [1] : vector<2x16xf32> to vector<2xf32>
    %44 = vector.shape_cast %43 : vector<2xf32> to vector<2x1xf32>
    %45 = tpu.reciprocal %44 {approx = true} : vector<2x1xf32> -> vector<2x1xf32>
    %46 = vector.broadcast %45 : vector<2x1xf32> to vector<2x16xf32>
    %47 = arith.mulf %42, %46 : vector<2x16xf32>
    %48 = vector.shape_cast %47 : vector<2x16xf32> to vector<2x1x16xf32>
    %49 = arith.truncf %48 : vector<2x1x16xf32> to vector<2x1x16xbf16>
    "tpu.trace_start"() <{level = 10 : i32, message = "bqp,bpe->bqe"}> : () -> ()
    %cst_35 = arith.constant dense<0.000000e+00> : vector<2x1x32xf32>
    %50 = tpu.matmul %49, %4, %cst_35 {dimension_numbers = #tpu.dot_dimension_numbers<[2], [1], [1], [2], [0, 0, 0, 1, 1, 2], [0], [0]>} : vector<2x1x16xbf16>, vector<2x16x32xbf16>, vector<2x1x32xf32> -> vector<2x1x32xf32>
    "tpu.trace_stop"() : () -> ()
    %51 = vector.shape_cast %50 : vector<2x1x32xf32> to vector<2x32xf32>
    %cst_36 = arith.constant dense<0.000000e+00> : vector<2x32xf32>
    %52 = tpu.matmul %23, %10, %cst_36 {dimension_numbers = #tpu.dot_dimension_numbers<[1], [0], [0], [1], [0, 0, 1, 1], [], []>} : vector<2x32xbf16>, vector<32x32xbf16>, vector<2x32xf32> -> vector<2x32xf32>
    %53 = vector.broadcast %11 : vector<1x32xf32> to vector<2x32xf32>
    %54 = arith.addf %52, %53 : vector<2x32xf32>
    %55 = arith.negf %54 : vector<2x32xf32>
    %56 = math.exp %55 : vector<2x32xf32>
    %cst_37 = arith.constant 1.000000e+00 : f32
    %57 = vector.broadcast %cst_37 : f32 to vector<2x32xf32>
    %58 = arith.addf %57, %56 : vector<2x32xf32>
    %59 = arith.divf %57, %58 : vector<2x32xf32>
    %60 = arith.mulf %59, %51 : vector<2x32xf32>
    %c0_38 = arith.constant 0 : index
    %c0_39 = arith.constant 0 : index
    %c0_40 = arith.constant 0 : index
    %61 = vector.load %arg5[%c0_38, %c0_39, %c0_40] : memref<4x2x128xf32, #tpu.memory_space<vmem>>, vector<1x2x128xf32>
    %62 = vector.shape_cast %61 : vector<1x2x128xf32> to vector<2x128xf32>
    %63 = arith.truncf %60 : vector<2x32xf32> to vector<2x32xbf16>
    %cst_41 = arith.constant dense<0.000000e+00> : vector<2x128xf32>
    %64 = tpu.matmul %63, %12, %cst_41 {dimension_numbers = #tpu.dot_dimension_numbers<[1], [0], [0], [1], [0, 0, 1, 1], [], []>} : vector<2x32xbf16>, vector<32x128xbf16>, vector<2x128xf32> -> vector<2x128xf32>
    %65 = arith.addf %62, %64 : vector<2x128xf32>
    %cst_42 = arith.constant dense<0.000000e+00> : vector<2x128xf32>
    %66 = tpu.matmul %23, %13, %cst_42 {dimension_numbers = #tpu.dot_dimension_numbers<[1], [0], [0], [1], [0, 0, 1, 1], [], []>} : vector<2x32xbf16>, vector<32x128xbf16>, vector<2x128xf32> -> vector<2x128xf32>
    %67 = arith.addf %65, %66 : vector<2x128xf32>
    %68 = vector.broadcast %14 : vector<1x128xf32> to vector<2x128xf32>
    %69 = arith.addf %67, %68 : vector<2x128xf32>
    %70 = vector.extract_strided_slice %69 {offsets = [0, 0], sizes = [2, 32], strides = [1, 1]} : vector<2x128xf32> to vector<2x32xf32>
    %71 = arith.negf %70 : vector<2x32xf32>
    %72 = math.exp %71 : vector<2x32xf32>
    %cst_43 = arith.constant 1.000000e+00 : f32
    %73 = vector.broadcast %cst_43 : f32 to vector<2x32xf32>
    %74 = arith.addf %73, %72 : vector<2x32xf32>
    %75 = arith.divf %73, %74 : vector<2x32xf32>
    %76 = vector.extract_strided_slice %69 {offsets = [0, 32], sizes = [2, 32], strides = [1, 1]} : vector<2x128xf32> to vector<2x32xf32>
    %77 = arith.negf %76 : vector<2x32xf32>
    %78 = math.exp %77 : vector<2x32xf32>
    %cst_44 = arith.constant 1.000000e+00 : f32
    %79 = vector.broadcast %cst_44 : f32 to vector<2x32xf32>
    %80 = arith.addf %79, %78 : vector<2x32xf32>
    %81 = arith.divf %79, %80 : vector<2x32xf32>
    %82 = vector.extract_strided_slice %69 {offsets = [0, 64], sizes = [2, 32], strides = [1, 1]} : vector<2x128xf32> to vector<2x32xf32>
    %83 = math.tanh %82 : vector<2x32xf32>
    %84 = vector.extract_strided_slice %69 {offsets = [0, 96], sizes = [2, 32], strides = [1, 1]} : vector<2x128xf32> to vector<2x32xf32>
    %85 = arith.negf %84 : vector<2x32xf32>
    %86 = math.exp %85 : vector<2x32xf32>
    %cst_45 = arith.constant 1.000000e+00 : f32
    %87 = vector.broadcast %cst_45 : f32 to vector<2x32xf32>
    %88 = arith.addf %87, %86 : vector<2x32xf32>
    %89 = arith.divf %87, %88 : vector<2x32xf32>
    %90 = arith.mulf %81, %22 : vector<2x32xf32>
    %91 = arith.mulf %75, %83 : vector<2x32xf32>
    %92 = arith.addf %90, %91 : vector<2x32xf32>
    %93 = math.tanh %92 : vector<2x32xf32>
    %94 = arith.mulf %89, %93 : vector<2x32xf32>
    %95 = vector.broadcast %20 : vector<2x1xf32> to vector<2x32xf32>
    %96 = arith.mulf %95, %94 : vector<2x32xf32>
    %cst_46 = arith.constant 1.000000e+00 : f32
    %97 = vector.broadcast %cst_46 : f32 to vector<2x1xf32>
    %98 = arith.subf %97, %20 : vector<2x1xf32>
    %99 = vector.broadcast %98 : vector<2x1xf32> to vector<2x32xf32>
    %100 = arith.mulf %99, %21 : vector<2x32xf32>
    %101 = arith.addf %96, %100 : vector<2x32xf32>
    %102 = vector.broadcast %20 : vector<2x1xf32> to vector<2x32xf32>
    %103 = arith.mulf %102, %92 : vector<2x32xf32>
    %cst_47 = arith.constant 1.000000e+00 : f32
    %104 = vector.broadcast %cst_47 : f32 to vector<2x1xf32>
    %105 = arith.subf %104, %20 : vector<2x1xf32>
    %106 = vector.broadcast %105 : vector<2x1xf32> to vector<2x32xf32>
    %107 = arith.mulf %106, %22 : vector<2x32xf32>
    %108 = arith.addf %103, %107 : vector<2x32xf32>
    %c0_48 = arith.constant 0 : index
    %c0_49 = arith.constant 0 : index
    %109 = vector.load %arg19[%c0_48, %c0_49] : memref<2x32xf32, #tpu.memory_space<vmem>>, vector<2x32xf32>
    tpu.vector_store %arg19[%c0_48, %c0_49], %101 {strides = array<i32>} : memref<2x32xf32, #tpu.memory_space<vmem>>, vector<2x32xf32>,
    %c0_50 = arith.constant 0 : index
    %c0_51 = arith.constant 0 : index
    %110 = vector.load %arg20[%c0_50, %c0_51] : memref<2x32xf32, #tpu.memory_space<vmem>>, vector<2x32xf32>
    tpu.vector_store %arg20[%c0_50, %c0_51], %108 {strides = array<i32>} : memref<2x32xf32, #tpu.memory_space<vmem>>, vector<2x32xf32>,
    %c0_52 = arith.constant 0 : index
    %c0_53 = arith.constant 0 : index
    %c0_54 = arith.constant 0 : index
    %111 = vector.load %arg17[%c0_52, %c0_53, %c0_54] : memref<4x2x16xf32, #tpu.memory_space<vmem>>, vector<1x2x16xf32>
    %112 = vector.shape_cast %111 : vector<1x2x16xf32> to vector<2x16xf32>
    %113 = vector.shape_cast %47 : vector<2x16xf32> to vector<1x2x16xf32>
    tpu.vector_store %arg17[%c0_52, %c0_53, %c0_54], %113 {strides = array<i32>} : memref<4x2x16xf32, #tpu.memory_space<vmem>>, vector<1x2x16xf32>,
    %c0_55 = arith.constant 0 : index
    %c0_56 = arith.constant 0 : index
    %c0_57 = arith.constant 0 : index
    %114 = vector.load %arg18[%c0_55, %c0_56, %c0_57] : memref<4x2x32xf32, #tpu.memory_space<vmem>>, vector<1x2x32xf32>
    %115 = vector.shape_cast %114 : vector<1x2x32xf32> to vector<2x32xf32>
    %116 = vector.shape_cast %101 : vector<2x32xf32> to vector<1x2x32xf32>
    tpu.vector_store %arg18[%c0_55, %c0_56, %c0_57], %116 {strides = array<i32>} : memref<4x2x32xf32, #tpu.memory_space<vmem>>, vector<1x2x32xf32>,
    %c4_i32_58 = arith.constant 4 : i32
    %117 = arith.muli %arg1, %c4_i32_58 : i32
    %c1_i32 = arith.constant 1 : i32
    %118 = arith.addi %117, %c1_i32 : i32
    %119 = vector.broadcast %118 : i32 to vector<2x1xi32>
    %120 = arith.cmpi sgt, %5, %119 : vector<2x1xi32>
    %121 = arith.extui %120 : vector<2x1xi1> to vector<2x1xi32>
    %122 = arith.sitofp %121 : vector<2x1xi32> to vector<2x1xf32>
    %c0_59 = arith.constant 0 : index
    %c0_60 = arith.constant 0 : index
    %123 = vector.load %arg19[%c0_59, %c0_60] : memref<2x32xf32, #tpu.memory_space<vmem>>, vector<2x32xf32>
    %c0_61 = arith.constant 0 : index
    %c0_62 = arith.constant 0 : index
    %124 = vector.load %arg20[%c0_61, %c0_62] : memref<2x32xf32, #tpu.memory_space<vmem>>, vector<2x32xf32>
    %125 = arith.truncf %123 : vector<2x32xf32> to vector<2x32xbf16>
    %cst_63 = arith.constant dense<0.000000e+00> : vector<2x32xf32>
    %126 = tpu.matmul %125, %6, %cst_63 {dimension_numbers = #tpu.dot_dimension_numbers<[1], [0], [0], [1], [0, 0, 1, 1], [], []>} : vector<2x32xbf16>, vector<32x32xbf16>, vector<2x32xf32> -> vector<2x32xf32>
    %127 = vector.broadcast %7 : vector<1x32xf32> to vector<2x32xf32>
    %128 = arith.addf %126, %127 : vector<2x32xf32>
    %129 = vector.shape_cast %128 : vector<2x32xf32> to vector<2x1x32xf32>
    %130 = vector.broadcast %129 : vector<2x1x32xf32> to vector<2x16x32xf32>
    %131 = arith.addf %3, %130 : vector<2x16x32xf32>
    %cst_64 = arith.constant 0.000000e+00 : f32
    %132 = vector.broadcast %cst_64 : f32 to vector<2x16x32xf32>
    %133 = arith.maximumf %131, %132 : vector<2x16x32xf32>
    %134 = vector.shape_cast %8 : vector<1x32xf32> to vector<1x1x32xf32>
    %135 = vector.broadcast %134 : vector<1x1x32xf32> to vector<2x16x32xf32>
    %136 = arith.mulf %133, %135 : vector<2x16x32xf32>
    %cst_65 = arith.constant dense<0.000000e+00> : vector<2x16xf32>
    %137 = vector.multi_reduction <add>, %136, %cst_65 [2] : vector<2x16x32xf32> to vector<2x16xf32>
    %138 = vector.broadcast %9 : vector<1x1xf32> to vector<2x16xf32>
    %139 = arith.addf %137, %138 : vector<2x16xf32>
    %cst_66 = arith.constant dense<0xFF800000> : vector<2xf32>
    %140 = vector.multi_reduction <maximumf>, %139, %cst_66 [1] : vector<2x16xf32> to vector<2xf32>
    %141 = vector.shape_cast %140 : vector<2xf32> to vector<2x1xf32>
    %142 = vector.broadcast %141 : vector<2x1xf32> to vector<2x16xf32>
    %143 = arith.subf %139, %142 : vector<2x16xf32>
    %144 = math.exp %143 : vector<2x16xf32>
    %cst_67 = arith.constant dense<0.000000e+00> : vector<2xf32>
    %145 = vector.multi_reduction <add>, %144, %cst_67 [1] : vector<2x16xf32> to vector<2xf32>
    %146 = vector.shape_cast %145 : vector<2xf32> to vector<2x1xf32>
    %147 = tpu.reciprocal %146 {approx = true} : vector<2x1xf32> -> vector<2x1xf32>
    %148 = vector.broadcast %147 : vector<2x1xf32> to vector<2x16xf32>
    %149 = arith.mulf %144, %148 : vector<2x16xf32>
    %150 = vector.shape_cast %149 : vector<2x16xf32> to vector<2x1x16xf32>
    %151 = arith.truncf %150 : vector<2x1x16xf32> to vector<2x1x16xbf16>
    "tpu.trace_start"() <{level = 10 : i32, message = "bqp,bpe->bqe"}> : () -> ()
    %cst_68 = arith.constant dense<0.000000e+00> : vector<2x1x32xf32>
    %152 = tpu.matmul %151, %4, %cst_68 {dimension_numbers = #tpu.dot_dimension_numbers<[2], [1], [1], [2], [0, 0, 0, 1, 1, 2], [0], [0]>} : vector<2x1x16xbf16>, vector<2x16x32xbf16>, vector<2x1x32xf32> -> vector<2x1x32xf32>
    "tpu.trace_stop"() : () -> ()
    %153 = vector.shape_cast %152 : vector<2x1x32xf32> to vector<2x32xf32>
    %cst_69 = arith.constant dense<0.000000e+00> : vector<2x32xf32>
    %154 = tpu.matmul %125, %10, %cst_69 {dimension_numbers = #tpu.dot_dimension_numbers<[1], [0], [0], [1], [0, 0, 1, 1], [], []>} : vector<2x32xbf16>, vector<32x32xbf16>, vector<2x32xf32> -> vector<2x32xf32>
    %155 = vector.broadcast %11 : vector<1x32xf32> to vector<2x32xf32>
    %156 = arith.addf %154, %155 : vector<2x32xf32>
    %157 = arith.negf %156 : vector<2x32xf32>
    %158 = math.exp %157 : vector<2x32xf32>
    %cst_70 = arith.constant 1.000000e+00 : f32
    %159 = vector.broadcast %cst_70 : f32 to vector<2x32xf32>
    %160 = arith.addf %159, %158 : vector<2x32xf32>
    %161 = arith.divf %159, %160 : vector<2x32xf32>
    %162 = arith.mulf %161, %153 : vector<2x32xf32>
    %c1 = arith.constant 1 : index
    %c0_71 = arith.constant 0 : index
    %c0_72 = arith.constant 0 : index
    %163 = vector.load %arg5[%c1, %c0_71, %c0_72] : memref<4x2x128xf32, #tpu.memory_space<vmem>>, vector<1x2x128xf32>
    %164 = vector.shape_cast %163 : vector<1x2x128xf32> to vector<2x128xf32>
    %165 = arith.truncf %162 : vector<2x32xf32> to vector<2x32xbf16>
    %cst_73 = arith.constant dense<0.000000e+00> : vector<2x128xf32>
    %166 = tpu.matmul %165, %12, %cst_73 {dimension_numbers = #tpu.dot_dimension_numbers<[1], [0], [0], [1], [0, 0, 1, 1], [], []>} : vector<2x32xbf16>, vector<32x128xbf16>, vector<2x128xf32> -> vector<2x128xf32>
    %167 = arith.addf %164, %166 : vector<2x128xf32>
    %cst_74 = arith.constant dense<0.000000e+00> : vector<2x128xf32>
    %168 = tpu.matmul %125, %13, %cst_74 {dimension_numbers = #tpu.dot_dimension_numbers<[1], [0], [0], [1], [0, 0, 1, 1], [], []>} : vector<2x32xbf16>, vector<32x128xbf16>, vector<2x128xf32> -> vector<2x128xf32>
    %169 = arith.addf %167, %168 : vector<2x128xf32>
    %170 = vector.broadcast %14 : vector<1x128xf32> to vector<2x128xf32>
    %171 = arith.addf %169, %170 : vector<2x128xf32>
    %172 = vector.extract_strided_slice %171 {offsets = [0, 0], sizes = [2, 32], strides = [1, 1]} : vector<2x128xf32> to vector<2x32xf32>
    %173 = arith.negf %172 : vector<2x32xf32>
    %174 = math.exp %173 : vector<2x32xf32>
    %cst_75 = arith.constant 1.000000e+00 : f32
    %175 = vector.broadcast %cst_75 : f32 to vector<2x32xf32>
    %176 = arith.addf %175, %174 : vector<2x32xf32>
    %177 = arith.divf %175, %176 : vector<2x32xf32>
    %178 = vector.extract_strided_slice %171 {offsets = [0, 32], sizes = [2, 32], strides = [1, 1]} : vector<2x128xf32> to vector<2x32xf32>
    %179 = arith.negf %178 : vector<2x32xf32>
    %180 = math.exp %179 : vector<2x32xf32>
    %cst_76 = arith.constant 1.000000e+00 : f32
    %181 = vector.broadcast %cst_76 : f32 to vector<2x32xf32>
    %182 = arith.addf %181, %180 : vector<2x32xf32>
    %183 = arith.divf %181, %182 : vector<2x32xf32>
    %184 = vector.extract_strided_slice %171 {offsets = [0, 64], sizes = [2, 32], strides = [1, 1]} : vector<2x128xf32> to vector<2x32xf32>
    %185 = math.tanh %184 : vector<2x32xf32>
    %186 = vector.extract_strided_slice %171 {offsets = [0, 96], sizes = [2, 32], strides = [1, 1]} : vector<2x128xf32> to vector<2x32xf32>
    %187 = arith.negf %186 : vector<2x32xf32>
    %188 = math.exp %187 : vector<2x32xf32>
    %cst_77 = arith.constant 1.000000e+00 : f32
    %189 = vector.broadcast %cst_77 : f32 to vector<2x32xf32>
    %190 = arith.addf %189, %188 : vector<2x32xf32>
    %191 = arith.divf %189, %190 : vector<2x32xf32>
    %192 = arith.mulf %183, %124 : vector<2x32xf32>
    %193 = arith.mulf %177, %185 : vector<2x32xf32>
    %194 = arith.addf %192, %193 : vector<2x32xf32>
    %195 = math.tanh %194 : vector<2x32xf32>
    %196 = arith.mulf %191, %195 : vector<2x32xf32>
    %197 = vector.broadcast %122 : vector<2x1xf32> to vector<2x32xf32>
    %198 = arith.mulf %197, %196 : vector<2x32xf32>
    %cst_78 = arith.constant 1.000000e+00 : f32
    %199 = vector.broadcast %cst_78 : f32 to vector<2x1xf32>
    %200 = arith.subf %199, %122 : vector<2x1xf32>
    %201 = vector.broadcast %200 : vector<2x1xf32> to vector<2x32xf32>
    %202 = arith.mulf %201, %123 : vector<2x32xf32>
    %203 = arith.addf %198, %202 : vector<2x32xf32>
    %204 = vector.broadcast %122 : vector<2x1xf32> to vector<2x32xf32>
    %205 = arith.mulf %204, %194 : vector<2x32xf32>
    %cst_79 = arith.constant 1.000000e+00 : f32
    %206 = vector.broadcast %cst_79 : f32 to vector<2x1xf32>
    %207 = arith.subf %206, %122 : vector<2x1xf32>
    %208 = vector.broadcast %207 : vector<2x1xf32> to vector<2x32xf32>
    %209 = arith.mulf %208, %124 : vector<2x32xf32>
    %210 = arith.addf %205, %209 : vector<2x32xf32>
    %c0_80 = arith.constant 0 : index
    %c0_81 = arith.constant 0 : index
    %211 = vector.load %arg19[%c0_80, %c0_81] : memref<2x32xf32, #tpu.memory_space<vmem>>, vector<2x32xf32>
    tpu.vector_store %arg19[%c0_80, %c0_81], %203 {strides = array<i32>} : memref<2x32xf32, #tpu.memory_space<vmem>>, vector<2x32xf32>,
    %c0_82 = arith.constant 0 : index
    %c0_83 = arith.constant 0 : index
    %212 = vector.load %arg20[%c0_82, %c0_83] : memref<2x32xf32, #tpu.memory_space<vmem>>, vector<2x32xf32>
    tpu.vector_store %arg20[%c0_82, %c0_83], %210 {strides = array<i32>} : memref<2x32xf32, #tpu.memory_space<vmem>>, vector<2x32xf32>,
    %c1_84 = arith.constant 1 : index
    %c0_85 = arith.constant 0 : index
    %c0_86 = arith.constant 0 : index
    %213 = vector.load %arg17[%c1_84, %c0_85, %c0_86] : memref<4x2x16xf32, #tpu.memory_space<vmem>>, vector<1x2x16xf32>
    %214 = vector.shape_cast %213 : vector<1x2x16xf32> to vector<2x16xf32>
    %215 = vector.shape_cast %149 : vector<2x16xf32> to vector<1x2x16xf32>
    tpu.vector_store %arg17[%c1_84, %c0_85, %c0_86], %215 {strides = array<i32>} : memref<4x2x16xf32, #tpu.memory_space<vmem>>, vector<1x2x16xf32>,
    %c1_87 = arith.constant 1 : index
    %c0_88 = arith.constant 0 : index
    %c0_89 = arith.constant 0 : index
    %216 = vector.load %arg18[%c1_87, %c0_88, %c0_89] : memref<4x2x32xf32, #tpu.memory_space<vmem>>, vector<1x2x32xf32>
    %217 = vector.shape_cast %216 : vector<1x2x32xf32> to vector<2x32xf32>
    %218 = vector.shape_cast %203 : vector<2x32xf32> to vector<1x2x32xf32>
    tpu.vector_store %arg18[%c1_87, %c0_88, %c0_89], %218 {strides = array<i32>} : memref<4x2x32xf32, #tpu.memory_space<vmem>>, vector<1x2x32xf32>,
    %c4_i32_90 = arith.constant 4 : i32
    %219 = arith.muli %arg1, %c4_i32_90 : i32
    %c2_i32 = arith.constant 2 : i32
    %220 = arith.addi %219, %c2_i32 : i32
    %221 = vector.broadcast %220 : i32 to vector<2x1xi32>
    %222 = arith.cmpi sgt, %5, %221 : vector<2x1xi32>
    %223 = arith.extui %222 : vector<2x1xi1> to vector<2x1xi32>
    %224 = arith.sitofp %223 : vector<2x1xi32> to vector<2x1xf32>
    %c0_91 = arith.constant 0 : index
    %c0_92 = arith.constant 0 : index
    %225 = vector.load %arg19[%c0_91, %c0_92] : memref<2x32xf32, #tpu.memory_space<vmem>>, vector<2x32xf32>
    %c0_93 = arith.constant 0 : index
    %c0_94 = arith.constant 0 : index
    %226 = vector.load %arg20[%c0_93, %c0_94] : memref<2x32xf32, #tpu.memory_space<vmem>>, vector<2x32xf32>
    %227 = arith.truncf %225 : vector<2x32xf32> to vector<2x32xbf16>
    %cst_95 = arith.constant dense<0.000000e+00> : vector<2x32xf32>
    %228 = tpu.matmul %227, %6, %cst_95 {dimension_numbers = #tpu.dot_dimension_numbers<[1], [0], [0], [1], [0, 0, 1, 1], [], []>} : vector<2x32xbf16>, vector<32x32xbf16>, vector<2x32xf32> -> vector<2x32xf32>
    %229 = vector.broadcast %7 : vector<1x32xf32> to vector<2x32xf32>
    %230 = arith.addf %228, %229 : vector<2x32xf32>
    %231 = vector.shape_cast %230 : vector<2x32xf32> to vector<2x1x32xf32>
    %232 = vector.broadcast %231 : vector<2x1x32xf32> to vector<2x16x32xf32>
    %233 = arith.addf %3, %232 : vector<2x16x32xf32>
    %cst_96 = arith.constant 0.000000e+00 : f32
    %234 = vector.broadcast %cst_96 : f32 to vector<2x16x32xf32>
    %235 = arith.maximumf %233, %234 : vector<2x16x32xf32>
    %236 = vector.shape_cast %8 : vector<1x32xf32> to vector<1x1x32xf32>
    %237 = vector.broadcast %236 : vector<1x1x32xf32> to vector<2x16x32xf32>
    %238 = arith.mulf %235, %237 : vector<2x16x32xf32>
    %cst_97 = arith.constant dense<0.000000e+00> : vector<2x16xf32>
    %239 = vector.multi_reduction <add>, %238, %cst_97 [2] : vector<2x16x32xf32> to vector<2x16xf32>
    %240 = vector.broadcast %9 : vector<1x1xf32> to vector<2x16xf32>
    %241 = arith.addf %239, %240 : vector<2x16xf32>
    %cst_98 = arith.constant dense<0xFF800000> : vector<2xf32>
    %242 = vector.multi_reduction <maximumf>, %241, %cst_98 [1] : vector<2x16xf32> to vector<2xf32>
    %243 = vector.shape_cast %242 : vector<2xf32> to vector<2x1xf32>
    %244 = vector.broadcast %243 : vector<2x1xf32> to vector<2x16xf32>
    %245 = arith.subf %241, %244 : vector<2x16xf32>
    %246 = math.exp %245 : vector<2x16xf32>
    %cst_99 = arith.constant dense<0.000000e+00> : vector<2xf32>
    %247 = vector.multi_reduction <add>, %246, %cst_99 [1] : vector<2x16xf32> to vector<2xf32>
    %248 = vector.shape_cast %247 : vector<2xf32> to vector<2x1xf32>
    %249 = tpu.reciprocal %248 {approx = true} : vector<2x1xf32> -> vector<2x1xf32>
    %250 = vector.broadcast %249 : vector<2x1xf32> to vector<2x16xf32>
    %251 = arith.mulf %246, %250 : vector<2x16xf32>
    %252 = vector.shape_cast %251 : vector<2x16xf32> to vector<2x1x16xf32>
    %253 = arith.truncf %252 : vector<2x1x16xf32> to vector<2x1x16xbf16>
    "tpu.trace_start"() <{level = 10 : i32, message = "bqp,bpe->bqe"}> : () -> ()
    %cst_100 = arith.constant dense<0.000000e+00> : vector<2x1x32xf32>
    %254 = tpu.matmul %253, %4, %cst_100 {dimension_numbers = #tpu.dot_dimension_numbers<[2], [1], [1], [2], [0, 0, 0, 1, 1, 2], [0], [0]>} : vector<2x1x16xbf16>, vector<2x16x32xbf16>, vector<2x1x32xf32> -> vector<2x1x32xf32>
    "tpu.trace_stop"() : () -> ()
    %255 = vector.shape_cast %254 : vector<2x1x32xf32> to vector<2x32xf32>
    %cst_101 = arith.constant dense<0.000000e+00> : vector<2x32xf32>
    %256 = tpu.matmul %227, %10, %cst_101 {dimension_numbers = #tpu.dot_dimension_numbers<[1], [0], [0], [1], [0, 0, 1, 1], [], []>} : vector<2x32xbf16>, vector<32x32xbf16>, vector<2x32xf32> -> vector<2x32xf32>
    %257 = vector.broadcast %11 : vector<1x32xf32> to vector<2x32xf32>
    %258 = arith.addf %256, %257 : vector<2x32xf32>
    %259 = arith.negf %258 : vector<2x32xf32>
    %260 = math.exp %259 : vector<2x32xf32>
    %cst_102 = arith.constant 1.000000e+00 : f32
    %261 = vector.broadcast %cst_102 : f32 to vector<2x32xf32>
    %262 = arith.addf %261, %260 : vector<2x32xf32>
    %263 = arith.divf %261, %262 : vector<2x32xf32>
    %264 = arith.mulf %263, %255 : vector<2x32xf32>
    %c2 = arith.constant 2 : index
    %c0_103 = arith.constant 0 : index
    %c0_104 = arith.constant 0 : index
    %265 = vector.load %arg5[%c2, %c0_103, %c0_104] : memref<4x2x128xf32, #tpu.memory_space<vmem>>, vector<1x2x128xf32>
    %266 = vector.shape_cast %265 : vector<1x2x128xf32> to vector<2x128xf32>
    %267 = arith.truncf %264 : vector<2x32xf32> to vector<2x32xbf16>
    %cst_105 = arith.constant dense<0.000000e+00> : vector<2x128xf32>
    %268 = tpu.matmul %267, %12, %cst_105 {dimension_numbers = #tpu.dot_dimension_numbers<[1], [0], [0], [1], [0, 0, 1, 1], [], []>} : vector<2x32xbf16>, vector<32x128xbf16>, vector<2x128xf32> -> vector<2x128xf32>
    %269 = arith.addf %266, %268 : vector<2x128xf32>
    %cst_106 = arith.constant dense<0.000000e+00> : vector<2x128xf32>
    %270 = tpu.matmul %227, %13, %cst_106 {dimension_numbers = #tpu.dot_dimension_numbers<[1], [0], [0], [1], [0, 0, 1, 1], [], []>} : vector<2x32xbf16>, vector<32x128xbf16>, vector<2x128xf32> -> vector<2x128xf32>
    %271 = arith.addf %269, %270 : vector<2x128xf32>
    %272 = vector.broadcast %14 : vector<1x128xf32> to vector<2x128xf32>
    %273 = arith.addf %271, %272 : vector<2x128xf32>
    %274 = vector.extract_strided_slice %273 {offsets = [0, 0], sizes = [2, 32], strides = [1, 1]} : vector<2x128xf32> to vector<2x32xf32>
    %275 = arith.negf %274 : vector<2x32xf32>
    %276 = math.exp %275 : vector<2x32xf32>
    %cst_107 = arith.constant 1.000000e+00 : f32
    %277 = vector.broadcast %cst_107 : f32 to vector<2x32xf32>
    %278 = arith.addf %277, %276 : vector<2x32xf32>
    %279 = arith.divf %277, %278 : vector<2x32xf32>
    %280 = vector.extract_strided_slice %273 {offsets = [0, 32], sizes = [2, 32], strides = [1, 1]} : vector<2x128xf32> to vector<2x32xf32>
    %281 = arith.negf %280 : vector<2x32xf32>
    %282 = math.exp %281 : vector<2x32xf32>
    %cst_108 = arith.constant 1.000000e+00 : f32
    %283 = vector.broadcast %cst_108 : f32 to vector<2x32xf32>
    %284 = arith.addf %283, %282 : vector<2x32xf32>
    %285 = arith.divf %283, %284 : vector<2x32xf32>
    %286 = vector.extract_strided_slice %273 {offsets = [0, 64], sizes = [2, 32], strides = [1, 1]} : vector<2x128xf32> to vector<2x32xf32>
    %287 = math.tanh %286 : vector<2x32xf32>
    %288 = vector.extract_strided_slice %273 {offsets = [0, 96], sizes = [2, 32], strides = [1, 1]} : vector<2x128xf32> to vector<2x32xf32>
    %289 = arith.negf %288 : vector<2x32xf32>
    %290 = math.exp %289 : vector<2x32xf32>
    %cst_109 = arith.constant 1.000000e+00 : f32
    %291 = vector.broadcast %cst_109 : f32 to vector<2x32xf32>
    %292 = arith.addf %291, %290 : vector<2x32xf32>
    %293 = arith.divf %291, %292 : vector<2x32xf32>
    %294 = arith.mulf %285, %226 : vector<2x32xf32>
    %295 = arith.mulf %279, %287 : vector<2x32xf32>
    %296 = arith.addf %294, %295 : vector<2x32xf32>
    %297 = math.tanh %296 : vector<2x32xf32>
    %298 = arith.mulf %293, %297 : vector<2x32xf32>
    %299 = vector.broadcast %224 : vector<2x1xf32> to vector<2x32xf32>
    %300 = arith.mulf %299, %298 : vector<2x32xf32>
    %cst_110 = arith.constant 1.000000e+00 : f32
    %301 = vector.broadcast %cst_110 : f32 to vector<2x1xf32>
    %302 = arith.subf %301, %224 : vector<2x1xf32>
    %303 = vector.broadcast %302 : vector<2x1xf32> to vector<2x32xf32>
    %304 = arith.mulf %303, %225 : vector<2x32xf32>
    %305 = arith.addf %300, %304 : vector<2x32xf32>
    %306 = vector.broadcast %224 : vector<2x1xf32> to vector<2x32xf32>
    %307 = arith.mulf %306, %296 : vector<2x32xf32>
    %cst_111 = arith.constant 1.000000e+00 : f32
    %308 = vector.broadcast %cst_111 : f32 to vector<2x1xf32>
    %309 = arith.subf %308, %224 : vector<2x1xf32>
    %310 = vector.broadcast %309 : vector<2x1xf32> to vector<2x32xf32>
    %311 = arith.mulf %310, %226 : vector<2x32xf32>
    %312 = arith.addf %307, %311 : vector<2x32xf32>
    %c0_112 = arith.constant 0 : index
    %c0_113 = arith.constant 0 : index
    %313 = vector.load %arg19[%c0_112, %c0_113] : memref<2x32xf32, #tpu.memory_space<vmem>>, vector<2x32xf32>
    tpu.vector_store %arg19[%c0_112, %c0_113], %305 {strides = array<i32>} : memref<2x32xf32, #tpu.memory_space<vmem>>, vector<2x32xf32>,
    %c0_114 = arith.constant 0 : index
    %c0_115 = arith.constant 0 : index
    %314 = vector.load %arg20[%c0_114, %c0_115] : memref<2x32xf32, #tpu.memory_space<vmem>>, vector<2x32xf32>
    tpu.vector_store %arg20[%c0_114, %c0_115], %312 {strides = array<i32>} : memref<2x32xf32, #tpu.memory_space<vmem>>, vector<2x32xf32>,
    %c2_116 = arith.constant 2 : index
    %c0_117 = arith.constant 0 : index
    %c0_118 = arith.constant 0 : index
    %315 = vector.load %arg17[%c2_116, %c0_117, %c0_118] : memref<4x2x16xf32, #tpu.memory_space<vmem>>, vector<1x2x16xf32>
    %316 = vector.shape_cast %315 : vector<1x2x16xf32> to vector<2x16xf32>
    %317 = vector.shape_cast %251 : vector<2x16xf32> to vector<1x2x16xf32>
    tpu.vector_store %arg17[%c2_116, %c0_117, %c0_118], %317 {strides = array<i32>} : memref<4x2x16xf32, #tpu.memory_space<vmem>>, vector<1x2x16xf32>,
    %c2_119 = arith.constant 2 : index
    %c0_120 = arith.constant 0 : index
    %c0_121 = arith.constant 0 : index
    %318 = vector.load %arg18[%c2_119, %c0_120, %c0_121] : memref<4x2x32xf32, #tpu.memory_space<vmem>>, vector<1x2x32xf32>
    %319 = vector.shape_cast %318 : vector<1x2x32xf32> to vector<2x32xf32>
    %320 = vector.shape_cast %305 : vector<2x32xf32> to vector<1x2x32xf32>
    tpu.vector_store %arg18[%c2_119, %c0_120, %c0_121], %320 {strides = array<i32>} : memref<4x2x32xf32, #tpu.memory_space<vmem>>, vector<1x2x32xf32>,
    %c4_i32_122 = arith.constant 4 : i32
    %321 = arith.muli %arg1, %c4_i32_122 : i32
    %c3_i32 = arith.constant 3 : i32
    %322 = arith.addi %321, %c3_i32 : i32
    %323 = vector.broadcast %322 : i32 to vector<2x1xi32>
    %324 = arith.cmpi sgt, %5, %323 : vector<2x1xi32>
    %325 = arith.extui %324 : vector<2x1xi1> to vector<2x1xi32>
    %326 = arith.sitofp %325 : vector<2x1xi32> to vector<2x1xf32>
    %c0_123 = arith.constant 0 : index
    %c0_124 = arith.constant 0 : index
    %327 = vector.load %arg19[%c0_123, %c0_124] : memref<2x32xf32, #tpu.memory_space<vmem>>, vector<2x32xf32>
    %c0_125 = arith.constant 0 : index
    %c0_126 = arith.constant 0 : index
    %328 = vector.load %arg20[%c0_125, %c0_126] : memref<2x32xf32, #tpu.memory_space<vmem>>, vector<2x32xf32>
    %329 = arith.truncf %327 : vector<2x32xf32> to vector<2x32xbf16>
    %cst_127 = arith.constant dense<0.000000e+00> : vector<2x32xf32>
    %330 = tpu.matmul %329, %6, %cst_127 {dimension_numbers = #tpu.dot_dimension_numbers<[1], [0], [0], [1], [0, 0, 1, 1], [], []>} : vector<2x32xbf16>, vector<32x32xbf16>, vector<2x32xf32> -> vector<2x32xf32>
    %331 = vector.broadcast %7 : vector<1x32xf32> to vector<2x32xf32>
    %332 = arith.addf %330, %331 : vector<2x32xf32>
    %333 = vector.shape_cast %332 : vector<2x32xf32> to vector<2x1x32xf32>
    %334 = vector.broadcast %333 : vector<2x1x32xf32> to vector<2x16x32xf32>
    %335 = arith.addf %3, %334 : vector<2x16x32xf32>
    %cst_128 = arith.constant 0.000000e+00 : f32
    %336 = vector.broadcast %cst_128 : f32 to vector<2x16x32xf32>
    %337 = arith.maximumf %335, %336 : vector<2x16x32xf32>
    %338 = vector.shape_cast %8 : vector<1x32xf32> to vector<1x1x32xf32>
    %339 = vector.broadcast %338 : vector<1x1x32xf32> to vector<2x16x32xf32>
    %340 = arith.mulf %337, %339 : vector<2x16x32xf32>
    %cst_129 = arith.constant dense<0.000000e+00> : vector<2x16xf32>
    %341 = vector.multi_reduction <add>, %340, %cst_129 [2] : vector<2x16x32xf32> to vector<2x16xf32>
    %342 = vector.broadcast %9 : vector<1x1xf32> to vector<2x16xf32>
    %343 = arith.addf %341, %342 : vector<2x16xf32>
    %cst_130 = arith.constant dense<0xFF800000> : vector<2xf32>
    %344 = vector.multi_reduction <maximumf>, %343, %cst_130 [1] : vector<2x16xf32> to vector<2xf32>
    %345 = vector.shape_cast %344 : vector<2xf32> to vector<2x1xf32>
    %346 = vector.broadcast %345 : vector<2x1xf32> to vector<2x16xf32>
    %347 = arith.subf %343, %346 : vector<2x16xf32>
    %348 = math.exp %347 : vector<2x16xf32>
    %cst_131 = arith.constant dense<0.000000e+00> : vector<2xf32>
    %349 = vector.multi_reduction <add>, %348, %cst_131 [1] : vector<2x16xf32> to vector<2xf32>
    %350 = vector.shape_cast %349 : vector<2xf32> to vector<2x1xf32>
    %351 = tpu.reciprocal %350 {approx = true} : vector<2x1xf32> -> vector<2x1xf32>
    %352 = vector.broadcast %351 : vector<2x1xf32> to vector<2x16xf32>
    %353 = arith.mulf %348, %352 : vector<2x16xf32>
    %354 = vector.shape_cast %353 : vector<2x16xf32> to vector<2x1x16xf32>
    %355 = arith.truncf %354 : vector<2x1x16xf32> to vector<2x1x16xbf16>
    "tpu.trace_start"() <{level = 10 : i32, message = "bqp,bpe->bqe"}> : () -> ()
    %cst_132 = arith.constant dense<0.000000e+00> : vector<2x1x32xf32>
    %356 = tpu.matmul %355, %4, %cst_132 {dimension_numbers = #tpu.dot_dimension_numbers<[2], [1], [1], [2], [0, 0, 0, 1, 1, 2], [0], [0]>} : vector<2x1x16xbf16>, vector<2x16x32xbf16>, vector<2x1x32xf32> -> vector<2x1x32xf32>
    "tpu.trace_stop"() : () -> ()
    %357 = vector.shape_cast %356 : vector<2x1x32xf32> to vector<2x32xf32>
    %cst_133 = arith.constant dense<0.000000e+00> : vector<2x32xf32>
    %358 = tpu.matmul %329, %10, %cst_133 {dimension_numbers = #tpu.dot_dimension_numbers<[1], [0], [0], [1], [0, 0, 1, 1], [], []>} : vector<2x32xbf16>, vector<32x32xbf16>, vector<2x32xf32> -> vector<2x32xf32>
    %359 = vector.broadcast %11 : vector<1x32xf32> to vector<2x32xf32>
    %360 = arith.addf %358, %359 : vector<2x32xf32>
    %361 = arith.negf %360 : vector<2x32xf32>
    %362 = math.exp %361 : vector<2x32xf32>
    %cst_134 = arith.constant 1.000000e+00 : f32
    %363 = vector.broadcast %cst_134 : f32 to vector<2x32xf32>
    %364 = arith.addf %363, %362 : vector<2x32xf32>
    %365 = arith.divf %363, %364 : vector<2x32xf32>
    %366 = arith.mulf %365, %357 : vector<2x32xf32>
    %c3 = arith.constant 3 : index
    %c0_135 = arith.constant 0 : index
    %c0_136 = arith.constant 0 : index
    %367 = vector.load %arg5[%c3, %c0_135, %c0_136] : memref<4x2x128xf32, #tpu.memory_space<vmem>>, vector<1x2x128xf32>
    %368 = vector.shape_cast %367 : vector<1x2x128xf32> to vector<2x128xf32>
    %369 = arith.truncf %366 : vector<2x32xf32> to vector<2x32xbf16>
    %cst_137 = arith.constant dense<0.000000e+00> : vector<2x128xf32>
    %370 = tpu.matmul %369, %12, %cst_137 {dimension_numbers = #tpu.dot_dimension_numbers<[1], [0], [0], [1], [0, 0, 1, 1], [], []>} : vector<2x32xbf16>, vector<32x128xbf16>, vector<2x128xf32> -> vector<2x128xf32>
    %371 = arith.addf %368, %370 : vector<2x128xf32>
    %cst_138 = arith.constant dense<0.000000e+00> : vector<2x128xf32>
    %372 = tpu.matmul %329, %13, %cst_138 {dimension_numbers = #tpu.dot_dimension_numbers<[1], [0], [0], [1], [0, 0, 1, 1], [], []>} : vector<2x32xbf16>, vector<32x128xbf16>, vector<2x128xf32> -> vector<2x128xf32>
    %373 = arith.addf %371, %372 : vector<2x128xf32>
    %374 = vector.broadcast %14 : vector<1x128xf32> to vector<2x128xf32>
    %375 = arith.addf %373, %374 : vector<2x128xf32>
    %376 = vector.extract_strided_slice %375 {offsets = [0, 0], sizes = [2, 32], strides = [1, 1]} : vector<2x128xf32> to vector<2x32xf32>
    %377 = arith.negf %376 : vector<2x32xf32>
    %378 = math.exp %377 : vector<2x32xf32>
    %cst_139 = arith.constant 1.000000e+00 : f32
    %379 = vector.broadcast %cst_139 : f32 to vector<2x32xf32>
    %380 = arith.addf %379, %378 : vector<2x32xf32>
    %381 = arith.divf %379, %380 : vector<2x32xf32>
    %382 = vector.extract_strided_slice %375 {offsets = [0, 32], sizes = [2, 32], strides = [1, 1]} : vector<2x128xf32> to vector<2x32xf32>
    %383 = arith.negf %382 : vector<2x32xf32>
    %384 = math.exp %383 : vector<2x32xf32>
    %cst_140 = arith.constant 1.000000e+00 : f32
    %385 = vector.broadcast %cst_140 : f32 to vector<2x32xf32>
    %386 = arith.addf %385, %384 : vector<2x32xf32>
    %387 = arith.divf %385, %386 : vector<2x32xf32>
    %388 = vector.extract_strided_slice %375 {offsets = [0, 64], sizes = [2, 32], strides = [1, 1]} : vector<2x128xf32> to vector<2x32xf32>
    %389 = math.tanh %388 : vector<2x32xf32>
    %390 = vector.extract_strided_slice %375 {offsets = [0, 96], sizes = [2, 32], strides = [1, 1]} : vector<2x128xf32> to vector<2x32xf32>
    %391 = arith.negf %390 : vector<2x32xf32>
    %392 = math.exp %391 : vector<2x32xf32>
    %cst_141 = arith.constant 1.000000e+00 : f32
    %393 = vector.broadcast %cst_141 : f32 to vector<2x32xf32>
    %394 = arith.addf %393, %392 : vector<2x32xf32>
    %395 = arith.divf %393, %394 : vector<2x32xf32>
    %396 = arith.mulf %387, %328 : vector<2x32xf32>
    %397 = arith.mulf %381, %389 : vector<2x32xf32>
    %398 = arith.addf %396, %397 : vector<2x32xf32>
    %399 = math.tanh %398 : vector<2x32xf32>
    %400 = arith.mulf %395, %399 : vector<2x32xf32>
    %401 = vector.broadcast %326 : vector<2x1xf32> to vector<2x32xf32>
    %402 = arith.mulf %401, %400 : vector<2x32xf32>
    %cst_142 = arith.constant 1.000000e+00 : f32
    %403 = vector.broadcast %cst_142 : f32 to vector<2x1xf32>
    %404 = arith.subf %403, %326 : vector<2x1xf32>
    %405 = vector.broadcast %404 : vector<2x1xf32> to vector<2x32xf32>
    %406 = arith.mulf %405, %327 : vector<2x32xf32>
    %407 = arith.addf %402, %406 : vector<2x32xf32>
    %408 = vector.broadcast %326 : vector<2x1xf32> to vector<2x32xf32>
    %409 = arith.mulf %408, %398 : vector<2x32xf32>
    %cst_143 = arith.constant 1.000000e+00 : f32
    %410 = vector.broadcast %cst_143 : f32 to vector<2x1xf32>
    %411 = arith.subf %410, %326 : vector<2x1xf32>
    %412 = vector.broadcast %411 : vector<2x1xf32> to vector<2x32xf32>
    %413 = arith.mulf %412, %328 : vector<2x32xf32>
    %414 = arith.addf %409, %413 : vector<2x32xf32>
    %c0_144 = arith.constant 0 : index
    %c0_145 = arith.constant 0 : index
    %415 = vector.load %arg19[%c0_144, %c0_145] : memref<2x32xf32, #tpu.memory_space<vmem>>, vector<2x32xf32>
    tpu.vector_store %arg19[%c0_144, %c0_145], %407 {strides = array<i32>} : memref<2x32xf32, #tpu.memory_space<vmem>>, vector<2x32xf32>,
    %c0_146 = arith.constant 0 : index
    %c0_147 = arith.constant 0 : index
    %416 = vector.load %arg20[%c0_146, %c0_147] : memref<2x32xf32, #tpu.memory_space<vmem>>, vector<2x32xf32>
    tpu.vector_store %arg20[%c0_146, %c0_147], %414 {strides = array<i32>} : memref<2x32xf32, #tpu.memory_space<vmem>>, vector<2x32xf32>,
    %c3_148 = arith.constant 3 : index
    %c0_149 = arith.constant 0 : index
    %c0_150 = arith.constant 0 : index
    %417 = vector.load %arg17[%c3_148, %c0_149, %c0_150] : memref<4x2x16xf32, #tpu.memory_space<vmem>>, vector<1x2x16xf32>
    %418 = vector.shape_cast %417 : vector<1x2x16xf32> to vector<2x16xf32>
    %419 = vector.shape_cast %353 : vector<2x16xf32> to vector<1x2x16xf32>
    tpu.vector_store %arg17[%c3_148, %c0_149, %c0_150], %419 {strides = array<i32>} : memref<4x2x16xf32, #tpu.memory_space<vmem>>, vector<1x2x16xf32>,
    %c3_151 = arith.constant 3 : index
    %c0_152 = arith.constant 0 : index
    %c0_153 = arith.constant 0 : index
    %420 = vector.load %arg18[%c3_151, %c0_152, %c0_153] : memref<4x2x32xf32, #tpu.memory_space<vmem>>, vector<1x2x32xf32>
    %421 = vector.shape_cast %420 : vector<1x2x32xf32> to vector<2x32xf32>
    %422 = vector.shape_cast %407 : vector<2x32xf32> to vector<1x2x32xf32>
    tpu.vector_store %arg18[%c3_151, %c0_152, %c0_153], %422 {strides = array<i32>} : memref<4x2x32xf32, #tpu.memory_space<vmem>>, vector<1x2x32xf32>,
    return
  }
  func.func @transform_0(%arg0: i32, %arg1: i32) -> (i32, i32) {
    %c0_i32 = arith.constant 0 : i32
    %c0_i32_0 = arith.constant 0 : i32
    return %arg0, %c0_i32 : i32, i32
  }
  func.func @transform_1(%arg0: i32, %arg1: i32) -> (i32, i32, i32) {
    %c0_i32 = arith.constant 0 : i32
    %c0_i32_0 = arith.constant 0 : i32
    %c0_i32_1 = arith.constant 0 : i32
    return %arg0, %c0_i32, %c0_i32_0 : i32, i32, i32
  }
  func.func @transform_2(%arg0: i32, %arg1: i32) -> (i32, i32, i32) {
    %c0_i32 = arith.constant 0 : i32
    %c0_i32_0 = arith.constant 0 : i32
    %c0_i32_1 = arith.constant 0 : i32
    return %arg0, %c0_i32, %c0_i32_0 : i32, i32, i32
  }
  func.func @transform_3(%arg0: i32, %arg1: i32) -> (i32, i32, i32) {
    %c0_i32 = arith.constant 0 : i32
    %c0_i32_0 = arith.constant 0 : i32
    return %arg1, %arg0, %c0_i32 : i32, i32, i32
  }
  func.func @transform_4(%arg0: i32, %arg1: i32) -> (i32, i32) {
    %c0_i32 = arith.constant 0 : i32
    %c0_i32_0 = arith.constant 0 : i32
    return %arg0, %c0_i32 : i32, i32
  }
  func.func @transform_5(%arg0: i32, %arg1: i32) -> (i32, i32) {
    %c0_i32 = arith.constant 0 : i32
    %c0_i32_0 = arith.constant 0 : i32
    return %arg0, %c0_i32 : i32, i32
  }
  func.func @transform_6(%arg0: i32, %arg1: i32) -> (i32, i32) {
    %c0_i32 = arith.constant 0 : i32
    %c0_i32_0 = arith.constant 0 : i32
    %c0_i32_1 = arith.constant 0 : i32
    return %c0_i32, %c0_i32_0 : i32, i32
  }
  func.func @transform_7(%arg0: i32, %arg1: i32) -> (i32, i32) {
    %c0_i32 = arith.constant 0 : i32
    %c0_i32_0 = arith.constant 0 : i32
    %c0_i32_1 = arith.constant 0 : i32
    return %c0_i32, %c0_i32_0 : i32, i32
  }
  func.func @transform_8(%arg0: i32, %arg1: i32) -> (i32, i32) {
    %c0_i32 = arith.constant 0 : i32
    %c0_i32_0 = arith.constant 0 : i32
    %c0_i32_1 = arith.constant 0 : i32
    return %c0_i32, %c0_i32_0 : i32, i32
  }
  func.func @transform_9(%arg0: i32, %arg1: i32) -> (i32, i32) {
    %c0_i32 = arith.constant 0 : i32
    %c0_i32_0 = arith.constant 0 : i32
    %c0_i32_1 = arith.constant 0 : i32
    return %c0_i32, %c0_i32_0 : i32, i32
  }
  func.func @transform_10(%arg0: i32, %arg1: i32) -> (i32, i32) {
    %c0_i32 = arith.constant 0 : i32
    %c0_i32_0 = arith.constant 0 : i32
    %c0_i32_1 = arith.constant 0 : i32
    return %c0_i32, %c0_i32_0 : i32, i32
  }
  func.func @transform_11(%arg0: i32, %arg1: i32) -> (i32, i32) {
    %c0_i32 = arith.constant 0 : i32
    %c0_i32_0 = arith.constant 0 : i32
    %c0_i32_1 = arith.constant 0 : i32
    return %c0_i32, %c0_i32_0 : i32, i32
  }
  func.func @transform_12(%arg0: i32, %arg1: i32) -> (i32, i32) {
    %c0_i32 = arith.constant 0 : i32
    %c0_i32_0 = arith.constant 0 : i32
    %c0_i32_1 = arith.constant 0 : i32
    return %c0_i32, %c0_i32_0 : i32, i32
  }
  func.func @transform_13(%arg0: i32, %arg1: i32) -> (i32, i32) {
    %c0_i32 = arith.constant 0 : i32
    %c0_i32_0 = arith.constant 0 : i32
    %c0_i32_1 = arith.constant 0 : i32
    return %c0_i32, %c0_i32_0 : i32, i32
  }
  func.func @transform_14(%arg0: i32, %arg1: i32) -> (i32, i32) {
    %c0_i32 = arith.constant 0 : i32
    %c0_i32_0 = arith.constant 0 : i32
    %c0_i32_1 = arith.constant 0 : i32
    return %c0_i32, %c0_i32_0 : i32, i32
  }
  func.func @transform_15(%arg0: i32, %arg1: i32) -> (i32, i32, i32) {
    %c0_i32 = arith.constant 0 : i32
    %c0_i32_0 = arith.constant 0 : i32
    return %arg1, %arg0, %c0_i32 : i32, i32, i32
  }
  func.func @transform_16(%arg0: i32, %arg1: i32) -> (i32, i32, i32) {
    %c0_i32 = arith.constant 0 : i32
    %c0_i32_0 = arith.constant 0 : i32
    return %arg1, %arg0, %c0_i32 : i32, i32, i32
  }
}

module attributes {stable_mosaic.version = 11 : i64} {
  func.func @kernel(%arg0: i32, %arg1: i32, %arg2: memref<2x1xi32, #tpu.memory_space<vmem>>, %arg3: memref<2x16x32xf32, #tpu.memory_space<vmem>>, %arg4: memref<2x16x32xbf16, #tpu.memory_space<vmem>>, %arg5: memref<4x2x128xf32, #tpu.memory_space<vmem>>, %arg6: memref<2x32xf32, #tpu.memory_space<vmem>>, %arg7: memref<2x32xf32, #tpu.memory_space<vmem>>, %arg8: memref<32x32xbf16, #tpu.memory_space<vmem>>, %arg9: memref<1x32xf32, #tpu.memory_space<vmem>>, %arg10: memref<1x32xf32, #tpu.memory_space<vmem>>, %arg11: memref<1x1xf32, #tpu.memory_space<vmem>>, %arg12: memref<32x32xbf16, #tpu.memory_space<vmem>>, %arg13: memref<1x32xf32, #tpu.memory_space<vmem>>, %arg14: memref<32x128xbf16, #tpu.memory_space<vmem>>, %arg15: memref<32x128xbf16, #tpu.memory_space<vmem>>, %arg16: memref<1x128xf32, #tpu.memory_space<vmem>>, %arg17: memref<4x2x16xf32, #tpu.memory_space<vmem>>, %arg18: memref<4x2x32xf32, #tpu.memory_space<vmem>>, %arg19: memref<2x32xf32, #tpu.memory_space<vmem>>, %arg20: memref<2x32xf32, #tpu.memory_space<vmem>>) attributes {dimension_semantics = [#tpu.dimension_semantics<parallel>, #tpu.dimension_semantics<arbitrary>], iteration_bounds = array<i64: 1, 2>, scalar_prefetch = 0 : i64, scratch_operands = 2 : i64, tpu.core_type = #tpu.core_type<tc>, window_params = [{transform_indices = @transform_0, window_bounds = array<i64: 2, 1>}, {transform_indices = @transform_1, window_bounds = array<i64: 2, 16, 32>}, {transform_indices = @transform_2, window_bounds = array<i64: 2, 16, 32>}, {transform_indices = @transform_3, window_bounds = array<i64: 4, 2, 128>}, {transform_indices = @transform_4, window_bounds = array<i64: 2, 32>}, {transform_indices = @transform_5, window_bounds = array<i64: 2, 32>}, {pipeline_mode = #tpu.pipeline_mode<synchronous>, transform_indices = @transform_6, window_bounds = array<i64: 32, 32>}, {pipeline_mode = #tpu.pipeline_mode<synchronous>, transform_indices = @transform_7, window_bounds = array<i64: 1, 32>}, {pipeline_mode = #tpu.pipeline_mode<synchronous>, transform_indices = @transform_8, window_bounds = array<i64: 1, 32>}, {pipeline_mode = #tpu.pipeline_mode<synchronous>, transform_indices = @transform_9, window_bounds = array<i64: 1, 1>}, {pipeline_mode = #tpu.pipeline_mode<synchronous>, transform_indices = @transform_10, window_bounds = array<i64: 32, 32>}, {pipeline_mode = #tpu.pipeline_mode<synchronous>, transform_indices = @transform_11, window_bounds = array<i64: 1, 32>}, {pipeline_mode = #tpu.pipeline_mode<synchronous>, transform_indices = @transform_12, window_bounds = array<i64: 32, 128>}, {pipeline_mode = #tpu.pipeline_mode<synchronous>, transform_indices = @transform_13, window_bounds = array<i64: 32, 128>}, {pipeline_mode = #tpu.pipeline_mode<synchronous>, transform_indices = @transform_14, window_bounds = array<i64: 1, 128>}, {transform_indices = @transform_15, window_bounds = array<i64: 4, 2, 16>}, {transform_indices = @transform_16, window_bounds = array<i64: 4, 2, 32>}]} {
    %c0_i32 = arith.constant 0 : i32
    %0 = arith.cmpi eq, %arg1, %c0_i32 : i32
    %1 = arith.extui %0 : i1 to i32
    %c0_i32_0 = arith.constant 0 : i32
    %2 = arith.cmpi ne, %1, %c0_i32_0 : i32
    scf.if %2 {
      %c0_154 = arith.constant 0 : index
      %c0_155 = arith.constant 0 : index
      %427 = vector.load %arg6[%c0_154, %c0_155] : memref<2x32xf32, #tpu.memory_space<vmem>>, vector<2x32xf32>
      %c0_156 = arith.constant 0 : index
      %c0_157 = arith.constant 0 : index
      %428 = vector.load %arg19[%c0_156, %c0_157] : memref<2x32xf32, #tpu.memory_space<vmem>>, vector<2x32xf32>
      tpu.vector_store %arg19[%c0_156, %c0_157], %427 {strides = array<i32>} : memref<2x32xf32, #tpu.memory_space<vmem>>, vector<2x32xf32>,
      %c0_158 = arith.constant 0 : index
      %c0_159 = arith.constant 0 : index
      %429 = vector.load %arg7[%c0_158, %c0_159] : memref<2x32xf32, #tpu.memory_space<vmem>>, vector<2x32xf32>
      %c0_160 = arith.constant 0 : index
      %c0_161 = arith.constant 0 : index
      %430 = vector.load %arg20[%c0_160, %c0_161] : memref<2x32xf32, #tpu.memory_space<vmem>>, vector<2x32xf32>
      tpu.vector_store %arg20[%c0_160, %c0_161], %429 {strides = array<i32>} : memref<2x32xf32, #tpu.memory_space<vmem>>, vector<2x32xf32>,
    } else {
    }
    %c0 = arith.constant 0 : index
    %c0_1 = arith.constant 0 : index
    %c0_2 = arith.constant 0 : index
    %3 = vector.load %arg3[%c0, %c0_1, %c0_2] : memref<2x16x32xf32, #tpu.memory_space<vmem>>, vector<2x16x32xf32>
    %c0_3 = arith.constant 0 : index
    %c0_4 = arith.constant 0 : index
    %c0_5 = arith.constant 0 : index
    %4 = vector.load %arg4[%c0_3, %c0_4, %c0_5] : memref<2x16x32xbf16, #tpu.memory_space<vmem>>, vector<2x16x32xbf16>
    %c0_6 = arith.constant 0 : index
    %c0_7 = arith.constant 0 : index
    %5 = vector.load %arg2[%c0_6, %c0_7] : memref<2x1xi32, #tpu.memory_space<vmem>>, vector<2x1xi32>
    %c0_8 = arith.constant 0 : index
    %c0_9 = arith.constant 0 : index
    %6 = vector.load %arg8[%c0_8, %c0_9] : memref<32x32xbf16, #tpu.memory_space<vmem>>, vector<32x32xbf16>
    %c0_10 = arith.constant 0 : index
    %c0_11 = arith.constant 0 : index
    %7 = vector.load %arg9[%c0_10, %c0_11] : memref<1x32xf32, #tpu.memory_space<vmem>>, vector<1x32xf32>
    %c0_12 = arith.constant 0 : index
    %c0_13 = arith.constant 0 : index
    %8 = vector.load %arg10[%c0_12, %c0_13] : memref<1x32xf32, #tpu.memory_space<vmem>>, vector<1x32xf32>
    %c0_14 = arith.constant 0 : index
    %c0_15 = arith.constant 0 : index
    %9 = vector.load %arg11[%c0_14, %c0_15] : memref<1x1xf32, #tpu.memory_space<vmem>>, vector<1x1xf32>
    %c0_16 = arith.constant 0 : index
    %c0_17 = arith.constant 0 : index
    %10 = vector.load %arg12[%c0_16, %c0_17] : memref<32x32xbf16, #tpu.memory_space<vmem>>, vector<32x32xbf16>
    %c0_18 = arith.constant 0 : index
    %c0_19 = arith.constant 0 : index
    %11 = vector.load %arg13[%c0_18, %c0_19] : memref<1x32xf32, #tpu.memory_space<vmem>>, vector<1x32xf32>
    %c0_20 = arith.constant 0 : index
    %c0_21 = arith.constant 0 : index
    %12 = vector.load %arg14[%c0_20, %c0_21] : memref<32x128xbf16, #tpu.memory_space<vmem>>, vector<32x128xbf16>
    %c0_22 = arith.constant 0 : index
    %c0_23 = arith.constant 0 : index
    %13 = vector.load %arg15[%c0_22, %c0_23] : memref<32x128xbf16, #tpu.memory_space<vmem>>, vector<32x128xbf16>
    %c0_24 = arith.constant 0 : index
    %c0_25 = arith.constant 0 : index
    %14 = vector.load %arg16[%c0_24, %c0_25] : memref<1x128xf32, #tpu.memory_space<vmem>>, vector<1x128xf32>
    %c4_i32 = arith.constant 4 : i32
    %15 = arith.muli %arg1, %c4_i32 : i32
    %c0_i32_26 = arith.constant 0 : i32
    %16 = arith.addi %15, %c0_i32_26 : i32
    %17 = vector.broadcast %16 : i32 to vector<2x1xi32>
    %18 = arith.cmpi sgt, %5, %17 : vector<2x1xi32>
    %19 = arith.extui %18 : vector<2x1xi1> to vector<2x1xi32>
    %20 = arith.sitofp %19 : vector<2x1xi32> to vector<2x1xf32>
    %c0_27 = arith.constant 0 : index
    %c0_28 = arith.constant 0 : index
    %21 = vector.load %arg19[%c0_27, %c0_28] : memref<2x32xf32, #tpu.memory_space<vmem>>, vector<2x32xf32>
    %c0_29 = arith.constant 0 : index
    %c0_30 = arith.constant 0 : index
    %22 = vector.load %arg20[%c0_29, %c0_30] : memref<2x32xf32, #tpu.memory_space<vmem>>, vector<2x32xf32>
    %23 = arith.truncf %21 : vector<2x32xf32> to vector<2x32xbf16>
    %cst = arith.constant dense<0.000000e+00> : vector<2x32xf32>
    %24 = tpu.matmul %23, %6, %cst {dimension_numbers = #tpu.dot_dimension_numbers<[1], [0], [0], [1], [0, 0, 1, 1], [], []>} : vector<2x32xbf16>, vector<32x32xbf16>, vector<2x32xf32> -> vector<2x32xf32>
    %25 = vector.broadcast %7 : vector<1x32xf32> to vector<2x32xf32>
    %26 = arith.addf %24, %25 : vector<2x32xf32>
    %27 = vector.shape_cast %26 : vector<2x32xf32> to vector<2x1x32xf32>
    %28 = vector.broadcast %27 : vector<2x1x32xf32> to vector<2x16x32xf32>
    %29 = arith.addf %3, %28 : vector<2x16x32xf32>
    %cst_31 = arith.constant 0.000000e+00 : f32
    %30 = vector.broadcast %cst_31 : f32 to vector<2x16x32xf32>
    %31 = arith.maximumf %29, %30 : vector<2x16x32xf32>
    %32 = vector.shape_cast %8 : vector<1x32xf32> to vector<1x1x32xf32>
    %33 = vector.broadcast %32 : vector<1x1x32xf32> to vector<2x16x32xf32>
    %34 = arith.mulf %31, %33 : vector<2x16x32xf32>
    %cst_32 = arith.constant dense<0.000000e+00> : vector<2x16xf32>
    %35 = vector.multi_reduction <add>, %34, %cst_32 [2] : vector<2x16x32xf32> to vector<2x16xf32>
    %36 = vector.broadcast %9 : vector<1x1xf32> to vector<2x16xf32>
    %37 = arith.addf %35, %36 : vector<2x16xf32>
    %cst_33 = arith.constant dense<0xFF800000> : vector<2xf32>
    %38 = vector.multi_reduction <maximumf>, %37, %cst_33 [1] : vector<2x16xf32> to vector<2xf32>
    %39 = vector.shape_cast %38 : vector<2xf32> to vector<2x1xf32>
    %40 = vector.broadcast %39 : vector<2x1xf32> to vector<2x16xf32>
    %41 = arith.subf %37, %40 : vector<2x16xf32>
    %42 = math.exp %41 : vector<2x16xf32>
    %cst_34 = arith.constant dense<0.000000e+00> : vector<2xf32>
    %43 = vector.multi_reduction <add>, %42, %cst_34 [1] : vector<2x16xf32> to vector<2xf32>
    %44 = vector.shape_cast %43 : vector<2xf32> to vector<2x1xf32>
    %45 = tpu.reciprocal %44 {approx = true} : vector<2x1xf32> -> vector<2x1xf32>
    %46 = vector.broadcast %45 : vector<2x1xf32> to vector<2x16xf32>
    %47 = arith.mulf %42, %46 : vector<2x16xf32>
    %48 = vector.shape_cast %47 : vector<2x16xf32> to vector<2x16x1xf32>
    %49 = arith.extf %4 : vector<2x16x32xbf16> to vector<2x16x32xf32>
    %50 = vector.broadcast %48 : vector<2x16x1xf32> to vector<2x16x32xf32>
    %51 = arith.mulf %50, %49 : vector<2x16x32xf32>
    %cst_35 = arith.constant dense<0.000000e+00> : vector<2x32xf32>
    %52 = vector.multi_reduction <add>, %51, %cst_35 [1] : vector<2x16x32xf32> to vector<2x32xf32>
    %cst_36 = arith.constant dense<0.000000e+00> : vector<2x32xf32>
    %53 = tpu.matmul %23, %10, %cst_36 {dimension_numbers = #tpu.dot_dimension_numbers<[1], [0], [0], [1], [0, 0, 1, 1], [], []>} : vector<2x32xbf16>, vector<32x32xbf16>, vector<2x32xf32> -> vector<2x32xf32>
    %54 = vector.broadcast %11 : vector<1x32xf32> to vector<2x32xf32>
    %55 = arith.addf %53, %54 : vector<2x32xf32>
    %56 = arith.negf %55 : vector<2x32xf32>
    %57 = math.exp %56 : vector<2x32xf32>
    %cst_37 = arith.constant 1.000000e+00 : f32
    %58 = vector.broadcast %cst_37 : f32 to vector<2x32xf32>
    %59 = arith.addf %58, %57 : vector<2x32xf32>
    %60 = arith.divf %58, %59 : vector<2x32xf32>
    %61 = arith.mulf %60, %52 : vector<2x32xf32>
    %c0_38 = arith.constant 0 : index
    %c0_39 = arith.constant 0 : index
    %c0_40 = arith.constant 0 : index
    %62 = vector.load %arg5[%c0_38, %c0_39, %c0_40] : memref<4x2x128xf32, #tpu.memory_space<vmem>>, vector<1x2x128xf32>
    %63 = vector.shape_cast %62 : vector<1x2x128xf32> to vector<2x128xf32>
    %64 = arith.truncf %61 : vector<2x32xf32> to vector<2x32xbf16>
    %cst_41 = arith.constant dense<0.000000e+00> : vector<2x128xf32>
    %65 = tpu.matmul %64, %12, %cst_41 {dimension_numbers = #tpu.dot_dimension_numbers<[1], [0], [0], [1], [0, 0, 1, 1], [], []>} : vector<2x32xbf16>, vector<32x128xbf16>, vector<2x128xf32> -> vector<2x128xf32>
    %66 = arith.addf %63, %65 : vector<2x128xf32>
    %cst_42 = arith.constant dense<0.000000e+00> : vector<2x128xf32>
    %67 = tpu.matmul %23, %13, %cst_42 {dimension_numbers = #tpu.dot_dimension_numbers<[1], [0], [0], [1], [0, 0, 1, 1], [], []>} : vector<2x32xbf16>, vector<32x128xbf16>, vector<2x128xf32> -> vector<2x128xf32>
    %68 = arith.addf %66, %67 : vector<2x128xf32>
    %69 = vector.broadcast %14 : vector<1x128xf32> to vector<2x128xf32>
    %70 = arith.addf %68, %69 : vector<2x128xf32>
    %71 = vector.extract_strided_slice %70 {offsets = [0, 0], sizes = [2, 32], strides = [1, 1]} : vector<2x128xf32> to vector<2x32xf32>
    %72 = arith.negf %71 : vector<2x32xf32>
    %73 = math.exp %72 : vector<2x32xf32>
    %cst_43 = arith.constant 1.000000e+00 : f32
    %74 = vector.broadcast %cst_43 : f32 to vector<2x32xf32>
    %75 = arith.addf %74, %73 : vector<2x32xf32>
    %76 = arith.divf %74, %75 : vector<2x32xf32>
    %77 = vector.extract_strided_slice %70 {offsets = [0, 32], sizes = [2, 32], strides = [1, 1]} : vector<2x128xf32> to vector<2x32xf32>
    %78 = arith.negf %77 : vector<2x32xf32>
    %79 = math.exp %78 : vector<2x32xf32>
    %cst_44 = arith.constant 1.000000e+00 : f32
    %80 = vector.broadcast %cst_44 : f32 to vector<2x32xf32>
    %81 = arith.addf %80, %79 : vector<2x32xf32>
    %82 = arith.divf %80, %81 : vector<2x32xf32>
    %83 = vector.extract_strided_slice %70 {offsets = [0, 64], sizes = [2, 32], strides = [1, 1]} : vector<2x128xf32> to vector<2x32xf32>
    %84 = math.tanh %83 : vector<2x32xf32>
    %85 = vector.extract_strided_slice %70 {offsets = [0, 96], sizes = [2, 32], strides = [1, 1]} : vector<2x128xf32> to vector<2x32xf32>
    %86 = arith.negf %85 : vector<2x32xf32>
    %87 = math.exp %86 : vector<2x32xf32>
    %cst_45 = arith.constant 1.000000e+00 : f32
    %88 = vector.broadcast %cst_45 : f32 to vector<2x32xf32>
    %89 = arith.addf %88, %87 : vector<2x32xf32>
    %90 = arith.divf %88, %89 : vector<2x32xf32>
    %91 = arith.mulf %82, %22 : vector<2x32xf32>
    %92 = arith.mulf %76, %84 : vector<2x32xf32>
    %93 = arith.addf %91, %92 : vector<2x32xf32>
    %94 = math.tanh %93 : vector<2x32xf32>
    %95 = arith.mulf %90, %94 : vector<2x32xf32>
    %96 = vector.broadcast %20 : vector<2x1xf32> to vector<2x32xf32>
    %97 = arith.mulf %96, %95 : vector<2x32xf32>
    %cst_46 = arith.constant 1.000000e+00 : f32
    %98 = vector.broadcast %cst_46 : f32 to vector<2x1xf32>
    %99 = arith.subf %98, %20 : vector<2x1xf32>
    %100 = vector.broadcast %99 : vector<2x1xf32> to vector<2x32xf32>
    %101 = arith.mulf %100, %21 : vector<2x32xf32>
    %102 = arith.addf %97, %101 : vector<2x32xf32>
    %103 = vector.broadcast %20 : vector<2x1xf32> to vector<2x32xf32>
    %104 = arith.mulf %103, %93 : vector<2x32xf32>
    %cst_47 = arith.constant 1.000000e+00 : f32
    %105 = vector.broadcast %cst_47 : f32 to vector<2x1xf32>
    %106 = arith.subf %105, %20 : vector<2x1xf32>
    %107 = vector.broadcast %106 : vector<2x1xf32> to vector<2x32xf32>
    %108 = arith.mulf %107, %22 : vector<2x32xf32>
    %109 = arith.addf %104, %108 : vector<2x32xf32>
    %c0_48 = arith.constant 0 : index
    %c0_49 = arith.constant 0 : index
    %110 = vector.load %arg19[%c0_48, %c0_49] : memref<2x32xf32, #tpu.memory_space<vmem>>, vector<2x32xf32>
    tpu.vector_store %arg19[%c0_48, %c0_49], %102 {strides = array<i32>} : memref<2x32xf32, #tpu.memory_space<vmem>>, vector<2x32xf32>,
    %c0_50 = arith.constant 0 : index
    %c0_51 = arith.constant 0 : index
    %111 = vector.load %arg20[%c0_50, %c0_51] : memref<2x32xf32, #tpu.memory_space<vmem>>, vector<2x32xf32>
    tpu.vector_store %arg20[%c0_50, %c0_51], %109 {strides = array<i32>} : memref<2x32xf32, #tpu.memory_space<vmem>>, vector<2x32xf32>,
    %c0_52 = arith.constant 0 : index
    %c0_53 = arith.constant 0 : index
    %c0_54 = arith.constant 0 : index
    %112 = vector.load %arg17[%c0_52, %c0_53, %c0_54] : memref<4x2x16xf32, #tpu.memory_space<vmem>>, vector<1x2x16xf32>
    %113 = vector.shape_cast %112 : vector<1x2x16xf32> to vector<2x16xf32>
    %114 = vector.shape_cast %47 : vector<2x16xf32> to vector<1x2x16xf32>
    tpu.vector_store %arg17[%c0_52, %c0_53, %c0_54], %114 {strides = array<i32>} : memref<4x2x16xf32, #tpu.memory_space<vmem>>, vector<1x2x16xf32>,
    %c0_55 = arith.constant 0 : index
    %c0_56 = arith.constant 0 : index
    %c0_57 = arith.constant 0 : index
    %115 = vector.load %arg18[%c0_55, %c0_56, %c0_57] : memref<4x2x32xf32, #tpu.memory_space<vmem>>, vector<1x2x32xf32>
    %116 = vector.shape_cast %115 : vector<1x2x32xf32> to vector<2x32xf32>
    %117 = vector.shape_cast %102 : vector<2x32xf32> to vector<1x2x32xf32>
    tpu.vector_store %arg18[%c0_55, %c0_56, %c0_57], %117 {strides = array<i32>} : memref<4x2x32xf32, #tpu.memory_space<vmem>>, vector<1x2x32xf32>,
    %c4_i32_58 = arith.constant 4 : i32
    %118 = arith.muli %arg1, %c4_i32_58 : i32
    %c1_i32 = arith.constant 1 : i32
    %119 = arith.addi %118, %c1_i32 : i32
    %120 = vector.broadcast %119 : i32 to vector<2x1xi32>
    %121 = arith.cmpi sgt, %5, %120 : vector<2x1xi32>
    %122 = arith.extui %121 : vector<2x1xi1> to vector<2x1xi32>
    %123 = arith.sitofp %122 : vector<2x1xi32> to vector<2x1xf32>
    %c0_59 = arith.constant 0 : index
    %c0_60 = arith.constant 0 : index
    %124 = vector.load %arg19[%c0_59, %c0_60] : memref<2x32xf32, #tpu.memory_space<vmem>>, vector<2x32xf32>
    %c0_61 = arith.constant 0 : index
    %c0_62 = arith.constant 0 : index
    %125 = vector.load %arg20[%c0_61, %c0_62] : memref<2x32xf32, #tpu.memory_space<vmem>>, vector<2x32xf32>
    %126 = arith.truncf %124 : vector<2x32xf32> to vector<2x32xbf16>
    %cst_63 = arith.constant dense<0.000000e+00> : vector<2x32xf32>
    %127 = tpu.matmul %126, %6, %cst_63 {dimension_numbers = #tpu.dot_dimension_numbers<[1], [0], [0], [1], [0, 0, 1, 1], [], []>} : vector<2x32xbf16>, vector<32x32xbf16>, vector<2x32xf32> -> vector<2x32xf32>
    %128 = vector.broadcast %7 : vector<1x32xf32> to vector<2x32xf32>
    %129 = arith.addf %127, %128 : vector<2x32xf32>
    %130 = vector.shape_cast %129 : vector<2x32xf32> to vector<2x1x32xf32>
    %131 = vector.broadcast %130 : vector<2x1x32xf32> to vector<2x16x32xf32>
    %132 = arith.addf %3, %131 : vector<2x16x32xf32>
    %cst_64 = arith.constant 0.000000e+00 : f32
    %133 = vector.broadcast %cst_64 : f32 to vector<2x16x32xf32>
    %134 = arith.maximumf %132, %133 : vector<2x16x32xf32>
    %135 = vector.shape_cast %8 : vector<1x32xf32> to vector<1x1x32xf32>
    %136 = vector.broadcast %135 : vector<1x1x32xf32> to vector<2x16x32xf32>
    %137 = arith.mulf %134, %136 : vector<2x16x32xf32>
    %cst_65 = arith.constant dense<0.000000e+00> : vector<2x16xf32>
    %138 = vector.multi_reduction <add>, %137, %cst_65 [2] : vector<2x16x32xf32> to vector<2x16xf32>
    %139 = vector.broadcast %9 : vector<1x1xf32> to vector<2x16xf32>
    %140 = arith.addf %138, %139 : vector<2x16xf32>
    %cst_66 = arith.constant dense<0xFF800000> : vector<2xf32>
    %141 = vector.multi_reduction <maximumf>, %140, %cst_66 [1] : vector<2x16xf32> to vector<2xf32>
    %142 = vector.shape_cast %141 : vector<2xf32> to vector<2x1xf32>
    %143 = vector.broadcast %142 : vector<2x1xf32> to vector<2x16xf32>
    %144 = arith.subf %140, %143 : vector<2x16xf32>
    %145 = math.exp %144 : vector<2x16xf32>
    %cst_67 = arith.constant dense<0.000000e+00> : vector<2xf32>
    %146 = vector.multi_reduction <add>, %145, %cst_67 [1] : vector<2x16xf32> to vector<2xf32>
    %147 = vector.shape_cast %146 : vector<2xf32> to vector<2x1xf32>
    %148 = tpu.reciprocal %147 {approx = true} : vector<2x1xf32> -> vector<2x1xf32>
    %149 = vector.broadcast %148 : vector<2x1xf32> to vector<2x16xf32>
    %150 = arith.mulf %145, %149 : vector<2x16xf32>
    %151 = vector.shape_cast %150 : vector<2x16xf32> to vector<2x16x1xf32>
    %152 = arith.extf %4 : vector<2x16x32xbf16> to vector<2x16x32xf32>
    %153 = vector.broadcast %151 : vector<2x16x1xf32> to vector<2x16x32xf32>
    %154 = arith.mulf %153, %152 : vector<2x16x32xf32>
    %cst_68 = arith.constant dense<0.000000e+00> : vector<2x32xf32>
    %155 = vector.multi_reduction <add>, %154, %cst_68 [1] : vector<2x16x32xf32> to vector<2x32xf32>
    %cst_69 = arith.constant dense<0.000000e+00> : vector<2x32xf32>
    %156 = tpu.matmul %126, %10, %cst_69 {dimension_numbers = #tpu.dot_dimension_numbers<[1], [0], [0], [1], [0, 0, 1, 1], [], []>} : vector<2x32xbf16>, vector<32x32xbf16>, vector<2x32xf32> -> vector<2x32xf32>
    %157 = vector.broadcast %11 : vector<1x32xf32> to vector<2x32xf32>
    %158 = arith.addf %156, %157 : vector<2x32xf32>
    %159 = arith.negf %158 : vector<2x32xf32>
    %160 = math.exp %159 : vector<2x32xf32>
    %cst_70 = arith.constant 1.000000e+00 : f32
    %161 = vector.broadcast %cst_70 : f32 to vector<2x32xf32>
    %162 = arith.addf %161, %160 : vector<2x32xf32>
    %163 = arith.divf %161, %162 : vector<2x32xf32>
    %164 = arith.mulf %163, %155 : vector<2x32xf32>
    %c1 = arith.constant 1 : index
    %c0_71 = arith.constant 0 : index
    %c0_72 = arith.constant 0 : index
    %165 = vector.load %arg5[%c1, %c0_71, %c0_72] : memref<4x2x128xf32, #tpu.memory_space<vmem>>, vector<1x2x128xf32>
    %166 = vector.shape_cast %165 : vector<1x2x128xf32> to vector<2x128xf32>
    %167 = arith.truncf %164 : vector<2x32xf32> to vector<2x32xbf16>
    %cst_73 = arith.constant dense<0.000000e+00> : vector<2x128xf32>
    %168 = tpu.matmul %167, %12, %cst_73 {dimension_numbers = #tpu.dot_dimension_numbers<[1], [0], [0], [1], [0, 0, 1, 1], [], []>} : vector<2x32xbf16>, vector<32x128xbf16>, vector<2x128xf32> -> vector<2x128xf32>
    %169 = arith.addf %166, %168 : vector<2x128xf32>
    %cst_74 = arith.constant dense<0.000000e+00> : vector<2x128xf32>
    %170 = tpu.matmul %126, %13, %cst_74 {dimension_numbers = #tpu.dot_dimension_numbers<[1], [0], [0], [1], [0, 0, 1, 1], [], []>} : vector<2x32xbf16>, vector<32x128xbf16>, vector<2x128xf32> -> vector<2x128xf32>
    %171 = arith.addf %169, %170 : vector<2x128xf32>
    %172 = vector.broadcast %14 : vector<1x128xf32> to vector<2x128xf32>
    %173 = arith.addf %171, %172 : vector<2x128xf32>
    %174 = vector.extract_strided_slice %173 {offsets = [0, 0], sizes = [2, 32], strides = [1, 1]} : vector<2x128xf32> to vector<2x32xf32>
    %175 = arith.negf %174 : vector<2x32xf32>
    %176 = math.exp %175 : vector<2x32xf32>
    %cst_75 = arith.constant 1.000000e+00 : f32
    %177 = vector.broadcast %cst_75 : f32 to vector<2x32xf32>
    %178 = arith.addf %177, %176 : vector<2x32xf32>
    %179 = arith.divf %177, %178 : vector<2x32xf32>
    %180 = vector.extract_strided_slice %173 {offsets = [0, 32], sizes = [2, 32], strides = [1, 1]} : vector<2x128xf32> to vector<2x32xf32>
    %181 = arith.negf %180 : vector<2x32xf32>
    %182 = math.exp %181 : vector<2x32xf32>
    %cst_76 = arith.constant 1.000000e+00 : f32
    %183 = vector.broadcast %cst_76 : f32 to vector<2x32xf32>
    %184 = arith.addf %183, %182 : vector<2x32xf32>
    %185 = arith.divf %183, %184 : vector<2x32xf32>
    %186 = vector.extract_strided_slice %173 {offsets = [0, 64], sizes = [2, 32], strides = [1, 1]} : vector<2x128xf32> to vector<2x32xf32>
    %187 = math.tanh %186 : vector<2x32xf32>
    %188 = vector.extract_strided_slice %173 {offsets = [0, 96], sizes = [2, 32], strides = [1, 1]} : vector<2x128xf32> to vector<2x32xf32>
    %189 = arith.negf %188 : vector<2x32xf32>
    %190 = math.exp %189 : vector<2x32xf32>
    %cst_77 = arith.constant 1.000000e+00 : f32
    %191 = vector.broadcast %cst_77 : f32 to vector<2x32xf32>
    %192 = arith.addf %191, %190 : vector<2x32xf32>
    %193 = arith.divf %191, %192 : vector<2x32xf32>
    %194 = arith.mulf %185, %125 : vector<2x32xf32>
    %195 = arith.mulf %179, %187 : vector<2x32xf32>
    %196 = arith.addf %194, %195 : vector<2x32xf32>
    %197 = math.tanh %196 : vector<2x32xf32>
    %198 = arith.mulf %193, %197 : vector<2x32xf32>
    %199 = vector.broadcast %123 : vector<2x1xf32> to vector<2x32xf32>
    %200 = arith.mulf %199, %198 : vector<2x32xf32>
    %cst_78 = arith.constant 1.000000e+00 : f32
    %201 = vector.broadcast %cst_78 : f32 to vector<2x1xf32>
    %202 = arith.subf %201, %123 : vector<2x1xf32>
    %203 = vector.broadcast %202 : vector<2x1xf32> to vector<2x32xf32>
    %204 = arith.mulf %203, %124 : vector<2x32xf32>
    %205 = arith.addf %200, %204 : vector<2x32xf32>
    %206 = vector.broadcast %123 : vector<2x1xf32> to vector<2x32xf32>
    %207 = arith.mulf %206, %196 : vector<2x32xf32>
    %cst_79 = arith.constant 1.000000e+00 : f32
    %208 = vector.broadcast %cst_79 : f32 to vector<2x1xf32>
    %209 = arith.subf %208, %123 : vector<2x1xf32>
    %210 = vector.broadcast %209 : vector<2x1xf32> to vector<2x32xf32>
    %211 = arith.mulf %210, %125 : vector<2x32xf32>
    %212 = arith.addf %207, %211 : vector<2x32xf32>
    %c0_80 = arith.constant 0 : index
    %c0_81 = arith.constant 0 : index
    %213 = vector.load %arg19[%c0_80, %c0_81] : memref<2x32xf32, #tpu.memory_space<vmem>>, vector<2x32xf32>
    tpu.vector_store %arg19[%c0_80, %c0_81], %205 {strides = array<i32>} : memref<2x32xf32, #tpu.memory_space<vmem>>, vector<2x32xf32>,
    %c0_82 = arith.constant 0 : index
    %c0_83 = arith.constant 0 : index
    %214 = vector.load %arg20[%c0_82, %c0_83] : memref<2x32xf32, #tpu.memory_space<vmem>>, vector<2x32xf32>
    tpu.vector_store %arg20[%c0_82, %c0_83], %212 {strides = array<i32>} : memref<2x32xf32, #tpu.memory_space<vmem>>, vector<2x32xf32>,
    %c1_84 = arith.constant 1 : index
    %c0_85 = arith.constant 0 : index
    %c0_86 = arith.constant 0 : index
    %215 = vector.load %arg17[%c1_84, %c0_85, %c0_86] : memref<4x2x16xf32, #tpu.memory_space<vmem>>, vector<1x2x16xf32>
    %216 = vector.shape_cast %215 : vector<1x2x16xf32> to vector<2x16xf32>
    %217 = vector.shape_cast %150 : vector<2x16xf32> to vector<1x2x16xf32>
    tpu.vector_store %arg17[%c1_84, %c0_85, %c0_86], %217 {strides = array<i32>} : memref<4x2x16xf32, #tpu.memory_space<vmem>>, vector<1x2x16xf32>,
    %c1_87 = arith.constant 1 : index
    %c0_88 = arith.constant 0 : index
    %c0_89 = arith.constant 0 : index
    %218 = vector.load %arg18[%c1_87, %c0_88, %c0_89] : memref<4x2x32xf32, #tpu.memory_space<vmem>>, vector<1x2x32xf32>
    %219 = vector.shape_cast %218 : vector<1x2x32xf32> to vector<2x32xf32>
    %220 = vector.shape_cast %205 : vector<2x32xf32> to vector<1x2x32xf32>
    tpu.vector_store %arg18[%c1_87, %c0_88, %c0_89], %220 {strides = array<i32>} : memref<4x2x32xf32, #tpu.memory_space<vmem>>, vector<1x2x32xf32>,
    %c4_i32_90 = arith.constant 4 : i32
    %221 = arith.muli %arg1, %c4_i32_90 : i32
    %c2_i32 = arith.constant 2 : i32
    %222 = arith.addi %221, %c2_i32 : i32
    %223 = vector.broadcast %222 : i32 to vector<2x1xi32>
    %224 = arith.cmpi sgt, %5, %223 : vector<2x1xi32>
    %225 = arith.extui %224 : vector<2x1xi1> to vector<2x1xi32>
    %226 = arith.sitofp %225 : vector<2x1xi32> to vector<2x1xf32>
    %c0_91 = arith.constant 0 : index
    %c0_92 = arith.constant 0 : index
    %227 = vector.load %arg19[%c0_91, %c0_92] : memref<2x32xf32, #tpu.memory_space<vmem>>, vector<2x32xf32>
    %c0_93 = arith.constant 0 : index
    %c0_94 = arith.constant 0 : index
    %228 = vector.load %arg20[%c0_93, %c0_94] : memref<2x32xf32, #tpu.memory_space<vmem>>, vector<2x32xf32>
    %229 = arith.truncf %227 : vector<2x32xf32> to vector<2x32xbf16>
    %cst_95 = arith.constant dense<0.000000e+00> : vector<2x32xf32>
    %230 = tpu.matmul %229, %6, %cst_95 {dimension_numbers = #tpu.dot_dimension_numbers<[1], [0], [0], [1], [0, 0, 1, 1], [], []>} : vector<2x32xbf16>, vector<32x32xbf16>, vector<2x32xf32> -> vector<2x32xf32>
    %231 = vector.broadcast %7 : vector<1x32xf32> to vector<2x32xf32>
    %232 = arith.addf %230, %231 : vector<2x32xf32>
    %233 = vector.shape_cast %232 : vector<2x32xf32> to vector<2x1x32xf32>
    %234 = vector.broadcast %233 : vector<2x1x32xf32> to vector<2x16x32xf32>
    %235 = arith.addf %3, %234 : vector<2x16x32xf32>
    %cst_96 = arith.constant 0.000000e+00 : f32
    %236 = vector.broadcast %cst_96 : f32 to vector<2x16x32xf32>
    %237 = arith.maximumf %235, %236 : vector<2x16x32xf32>
    %238 = vector.shape_cast %8 : vector<1x32xf32> to vector<1x1x32xf32>
    %239 = vector.broadcast %238 : vector<1x1x32xf32> to vector<2x16x32xf32>
    %240 = arith.mulf %237, %239 : vector<2x16x32xf32>
    %cst_97 = arith.constant dense<0.000000e+00> : vector<2x16xf32>
    %241 = vector.multi_reduction <add>, %240, %cst_97 [2] : vector<2x16x32xf32> to vector<2x16xf32>
    %242 = vector.broadcast %9 : vector<1x1xf32> to vector<2x16xf32>
    %243 = arith.addf %241, %242 : vector<2x16xf32>
    %cst_98 = arith.constant dense<0xFF800000> : vector<2xf32>
    %244 = vector.multi_reduction <maximumf>, %243, %cst_98 [1] : vector<2x16xf32> to vector<2xf32>
    %245 = vector.shape_cast %244 : vector<2xf32> to vector<2x1xf32>
    %246 = vector.broadcast %245 : vector<2x1xf32> to vector<2x16xf32>
    %247 = arith.subf %243, %246 : vector<2x16xf32>
    %248 = math.exp %247 : vector<2x16xf32>
    %cst_99 = arith.constant dense<0.000000e+00> : vector<2xf32>
    %249 = vector.multi_reduction <add>, %248, %cst_99 [1] : vector<2x16xf32> to vector<2xf32>
    %250 = vector.shape_cast %249 : vector<2xf32> to vector<2x1xf32>
    %251 = tpu.reciprocal %250 {approx = true} : vector<2x1xf32> -> vector<2x1xf32>
    %252 = vector.broadcast %251 : vector<2x1xf32> to vector<2x16xf32>
    %253 = arith.mulf %248, %252 : vector<2x16xf32>
    %254 = vector.shape_cast %253 : vector<2x16xf32> to vector<2x16x1xf32>
    %255 = arith.extf %4 : vector<2x16x32xbf16> to vector<2x16x32xf32>
    %256 = vector.broadcast %254 : vector<2x16x1xf32> to vector<2x16x32xf32>
    %257 = arith.mulf %256, %255 : vector<2x16x32xf32>
    %cst_100 = arith.constant dense<0.000000e+00> : vector<2x32xf32>
    %258 = vector.multi_reduction <add>, %257, %cst_100 [1] : vector<2x16x32xf32> to vector<2x32xf32>
    %cst_101 = arith.constant dense<0.000000e+00> : vector<2x32xf32>
    %259 = tpu.matmul %229, %10, %cst_101 {dimension_numbers = #tpu.dot_dimension_numbers<[1], [0], [0], [1], [0, 0, 1, 1], [], []>} : vector<2x32xbf16>, vector<32x32xbf16>, vector<2x32xf32> -> vector<2x32xf32>
    %260 = vector.broadcast %11 : vector<1x32xf32> to vector<2x32xf32>
    %261 = arith.addf %259, %260 : vector<2x32xf32>
    %262 = arith.negf %261 : vector<2x32xf32>
    %263 = math.exp %262 : vector<2x32xf32>
    %cst_102 = arith.constant 1.000000e+00 : f32
    %264 = vector.broadcast %cst_102 : f32 to vector<2x32xf32>
    %265 = arith.addf %264, %263 : vector<2x32xf32>
    %266 = arith.divf %264, %265 : vector<2x32xf32>
    %267 = arith.mulf %266, %258 : vector<2x32xf32>
    %c2 = arith.constant 2 : index
    %c0_103 = arith.constant 0 : index
    %c0_104 = arith.constant 0 : index
    %268 = vector.load %arg5[%c2, %c0_103, %c0_104] : memref<4x2x128xf32, #tpu.memory_space<vmem>>, vector<1x2x128xf32>
    %269 = vector.shape_cast %268 : vector<1x2x128xf32> to vector<2x128xf32>
    %270 = arith.truncf %267 : vector<2x32xf32> to vector<2x32xbf16>
    %cst_105 = arith.constant dense<0.000000e+00> : vector<2x128xf32>
    %271 = tpu.matmul %270, %12, %cst_105 {dimension_numbers = #tpu.dot_dimension_numbers<[1], [0], [0], [1], [0, 0, 1, 1], [], []>} : vector<2x32xbf16>, vector<32x128xbf16>, vector<2x128xf32> -> vector<2x128xf32>
    %272 = arith.addf %269, %271 : vector<2x128xf32>
    %cst_106 = arith.constant dense<0.000000e+00> : vector<2x128xf32>
    %273 = tpu.matmul %229, %13, %cst_106 {dimension_numbers = #tpu.dot_dimension_numbers<[1], [0], [0], [1], [0, 0, 1, 1], [], []>} : vector<2x32xbf16>, vector<32x128xbf16>, vector<2x128xf32> -> vector<2x128xf32>
    %274 = arith.addf %272, %273 : vector<2x128xf32>
    %275 = vector.broadcast %14 : vector<1x128xf32> to vector<2x128xf32>
    %276 = arith.addf %274, %275 : vector<2x128xf32>
    %277 = vector.extract_strided_slice %276 {offsets = [0, 0], sizes = [2, 32], strides = [1, 1]} : vector<2x128xf32> to vector<2x32xf32>
    %278 = arith.negf %277 : vector<2x32xf32>
    %279 = math.exp %278 : vector<2x32xf32>
    %cst_107 = arith.constant 1.000000e+00 : f32
    %280 = vector.broadcast %cst_107 : f32 to vector<2x32xf32>
    %281 = arith.addf %280, %279 : vector<2x32xf32>
    %282 = arith.divf %280, %281 : vector<2x32xf32>
    %283 = vector.extract_strided_slice %276 {offsets = [0, 32], sizes = [2, 32], strides = [1, 1]} : vector<2x128xf32> to vector<2x32xf32>
    %284 = arith.negf %283 : vector<2x32xf32>
    %285 = math.exp %284 : vector<2x32xf32>
    %cst_108 = arith.constant 1.000000e+00 : f32
    %286 = vector.broadcast %cst_108 : f32 to vector<2x32xf32>
    %287 = arith.addf %286, %285 : vector<2x32xf32>
    %288 = arith.divf %286, %287 : vector<2x32xf32>
    %289 = vector.extract_strided_slice %276 {offsets = [0, 64], sizes = [2, 32], strides = [1, 1]} : vector<2x128xf32> to vector<2x32xf32>
    %290 = math.tanh %289 : vector<2x32xf32>
    %291 = vector.extract_strided_slice %276 {offsets = [0, 96], sizes = [2, 32], strides = [1, 1]} : vector<2x128xf32> to vector<2x32xf32>
    %292 = arith.negf %291 : vector<2x32xf32>
    %293 = math.exp %292 : vector<2x32xf32>
    %cst_109 = arith.constant 1.000000e+00 : f32
    %294 = vector.broadcast %cst_109 : f32 to vector<2x32xf32>
    %295 = arith.addf %294, %293 : vector<2x32xf32>
    %296 = arith.divf %294, %295 : vector<2x32xf32>
    %297 = arith.mulf %288, %228 : vector<2x32xf32>
    %298 = arith.mulf %282, %290 : vector<2x32xf32>
    %299 = arith.addf %297, %298 : vector<2x32xf32>
    %300 = math.tanh %299 : vector<2x32xf32>
    %301 = arith.mulf %296, %300 : vector<2x32xf32>
    %302 = vector.broadcast %226 : vector<2x1xf32> to vector<2x32xf32>
    %303 = arith.mulf %302, %301 : vector<2x32xf32>
    %cst_110 = arith.constant 1.000000e+00 : f32
    %304 = vector.broadcast %cst_110 : f32 to vector<2x1xf32>
    %305 = arith.subf %304, %226 : vector<2x1xf32>
    %306 = vector.broadcast %305 : vector<2x1xf32> to vector<2x32xf32>
    %307 = arith.mulf %306, %227 : vector<2x32xf32>
    %308 = arith.addf %303, %307 : vector<2x32xf32>
    %309 = vector.broadcast %226 : vector<2x1xf32> to vector<2x32xf32>
    %310 = arith.mulf %309, %299 : vector<2x32xf32>
    %cst_111 = arith.constant 1.000000e+00 : f32
    %311 = vector.broadcast %cst_111 : f32 to vector<2x1xf32>
    %312 = arith.subf %311, %226 : vector<2x1xf32>
    %313 = vector.broadcast %312 : vector<2x1xf32> to vector<2x32xf32>
    %314 = arith.mulf %313, %228 : vector<2x32xf32>
    %315 = arith.addf %310, %314 : vector<2x32xf32>
    %c0_112 = arith.constant 0 : index
    %c0_113 = arith.constant 0 : index
    %316 = vector.load %arg19[%c0_112, %c0_113] : memref<2x32xf32, #tpu.memory_space<vmem>>, vector<2x32xf32>
    tpu.vector_store %arg19[%c0_112, %c0_113], %308 {strides = array<i32>} : memref<2x32xf32, #tpu.memory_space<vmem>>, vector<2x32xf32>,
    %c0_114 = arith.constant 0 : index
    %c0_115 = arith.constant 0 : index
    %317 = vector.load %arg20[%c0_114, %c0_115] : memref<2x32xf32, #tpu.memory_space<vmem>>, vector<2x32xf32>
    tpu.vector_store %arg20[%c0_114, %c0_115], %315 {strides = array<i32>} : memref<2x32xf32, #tpu.memory_space<vmem>>, vector<2x32xf32>,
    %c2_116 = arith.constant 2 : index
    %c0_117 = arith.constant 0 : index
    %c0_118 = arith.constant 0 : index
    %318 = vector.load %arg17[%c2_116, %c0_117, %c0_118] : memref<4x2x16xf32, #tpu.memory_space<vmem>>, vector<1x2x16xf32>
    %319 = vector.shape_cast %318 : vector<1x2x16xf32> to vector<2x16xf32>
    %320 = vector.shape_cast %253 : vector<2x16xf32> to vector<1x2x16xf32>
    tpu.vector_store %arg17[%c2_116, %c0_117, %c0_118], %320 {strides = array<i32>} : memref<4x2x16xf32, #tpu.memory_space<vmem>>, vector<1x2x16xf32>,
    %c2_119 = arith.constant 2 : index
    %c0_120 = arith.constant 0 : index
    %c0_121 = arith.constant 0 : index
    %321 = vector.load %arg18[%c2_119, %c0_120, %c0_121] : memref<4x2x32xf32, #tpu.memory_space<vmem>>, vector<1x2x32xf32>
    %322 = vector.shape_cast %321 : vector<1x2x32xf32> to vector<2x32xf32>
    %323 = vector.shape_cast %308 : vector<2x32xf32> to vector<1x2x32xf32>
    tpu.vector_store %arg18[%c2_119, %c0_120, %c0_121], %323 {strides = array<i32>} : memref<4x2x32xf32, #tpu.memory_space<vmem>>, vector<1x2x32xf32>,
    %c4_i32_122 = arith.constant 4 : i32
    %324 = arith.muli %arg1, %c4_i32_122 : i32
    %c3_i32 = arith.constant 3 : i32
    %325 = arith.addi %324, %c3_i32 : i32
    %326 = vector.broadcast %325 : i32 to vector<2x1xi32>
    %327 = arith.cmpi sgt, %5, %326 : vector<2x1xi32>
    %328 = arith.extui %327 : vector<2x1xi1> to vector<2x1xi32>
    %329 = arith.sitofp %328 : vector<2x1xi32> to vector<2x1xf32>
    %c0_123 = arith.constant 0 : index
    %c0_124 = arith.constant 0 : index
    %330 = vector.load %arg19[%c0_123, %c0_124] : memref<2x32xf32, #tpu.memory_space<vmem>>, vector<2x32xf32>
    %c0_125 = arith.constant 0 : index
    %c0_126 = arith.constant 0 : index
    %331 = vector.load %arg20[%c0_125, %c0_126] : memref<2x32xf32, #tpu.memory_space<vmem>>, vector<2x32xf32>
    %332 = arith.truncf %330 : vector<2x32xf32> to vector<2x32xbf16>
    %cst_127 = arith.constant dense<0.000000e+00> : vector<2x32xf32>
    %333 = tpu.matmul %332, %6, %cst_127 {dimension_numbers = #tpu.dot_dimension_numbers<[1], [0], [0], [1], [0, 0, 1, 1], [], []>} : vector<2x32xbf16>, vector<32x32xbf16>, vector<2x32xf32> -> vector<2x32xf32>
    %334 = vector.broadcast %7 : vector<1x32xf32> to vector<2x32xf32>
    %335 = arith.addf %333, %334 : vector<2x32xf32>
    %336 = vector.shape_cast %335 : vector<2x32xf32> to vector<2x1x32xf32>
    %337 = vector.broadcast %336 : vector<2x1x32xf32> to vector<2x16x32xf32>
    %338 = arith.addf %3, %337 : vector<2x16x32xf32>
    %cst_128 = arith.constant 0.000000e+00 : f32
    %339 = vector.broadcast %cst_128 : f32 to vector<2x16x32xf32>
    %340 = arith.maximumf %338, %339 : vector<2x16x32xf32>
    %341 = vector.shape_cast %8 : vector<1x32xf32> to vector<1x1x32xf32>
    %342 = vector.broadcast %341 : vector<1x1x32xf32> to vector<2x16x32xf32>
    %343 = arith.mulf %340, %342 : vector<2x16x32xf32>
    %cst_129 = arith.constant dense<0.000000e+00> : vector<2x16xf32>
    %344 = vector.multi_reduction <add>, %343, %cst_129 [2] : vector<2x16x32xf32> to vector<2x16xf32>
    %345 = vector.broadcast %9 : vector<1x1xf32> to vector<2x16xf32>
    %346 = arith.addf %344, %345 : vector<2x16xf32>
    %cst_130 = arith.constant dense<0xFF800000> : vector<2xf32>
    %347 = vector.multi_reduction <maximumf>, %346, %cst_130 [1] : vector<2x16xf32> to vector<2xf32>
    %348 = vector.shape_cast %347 : vector<2xf32> to vector<2x1xf32>
    %349 = vector.broadcast %348 : vector<2x1xf32> to vector<2x16xf32>
    %350 = arith.subf %346, %349 : vector<2x16xf32>
    %351 = math.exp %350 : vector<2x16xf32>
    %cst_131 = arith.constant dense<0.000000e+00> : vector<2xf32>
    %352 = vector.multi_reduction <add>, %351, %cst_131 [1] : vector<2x16xf32> to vector<2xf32>
    %353 = vector.shape_cast %352 : vector<2xf32> to vector<2x1xf32>
    %354 = tpu.reciprocal %353 {approx = true} : vector<2x1xf32> -> vector<2x1xf32>
    %355 = vector.broadcast %354 : vector<2x1xf32> to vector<2x16xf32>
    %356 = arith.mulf %351, %355 : vector<2x16xf32>
    %357 = vector.shape_cast %356 : vector<2x16xf32> to vector<2x16x1xf32>
    %358 = arith.extf %4 : vector<2x16x32xbf16> to vector<2x16x32xf32>
    %359 = vector.broadcast %357 : vector<2x16x1xf32> to vector<2x16x32xf32>
    %360 = arith.mulf %359, %358 : vector<2x16x32xf32>
    %cst_132 = arith.constant dense<0.000000e+00> : vector<2x32xf32>
    %361 = vector.multi_reduction <add>, %360, %cst_132 [1] : vector<2x16x32xf32> to vector<2x32xf32>
    %cst_133 = arith.constant dense<0.000000e+00> : vector<2x32xf32>
    %362 = tpu.matmul %332, %10, %cst_133 {dimension_numbers = #tpu.dot_dimension_numbers<[1], [0], [0], [1], [0, 0, 1, 1], [], []>} : vector<2x32xbf16>, vector<32x32xbf16>, vector<2x32xf32> -> vector<2x32xf32>
    %363 = vector.broadcast %11 : vector<1x32xf32> to vector<2x32xf32>
    %364 = arith.addf %362, %363 : vector<2x32xf32>
    %365 = arith.negf %364 : vector<2x32xf32>
    %366 = math.exp %365 : vector<2x32xf32>
    %cst_134 = arith.constant 1.000000e+00 : f32
    %367 = vector.broadcast %cst_134 : f32 to vector<2x32xf32>
    %368 = arith.addf %367, %366 : vector<2x32xf32>
    %369 = arith.divf %367, %368 : vector<2x32xf32>
    %370 = arith.mulf %369, %361 : vector<2x32xf32>
    %c3 = arith.constant 3 : index
    %c0_135 = arith.constant 0 : index
    %c0_136 = arith.constant 0 : index
    %371 = vector.load %arg5[%c3, %c0_135, %c0_136] : memref<4x2x128xf32, #tpu.memory_space<vmem>>, vector<1x2x128xf32>
    %372 = vector.shape_cast %371 : vector<1x2x128xf32> to vector<2x128xf32>
    %373 = arith.truncf %370 : vector<2x32xf32> to vector<2x32xbf16>
    %cst_137 = arith.constant dense<0.000000e+00> : vector<2x128xf32>
    %374 = tpu.matmul %373, %12, %cst_137 {dimension_numbers = #tpu.dot_dimension_numbers<[1], [0], [0], [1], [0, 0, 1, 1], [], []>} : vector<2x32xbf16>, vector<32x128xbf16>, vector<2x128xf32> -> vector<2x128xf32>
    %375 = arith.addf %372, %374 : vector<2x128xf32>
    %cst_138 = arith.constant dense<0.000000e+00> : vector<2x128xf32>
    %376 = tpu.matmul %332, %13, %cst_138 {dimension_numbers = #tpu.dot_dimension_numbers<[1], [0], [0], [1], [0, 0, 1, 1], [], []>} : vector<2x32xbf16>, vector<32x128xbf16>, vector<2x128xf32> -> vector<2x128xf32>
    %377 = arith.addf %375, %376 : vector<2x128xf32>
    %378 = vector.broadcast %14 : vector<1x128xf32> to vector<2x128xf32>
    %379 = arith.addf %377, %378 : vector<2x128xf32>
    %380 = vector.extract_strided_slice %379 {offsets = [0, 0], sizes = [2, 32], strides = [1, 1]} : vector<2x128xf32> to vector<2x32xf32>
    %381 = arith.negf %380 : vector<2x32xf32>
    %382 = math.exp %381 : vector<2x32xf32>
    %cst_139 = arith.constant 1.000000e+00 : f32
    %383 = vector.broadcast %cst_139 : f32 to vector<2x32xf32>
    %384 = arith.addf %383, %382 : vector<2x32xf32>
    %385 = arith.divf %383, %384 : vector<2x32xf32>
    %386 = vector.extract_strided_slice %379 {offsets = [0, 32], sizes = [2, 32], strides = [1, 1]} : vector<2x128xf32> to vector<2x32xf32>
    %387 = arith.negf %386 : vector<2x32xf32>
    %388 = math.exp %387 : vector<2x32xf32>
    %cst_140 = arith.constant 1.000000e+00 : f32
    %389 = vector.broadcast %cst_140 : f32 to vector<2x32xf32>
    %390 = arith.addf %389, %388 : vector<2x32xf32>
    %391 = arith.divf %389, %390 : vector<2x32xf32>
    %392 = vector.extract_strided_slice %379 {offsets = [0, 64], sizes = [2, 32], strides = [1, 1]} : vector<2x128xf32> to vector<2x32xf32>
    %393 = math.tanh %392 : vector<2x32xf32>
    %394 = vector.extract_strided_slice %379 {offsets = [0, 96], sizes = [2, 32], strides = [1, 1]} : vector<2x128xf32> to vector<2x32xf32>
    %395 = arith.negf %394 : vector<2x32xf32>
    %396 = math.exp %395 : vector<2x32xf32>
    %cst_141 = arith.constant 1.000000e+00 : f32
    %397 = vector.broadcast %cst_141 : f32 to vector<2x32xf32>
    %398 = arith.addf %397, %396 : vector<2x32xf32>
    %399 = arith.divf %397, %398 : vector<2x32xf32>
    %400 = arith.mulf %391, %331 : vector<2x32xf32>
    %401 = arith.mulf %385, %393 : vector<2x32xf32>
    %402 = arith.addf %400, %401 : vector<2x32xf32>
    %403 = math.tanh %402 : vector<2x32xf32>
    %404 = arith.mulf %399, %403 : vector<2x32xf32>
    %405 = vector.broadcast %329 : vector<2x1xf32> to vector<2x32xf32>
    %406 = arith.mulf %405, %404 : vector<2x32xf32>
    %cst_142 = arith.constant 1.000000e+00 : f32
    %407 = vector.broadcast %cst_142 : f32 to vector<2x1xf32>
    %408 = arith.subf %407, %329 : vector<2x1xf32>
    %409 = vector.broadcast %408 : vector<2x1xf32> to vector<2x32xf32>
    %410 = arith.mulf %409, %330 : vector<2x32xf32>
    %411 = arith.addf %406, %410 : vector<2x32xf32>
    %412 = vector.broadcast %329 : vector<2x1xf32> to vector<2x32xf32>
    %413 = arith.mulf %412, %402 : vector<2x32xf32>
    %cst_143 = arith.constant 1.000000e+00 : f32
    %414 = vector.broadcast %cst_143 : f32 to vector<2x1xf32>
    %415 = arith.subf %414, %329 : vector<2x1xf32>
    %416 = vector.broadcast %415 : vector<2x1xf32> to vector<2x32xf32>
    %417 = arith.mulf %416, %331 : vector<2x32xf32>
    %418 = arith.addf %413, %417 : vector<2x32xf32>
    %c0_144 = arith.constant 0 : index
    %c0_145 = arith.constant 0 : index
    %419 = vector.load %arg19[%c0_144, %c0_145] : memref<2x32xf32, #tpu.memory_space<vmem>>, vector<2x32xf32>
    tpu.vector_store %arg19[%c0_144, %c0_145], %411 {strides = array<i32>} : memref<2x32xf32, #tpu.memory_space<vmem>>, vector<2x32xf32>,
    %c0_146 = arith.constant 0 : index
    %c0_147 = arith.constant 0 : index
    %420 = vector.load %arg20[%c0_146, %c0_147] : memref<2x32xf32, #tpu.memory_space<vmem>>, vector<2x32xf32>
    tpu.vector_store %arg20[%c0_146, %c0_147], %418 {strides = array<i32>} : memref<2x32xf32, #tpu.memory_space<vmem>>, vector<2x32xf32>,
    %c3_148 = arith.constant 3 : index
    %c0_149 = arith.constant 0 : index
    %c0_150 = arith.constant 0 : index
    %421 = vector.load %arg17[%c3_148, %c0_149, %c0_150] : memref<4x2x16xf32, #tpu.memory_space<vmem>>, vector<1x2x16xf32>
    %422 = vector.shape_cast %421 : vector<1x2x16xf32> to vector<2x16xf32>
    %423 = vector.shape_cast %356 : vector<2x16xf32> to vector<1x2x16xf32>
    tpu.vector_store %arg17[%c3_148, %c0_149, %c0_150], %423 {strides = array<i32>} : memref<4x2x16xf32, #tpu.memory_space<vmem>>, vector<1x2x16xf32>,
    %c3_151 = arith.constant 3 : index
    %c0_152 = arith.constant 0 : index
    %c0_153 = arith.constant 0 : index
    %424 = vector.load %arg18[%c3_151, %c0_152, %c0_153] : memref<4x2x32xf32, #tpu.memory_space<vmem>>, vector<1x2x32xf32>
    %425 = vector.shape_cast %424 : vector<1x2x32xf32> to vector<2x32xf32>
    %426 = vector.shape_cast %411 : vector<2x32xf32> to vector<1x2x32xf32>
    tpu.vector_store %arg18[%c3_151, %c0_152, %c0_153], %426 {strides = array<i32>} : memref<4x2x32xf32, #tpu.memory_space<vmem>>, vector<1x2x32xf32>,
    return
  }
  func.func @transform_0(%arg0: i32, %arg1: i32) -> (i32, i32) {
    %c0_i32 = arith.constant 0 : i32
    %c0_i32_0 = arith.constant 0 : i32
    return %arg0, %c0_i32 : i32, i32
  }
  func.func @transform_1(%arg0: i32, %arg1: i32) -> (i32, i32, i32) {
    %c0_i32 = arith.constant 0 : i32
    %c0_i32_0 = arith.constant 0 : i32
    %c0_i32_1 = arith.constant 0 : i32
    return %arg0, %c0_i32, %c0_i32_0 : i32, i32, i32
  }
  func.func @transform_2(%arg0: i32, %arg1: i32) -> (i32, i32, i32) {
    %c0_i32 = arith.constant 0 : i32
    %c0_i32_0 = arith.constant 0 : i32
    %c0_i32_1 = arith.constant 0 : i32
    return %arg0, %c0_i32, %c0_i32_0 : i32, i32, i32
  }
  func.func @transform_3(%arg0: i32, %arg1: i32) -> (i32, i32, i32) {
    %c0_i32 = arith.constant 0 : i32
    %c0_i32_0 = arith.constant 0 : i32
    return %arg1, %arg0, %c0_i32 : i32, i32, i32
  }
  func.func @transform_4(%arg0: i32, %arg1: i32) -> (i32, i32) {
    %c0_i32 = arith.constant 0 : i32
    %c0_i32_0 = arith.constant 0 : i32
    return %arg0, %c0_i32 : i32, i32
  }
  func.func @transform_5(%arg0: i32, %arg1: i32) -> (i32, i32) {
    %c0_i32 = arith.constant 0 : i32
    %c0_i32_0 = arith.constant 0 : i32
    return %arg0, %c0_i32 : i32, i32
  }
  func.func @transform_6(%arg0: i32, %arg1: i32) -> (i32, i32) {
    %c0_i32 = arith.constant 0 : i32
    %c0_i32_0 = arith.constant 0 : i32
    %c0_i32_1 = arith.constant 0 : i32
    return %c0_i32, %c0_i32_0 : i32, i32
  }
  func.func @transform_7(%arg0: i32, %arg1: i32) -> (i32, i32) {
    %c0_i32 = arith.constant 0 : i32
    %c0_i32_0 = arith.constant 0 : i32
    %c0_i32_1 = arith.constant 0 : i32
    return %c0_i32, %c0_i32_0 : i32, i32
  }
  func.func @transform_8(%arg0: i32, %arg1: i32) -> (i32, i32) {
    %c0_i32 = arith.constant 0 : i32
    %c0_i32_0 = arith.constant 0 : i32
    %c0_i32_1 = arith.constant 0 : i32
    return %c0_i32, %c0_i32_0 : i32, i32
  }
  func.func @transform_9(%arg0: i32, %arg1: i32) -> (i32, i32) {
    %c0_i32 = arith.constant 0 : i32
    %c0_i32_0 = arith.constant 0 : i32
    %c0_i32_1 = arith.constant 0 : i32
    return %c0_i32, %c0_i32_0 : i32, i32
  }
  func.func @transform_10(%arg0: i32, %arg1: i32) -> (i32, i32) {
    %c0_i32 = arith.constant 0 : i32
    %c0_i32_0 = arith.constant 0 : i32
    %c0_i32_1 = arith.constant 0 : i32
    return %c0_i32, %c0_i32_0 : i32, i32
  }
  func.func @transform_11(%arg0: i32, %arg1: i32) -> (i32, i32) {
    %c0_i32 = arith.constant 0 : i32
    %c0_i32_0 = arith.constant 0 : i32
    %c0_i32_1 = arith.constant 0 : i32
    return %c0_i32, %c0_i32_0 : i32, i32
  }
  func.func @transform_12(%arg0: i32, %arg1: i32) -> (i32, i32) {
    %c0_i32 = arith.constant 0 : i32
    %c0_i32_0 = arith.constant 0 : i32
    %c0_i32_1 = arith.constant 0 : i32
    return %c0_i32, %c0_i32_0 : i32, i32
  }
  func.func @transform_13(%arg0: i32, %arg1: i32) -> (i32, i32) {
    %c0_i32 = arith.constant 0 : i32
    %c0_i32_0 = arith.constant 0 : i32
    %c0_i32_1 = arith.constant 0 : i32
    return %c0_i32, %c0_i32_0 : i32, i32
  }
  func.func @transform_14(%arg0: i32, %arg1: i32) -> (i32, i32) {
    %c0_i32 = arith.constant 0 : i32
    %c0_i32_0 = arith.constant 0 : i32
    %c0_i32_1 = arith.constant 0 : i32
    return %c0_i32, %c0_i32_0 : i32, i32
  }
  func.func @transform_15(%arg0: i32, %arg1: i32) -> (i32, i32, i32) {
    %c0_i32 = arith.constant 0 : i32
    %c0_i32_0 = arith.constant 0 : i32
    return %arg1, %arg0, %c0_i32 : i32, i32, i32
  }
  func.func @transform_16(%arg0: i32, %arg1: i32) -> (i32, i32, i32) {
    %c0_i32 = arith.constant 0 : i32
    %c0_i32_0 = arith.constant 0 : i32
    return %arg1, %arg0, %c0_i32 : i32, i32, i32
  }
}

</mosaic_0001>

<bundles_post_ra>
// kernel: tpu_custom_call.1
= control target key start
LH: loop header
LB: loop body
LE: loop exit
PB: predicated region body
PF: predicated region fallthrough
CT: control target
= control target key end

     0   :  { %s4306_s0 = inlined_call_operand.vmem [shape: s32[2,1], index: 0, kind: input, shape index: {}]   ;;  %s4307_s1 = inlined_call_operand.hbm [shape: f32[2,16,32], index: 1, kind: input, shape index: {}]   ;;  %s4308_s2 = inlined_call_operand.hbm [shape: bf16[2,16,32], index: 2, kind: input, shape index: {}]   ;;  %s4309_s3 = inlined_call_operand.hbm [shape: f32[8,2,128], index: 3, kind: input, shape index: {}]   ;;  %s4310_s4 = inlined_call_operand.vmem [shape: f32[2,32], index: 4, kind: input, shape index: {}]   ;;  %s4311_s5 = inlined_call_operand.vmem [shape: f32[2,32], index: 5, kind: input, shape index: {}]   ;;  %s4312_s6 = inlined_call_operand.hbm [shape: bf16[32,32], index: 6, kind: input, shape index: {}]   ;;  %s4313_s7 = inlined_call_operand.vmem [shape: f32[1,32], index: 7, kind: input, shape index: {}]   ;;  %s4314_s8 = inlined_call_operand.vmem [shape: f32[1,32], index: 8, kind: input, shape index: {}]   ;;  %s4315_s9 = inlined_call_operand.<no memory space> [shape: f32[1,1], index: 9, kind: input, shape index: {}]   ;;  %s4316_s10 = inlined_call_operand.hbm [shape: bf16[32,32], index: 10, kind: input, shape index: {}]   ;;  %s4317_s11 = inlined_call_operand.vmem [shape: f32[1,32], index: 11, kind: input, shape index: {}]   ;;  %s4318_s12 = inlined_call_operand.hbm [shape: bf16[32,128], index: 12, kind: input, shape index: {}]   ;;  %s4319_s13 = inlined_call_operand.hbm [shape: bf16[32,128], index: 13, kind: input, shape index: {}]   ;;  %s4320_s14 = inlined_call_operand.vmem [shape: f32[1,128], index: 14, kind: input, shape index: {}]   ;;  %s4321_s15 = inlined_call_operand.hbm [shape: f32[8,2,16], index: 15, kind: output, shape index: {0}]   ;;  %s4322_s16 = inlined_call_operand.hbm [shape: f32[8,2,32], index: 16, kind: output, shape index: {1}]  }
   0x1   :  { %4334 = sst [smem:[#allocation28_spill]] %s4306_s0  ;;  %v22_v0 = vstv %s4315_s9 }
   0x2   :  { %4335 = sst [smem:[#allocation29_spill]] %s4307_s1  ;;  %23 = vst [vmem:[#allocation4] sm:$0x1] %v22_v0 }
   0x3   :  { %4336 = sst [smem:[#allocation30_spill]] %s4308_s2 }
   0x4   :  { %4337 = sst [smem:[#allocation31_spill]] %s4309_s3 }
   0x5   :  { %4338 = sst [smem:[#allocation32_spill]] %s4310_s4 }
   0x6   :  { %4339 = sst [smem:[#allocation33_spill]] %s4311_s5 }
   0x7   :  { %4340 = sst [smem:[#allocation34_spill]] %s4312_s6 }
   0x8   :  { %4341 = sst [smem:[#allocation35_spill]] %s4313_s7 }
   0x9   :  { %4342 = sst [smem:[#allocation36_spill]] %s4314_s8 }
   0xa   :  { %4343 = sst [smem:[#allocation37_spill]] %s4316_s10 }
   0xb   :  { %4344 = sst [smem:[#allocation38_spill]] %s4317_s11 }
   0xc   :  { %4345 = sst [smem:[#allocation39_spill]] %s4318_s12 }
   0xd   :  { %4346 = sst [smem:[#allocation40_spill]] %s4320_s14 }
   0xe   :  { %4347 = sst [smem:[#allocation41_spill]] %s4321_s15 }
   0xf   :  { %4348 = sst [smem:[#allocation42_spill]] %s4322_s16 }
  0x10   :  { %24 = vsyncpa [#allocation6], 0 }
  0x11   :  { %25 = vsyncpa [#allocation9], 0 }
  0x12   :  { %26 = vsyncpa [#allocation13], 0 }
  0x13   :  { %27 = vsyncpa [#allocation16], 0 }
  0x14   :  { %28 = vsyncpa [#allocation7], 0 }
  0x15   :  { %30 = vsyncpa [#allocation7 + $0x1], 0 }
  0x16   :  { %31 = vsyncpa [#allocation19], 0 }
  0x17   :  { %33 = vsyncpa [#allocation19 + $0x1], 0  ;;  %s3480_s23 = smov 0   ;;  %s3482_s24 = smov 0  }
  0x18   :  { %s3484_s25 = smov 0   ;;  %s3486_s26 = smov 0  }
  0x19   :  { %s3488_s27 = smov 0   ;;  %s3490_s9 = smov 0  }
  0x1a LB: > { %s3511_s28 = sadd.s32 4294967295, %s3372_s9   ;;  %p2633_p0 = scmp.ge.s32.totalorder %s3372_s9, 1  ;;  %s3372_s9 = sphi %s3490_s9, %s39_s9   ;;  %s3368_s27 = sphi %s3488_s27, %s4376_s27   ;;  %s3364_s26 = sphi %s3486_s26, %s4375_s26   ;;  %s3360_s25 = sphi %s3484_s25, %s4374_s25   ;;  %s3356_s24 = sphi %s3482_s24, %s4373_s24   ;;  %s3352_s23 = sphi %s3480_s23, %s4372_s23  }
  0x1b   : > { %p152_p1 = scmp.eq.s32.totalorder %s3511_s28, 0  ;;  %p459_p2 = scmp.lt.s32.totalorder %s3372_s9, 3 }
  0x1c   : > { %s4349_s1 = sld [smem:[#allocation29_spill]]  ;;  %s3374_s18 = smov [#allocation5]  }
  0x1d   : > { %p3519_p3 = pnand %p2633_p0, %p459_p2  ;;  %s483_s19 = sshll.u32 %s3374_s18, 4  ;;  %s484_s19 = int_to_ptr.vmem [resolvable:$true] %s483_s19 }
  0x1e   : > { %p2643_p6 = scmp.ge.s32.totalorder %s3372_s9, 2  ;;  %s4352_s2 = sld [smem:[#allocation30_spill]] }
  0x1f   : > { %p2811_p4 = pneg %p3519_p3  ;;  %s3375_s30 = smov 128  }
  0x20   : > { %s3377_s18 = smov [#allocation8]   ;;  %s3378_s15 = smov 64  }
  0x21   : > { %p3527_p5 = pnand %p2811_p4, %p152_p1  ;;  %s501_s16 = sshll.u32 %s3377_s18, 4  ;;  %s502_s16 = int_to_ptr.vmem [resolvable:$true] %s501_s16 }
  0x22   : > { %s481_s0 = sshll.u32 %s4349_s1, 4  ;;  %s3376_s1 = smov 8   ;;  %s482_s0 = int_to_ptr.hbm [resolvable:$true] %s481_s0 }
  0x23   : > { %2814 = dma.hbm_to_vmem [thread:$0]  (!%p3527_p5), %s482_s0, 512, %s484_s19, [#allocation6], %s3375_s30, %s3375_s30, %s3376_s1  }
  0x24   : > { %s499_s29 = sshll.u32 %s4352_s2, 4  ;;  %s3379_s14 = smov 4   ;;  %s500_s29 = int_to_ptr.hbm [resolvable:$true] %s499_s29 }
  0x25   : > { %2817 = dma.hbm_to_vmem [thread:$0]  (!%p3527_p5), %s500_s29, 256, %s502_s16, [#allocation9], %s3378_s15, %s3378_s15, %s3379_s14  }
  0x26   : > { %s4353_s10 = sld [smem:[#allocation37_spill]]  ;;  %s3380_s21 = smov [#allocation12]  }
  0x27   : > { %s552_s22 = sshll.u32 %s3380_s21, 4  ;;  %s4354_s6 = sld [smem:[#allocation34_spill]]  ;;  %s553_s22 = int_to_ptr.vmem [resolvable:$true] %s552_s22 }
  0x28   : > { %s3381_s0 = smov [#allocation11]   ;;  %s4355_s12 = sld [smem:[#allocation39_spill]] }
  0x29   : > { %s529_s16 = sshll.u32 %s3381_s0, 4  ;;  %s3382_s11 = smov [#allocation14]   ;;  %s530_s16 = int_to_ptr.vmem [resolvable:$true] %s529_s16 }
  0x2a   : > { %s569_s30 = sshll.u32 %s3382_s11, 4  ;;  %s3383_s18 = smov [#allocation15]   ;;  %s570_s30 = int_to_ptr.vmem [resolvable:$true] %s569_s30 }
  0x2b   : > { %s583_s21 = sshll.u32 %s3383_s18, 4  ;;  %s138_s0 = sadd.s32 1, %s3360_s25  ;;  %s584_s21 = int_to_ptr.vmem [resolvable:$true] %s583_s21 }
  0x2c   : > { %s550_s7 = sshll.u32 %s4353_s10, 4  ;;  %p145_p8 = scmp.ne.s32.totalorder %s3360_s25, %s3356_s24  ;;  %s551_s7 = int_to_ptr.hbm [resolvable:$true] %s550_s7 }
  0x2d   : > { %s527_s1 = sshll.u32 %s4354_s6, 4  ;;  %p146_p9 = scmp.eq.s32.totalorder %s3372_s9, 0  ;;  %s528_s1 = int_to_ptr.hbm [resolvable:$true] %s527_s1 }
  0x2e   : > { %2823 = dma.hbm_to_vmem [thread:$0]  (!%p3527_p5), %s551_s7, 256, %s553_s22, [#allocation13], %s3378_s15, %s3378_s15, %s3379_s14  }
  0x2f   : > { %s567_s8 = sshll.u32 %s4355_s12, 4  ;;  %s581_s7 = sshll.u32 %s4319_s13, 4  ;;  %s568_s8 = int_to_ptr.hbm [resolvable:$true] %s567_s8  ;;  %s582_s7 = int_to_ptr.hbm [resolvable:$true] %s581_s7 }
  0x30   : > { %2820 = dma.hbm_to_vmem [thread:$0]  (!%p3527_p5), %s528_s1, 256, %s530_s16, [#allocation9], %s3378_s15, %s3378_s15, %s3379_s14  }
  0x31   : > { %2826 = dma.hbm_to_vmem [thread:$0]  (!%p3527_p5), %s568_s8, 256, %s570_s30, [#allocation13], %s3378_s15, %s3378_s15, %s3379_s14  }
  0x32   : > { %2829 = dma.hbm_to_vmem [thread:$0]  (!%p3527_p5), %s582_s7, 256, %s584_s21, [#allocation16], %s3378_s15, %s3378_s15, %s3379_s14  }
  0x33   : > { %s2632_s22 = sadd.s32 4294967294, %s3372_s9   ;;  %s48_s1 = sadd.s32 1, %s3368_s27 }
  0x34   : > { %p49_p7 = scmp.ge.s32.totalorder %s48_s1, 2  ;;  %p3567_p10 = por %p146_p9, %p145_p8 }
  0x35   : > { %p151_p11 = scmp.ne.s32.totalorder %s3356_s24, %s3352_s23  ;;  %p418_p12 = scmp.eq.s32.totalorder %s3511_s28, 1 }
  0x36   : > { %s4378_s1 = smov (%p49_p7, %s48_s1), 0  ;;  %p424_p4 = scmp.eq.s32.totalorder %s2632_s22, 1 }
  0x37   : > { %s133_s14 = ssub.s32 %s3368_s27, %s4378_s1  ;;  %p3578_p0 = por %p152_p1, %p151_p11 }
  0x38   : > { %p136_p13 = scmp.eq.s32.totalorder %s133_s14, 0  ;;  %p3582_p2 = por %p418_p12, %p145_p8 }
  0x39   : > { %p3589_p5 = por %p424_p4, %p151_p11  ;;  %p2847_p7 = scmp.lt.s32.totalorder %s3372_s9, 2 }
  0x3a   : > { %s3587_s19 = scalar_select %p136_p13, %s3360_s25, %s138_s0  }
  0x3b   : > { %s600_s8 = sand.u32 1, %s3372_s9   ;;  %s602_s2 = sand.u32 1, %s3360_s25  }
  0x3c   : > { %s2644_s5 = sshll.u32 %s602_s2, 3  ;;  %s2768_s7 = sshll.u32 %s3368_s27, 3 }
  0x3d   : > { %s4360_s3 = sld [smem:[#allocation31_spill]]  ;;  %s604_s21 = scalar_lea.vmem [#allocation10], %s2644_s5 }
  0x3e   : > { %s613_s14 = sshll.u32 %s604_s21, 4  ;;  %p2831_p8 = pnand %p2847_p7, %p3567_p10  ;;  %s614_s14 = int_to_ptr.vmem [resolvable:$true] %s613_s14 }
  0x3f   : > { %s601_s22 = scalar_lea.sflag [#allocation6], %s600_s8  ;;  %s3384_s0 = smov 32  }
  0x40   : > { %s3385_s10 = smov 2  }
  0x41   : > { %625 = sbr.rel (%p3519_p3) target bundleno = 6243 (0x1863), region = 80 }
  0x43   : > { %s610_s18 = scalar_lea.hbm %s4360_s3, %s2768_s7 }
  0x44   : > { %s611_s6 = sshll.u32 %s610_s18, 4  ;;  %s612_s6 = int_to_ptr.hbm [resolvable:$true] %s611_s6 }
  0x45   : > { %2833 = dma.hbm_to_vmem [thread:$0]  (!%p2831_p8), %s612_s6, 128, %s614_s14, %s601_s22, %s3384_s0, %s3384_s0, %s3385_s10  }
  0x46   : > { %3319 = dma.done.wait (%p152_p1), [#allocation6], 512  }
  0x47   : > { %3321 = vsyncadd (%p152_p1), [#allocation6], 4294966784 }
  0x48   : > { %3323 = dma.done.wait (%p152_p1), [#allocation9], 256  }
  0x49   : > { %3325 = vsyncadd (%p152_p1), [#allocation9], 4294967040  ;;  %s637_s16 = sand.u32 1, %s3511_s28   ;;  %s3614_s6 = sand.u32 1, %s3356_s24  }
  0x4a   : > { %s2650_s10 = sshll.u32 %s3614_s6, 3  ;;  %s638_s17 = scalar_lea.sflag [#allocation6], %s637_s16 }
  0x4b   : > { %s3617_s8 = scalar_lea.vmem [#allocation10], %s2650_s10 }
  0x4c   : > { %3327 = dma.done.wait (%p3578_p0), %s638_s17, 128  }
  0x4d   : > { %3329 = vsyncadd (%p3578_p0), %s638_s17, 4294967168 }
  0x4e   : > { %3331 = dma.done.wait (%p152_p1), [#allocation9], 256  }
  0x4f   : > { %3333 = vsyncadd (%p152_p1), [#allocation9], 4294967040 }
  0x50   : > { %3335 = dma.done.wait (%p152_p1), [#allocation13], 512  }
  0x51   : > { %3337 = vsyncadd (%p152_p1), [#allocation13], 4294966784 }
  0x52   : > { %3339 = dma.done.wait (%p152_p1), [#allocation16], 256  }
  0x53   : > { %3341 = vsyncadd (%p152_p1), [#allocation16], 4294967040  ;;  %s3635_s15 = scalar_lea.vmem [#allocation17], %s2650_s10  ;;  %s3637_s2 = scalar_lea.vmem [#allocation18], %s2650_s10 }
  0x54   : > { %p2657_p3 = scmp.ne.s32.totalorder %s3364_s26, 0 }
  0x55   : > { %s4361_s4 = sld [smem:[#allocation32_spill]] (!%p2657_p3) }
  0x56   : > { %749 = sbr.rel (%p2657_p3) target bundleno = 94 (0x5e), region = 112  ;;  %s4362_s18 = sld [smem:[#allocation33_spill]] (!%p2657_p3) }
  0x5b   : > { %v750_v1 = vld [vmem:[%s4361_s4] sm:$0x3]  ;;  %vm751_vm0 = vcmask 254976  }
  0x5c   : > { %v753_v2 = vld [vmem:[%s4362_s18] sm:$0x3]  ;;  %752 = vst.msk [vmem:[#allocation2] sm:$0x3] %vm751_vm0, %v750_v1 }
  0x5d   : > { %754 = vst.msk [vmem:[#allocation3] sm:$0x3] %vm751_vm0, %v753_v2 }
  0x5e PF: > { %v3646_v3 = vld [vmem:[#allocation11 + $0x8] sm:$0xff]  ;;  %v3648_v4 = vld [vmem:[#allocation11] sm:$0xff]  ;;  %vm808_vm1 = vcmask 261120   ;;  %v2926_v7 = vld [vmem:[#allocation4] ss:$0 sm:$0xff]  ;;  %v3386_v8 = vmov 0   ;;  %v872_v38 = vlaneseq }
  0x5f   : > { %818 = vmatpush.bf16.msra.mxu0 %v3646_v3  ;;  %2921 = vset.pattern.permute.xlu2 %v3386_v8  ;;  %s4363_s14 = sld [smem:[#allocation35_spill]]  ;;  %v3668_v12 = vld [vmem:[#allocation5] sm:$0xff]  ;;  %v3670_v15 = vld [vmem:[#allocation5 + $0x8] sm:$0xff]  ;;  %v3672_v16 = vld [vmem:[#allocation5 + $0x10] sm:$0xff]  ;;  %vm877_vm2 = vcmask 130112   ;;  %vm882_vm3 = vcmask 1041409  }
  0x60   : > { %2923 = vset.pattern.permute.xlu1 %v3386_v8  ;;  %861 = vperm.xlu2 %2921, %v2926_v7   ;;  %s4364_s16 = sld [smem:[#allocation36_spill]]  ;;  %v3680_v20 = vld [vmem:[#allocation5 + $0x18] sm:$0xff]  ;;  %v3693_v40 = vand.u32 127, %v872_v38  ;;  %vm885_vm4 = vcmask 123904   ;;  %s3740_s10 = sshll.u32 %s3364_s26, 2  ;;  %vm970_vm6 = vcmask 130048  }
  0x61   : > { %2922 = vset.pattern.permute.xlu0 %v3386_v8  ;;  %s4365_s7 = sld [smem:[#allocation28_spill]]  ;;  %s4331_s11 = smov 32   ;;  %vm1210_vm15 = vcmask 254976  }
  0x62   : > { %v3698_v42 = vadd.s32 4294967288, %v3693_v40  ;;  %s3389_s30 = smov 96   ;;  %s4366_s21 = sld [smem:[#allocation38_spill]] }
  0x63   : > { %v3650_v5 = vld [vmem:[#allocation2] sm:$0x3]  ;;  %819 = vmatpush.bf16.msra.mxu0 %v3648_v4  ;;  %s4367_s17 = sld [smem:[#allocation40_spill]]  ;;  %s3390_s5 = smov 64  }
  0x64   : > { %v3655_v6 = vpack.c.bf16 %v3650_v5, %v3650_v5  ;;  %s1243_s18 = sadd.s32 1, %s3740_s10  ;;  %s1617_s0 = sadd.s32 2, %s3740_s10 }
  0x65   : > { %v3665_v9 = vld [vmem:[%s4363_s14] ss:$0 sm:$0xff]  ;;  %s2384_s28 = sshll.u32 %s3635_s15, 4  ;;  %s2385_s28 = int_to_ptr.vmem [resolvable:$true] %s2384_s28 }
  0x66   : > { %2668 = vmatmul.msk.bf16.vlgmr.msra.gmra.mxu0 %vm808_vm1, %v3655_v6  ;;  %v3678_v19 = vld [vmem:[%s4364_s16] ss:$0 sm:$0xff] }
  0x67   : > { %1260 = vmatpush.bf16.msrb.mxu0 %v3646_v3 }
  0x6b   : > { %1261 = vmatpush.bf16.msrb.mxu0 %v3648_v4 }
  0xba   : > { %v3695_v41 = vpop.permute.xlu2 %861 }
  0xe3   : > { %v821_v10 = vpop.f32.mrf.mxu0 }
  0xe4   : > { %v822_v11 = vadd.f32 %v3665_v9, %v821_v10 }
  0xe6   : > { %v826_v13 = vrot.slane %v822_v11, 1  ;;  %v827_v14 = vperm.slane %v822_v11, 0 }
  0xe8   : > { %v828_v17 = vperm.slane %v826_v13, 0  ;;  %v831_v18 = vadd.f32 %v827_v14, %v3668_v12  ;;  %v832_v21 = vadd.f32 %v827_v14, %v3670_v15 }
  0xea   : > { %v835_v22 = vmax.f32 %v831_v18, 0.0  ;;  %v833_v23 = vadd.f32 %v828_v17, %v3672_v16  ;;  %v834_v27 = vadd.f32 %v828_v17, %v3680_v20  ;;  %v836_v30 = vmax.f32 %v832_v21, 0.0 }
  0xeb   : > { %v823_v24 = vpop.f32.mrf.mxu0 }
  0xec   : > { %v842_v25 = vmul.f32 %v3678_v19, %v835_v22  ;;  %v837_v26 = vmax.f32 %v833_v23, 0.0  ;;  %v838_v32 = vmax.f32 %v834_v27, 0.0  ;;  %v843_v33 = vmul.f32 %v3678_v19, %v836_v30 }
  0xee   : > { %v846_v28 = vsel %vm808_vm1, %v842_v25, 0.0  ;;  %v844_v29 = vmul.f32 %v3678_v19, %v837_v26  ;;  %v845_v34 = vmul.f32 %v3678_v19, %v838_v32  ;;  %v849_v35 = vsel %vm808_vm1, %v843_v33, 0.0 }
  0xef   : > { %847 = vadd.xlane.f32.xlu0 %v846_v28 }
  0xf0   : > { %v852_v31 = vsel %vm808_vm1, %v844_v29, 0.0  ;;  %v855_v36 = vsel %vm808_vm1, %v845_v34, 0.0 }
  0xf1   : > { %853 = vadd.xlane.f32.xlu1 %v852_v31 }
  0xf7   : > { %850 = vadd.xlane.f32.xlu0 %v849_v35 }
  0xf9   : > { %856 = vadd.xlane.f32.xlu1 %v855_v36 }
 0x162   : > { %v848_v37 = vpop.xlane.xlu0 %847 }
 0x163   : > { %v864_v44 = vadd.f32 %v3695_v41, %v848_v37  ;;  %v3726_v37 = vld [vmem:[#allocation12 + $0x8] sm:$0xff] }
 0x164   : > { %v854_v39 = vpop.xlane.xlu1 %853  ;;  %1047 = vmatpush.bf16.msra.mxu3 %v3726_v37 }
 0x165   : > { %v866_v45 = vadd.f32 %v3695_v41, %v854_v39  ;;  %v874_v50 = vperm.slane %v864_v44, %v3693_v40 }
 0x167   : > { %v879_v51 = vperm.slane %v866_v45, %v3693_v40 }
 0x16a   : > { %v851_v43 = vpop.xlane.xlu0 %850 }
 0x16b   : > { %v865_v46 = vadd.f32 %v3695_v41, %v851_v43 }
 0x16c   : > { %v857_v47 = vpop.xlane.xlu1 %856 }
 0x16d   : > { %v876_v48 = vperm.slane %v865_v46, %v3698_v42  ;;  %v867_v49 = vadd.f32 %v3695_v41, %v857_v47 }
 0x16f   : > { %v880_v52 = vperm.slane %v867_v49, %v3698_v42  ;;  %v878_v53 = vsel %vm877_vm2, %v876_v48, %v874_v50 }
 0x171   : > { %v881_v54 = vsel %vm877_vm2, %v880_v52, %v879_v51 }
 0x172   : > { %v883_v55 = vsel %vm882_vm3, %v881_v54, %v878_v53  ;;  %v3748_v53 = vld [vmem:[%s4365_s7] sm:$0x3]  ;;  %v786_v54 = vstv %s3740_s10 }
 0x173   : > { %v886_v56 = vsel %vm885_vm4, %v883_v55, -inf  ;;  %vm787_vm5 = vcmp.gt.s32.totalorder %v3748_v53, %v786_v54 }
 0x174   : > { %887 = vmax.xlane.f32.xlu2 %v886_v56 }
 0x1e7   : > { %v888_v57 = vpop.xlane.xlu2 %887 }
 0x1e8   : > { %v890_v58 = vperm.slane %v888_v57, 0  ;;  %v891_v61 = vperm.slane %v888_v57, 1  ;;  %v3387_v57 = vmov 0.0  }
 0x1ea   : > { %v894_v59 = vsub.f32 %v864_v44, %v890_v58  ;;  %v895_v60 = vsub.f32 %v865_v46, %v890_v58  ;;  %v896_v0 = vsub.f32 %v866_v45, %v891_v61  ;;  %v897_v8 = vsub.f32 %v867_v49, %v891_v61  ;;  %v3737_v45 = vld [vmem:[#allocation12] sm:$0xff]  ;;  %v3759_v61 = vld [vmem:[#allocation8 + $0x8] sm:$0xff] }
 0x1eb   : > { %1048 = vmatpush.bf16.msra.mxu3 %v3737_v45  ;;  %v2659_v58 = vsel %vm787_vm5, 1.0, %v3387_v57  ;;  %1020 = vmatpush.bf16.msra.mxu2 %v3759_v61 }
 0x1ec   : > { %v898_v62 = vmul.f32 1.442695, %v894_v59  ;;  %v900_v63 = vmul.f32 1.442695, %v895_v60  ;;  %v902_v1 = vmul.f32 1.442695, %v896_v0 }
 0x1ed   : > { %v904_v10 = vmul.f32 1.442695, %v897_v8  ;;  %v3755_v59 = vld [vmem:[#allocation3] sm:$0x3]  ;;  %v1187_v60 = vsub.f32 1.0, %v2659_v58 }
 0x1ee   : > { %2929 = vpow2.f32 %v898_v62  ;;  %2691 = vmatmul.msk.bf16.vlgmr.msra.gmra.mxu3 %vm808_vm1, %v3655_v6  ;;  %v3762_v62 = vld [vmem:[#allocation8] sm:$0xff] }
 0x1ef   : > { %2931 = vpow2.f32 %v900_v63  ;;  %981 = vmatpush.bf16.msra.mxu1 %v3762_v62  ;;  %1401 = vmatpush.bf16.msrb.mxu3 %v3762_v62 }
 0x1f0   : > { %2933 = vpow2.f32 %v902_v1  ;;  %v3766_v1 = vld [vmem:[#allocation15 + $0x8] sm:$0xff] }
 0x1f1   : > { %2935 = vpow2.f32 %v904_v10  ;;  %1128 = vmatpush.bf16.msrb.mxu2 %v3766_v1 }
 0x1f3   : > { %1504 = vmatpush.bf16.msra.mxu3 %v3766_v1 }
 0x1f4   : > { %v2930_v2 = vpop.eup %2929 }
 0x1f5   : > { %v2932_v7 = vpop.eup %2931  ;;  %911 = vperm.xlu0 %2922, %v2930_v2  }
 0x1f6   : > { %914 = vperm.xlu1 %2923, %v2932_v7   ;;  %v2934_v11 = vpop.eup %2933 }
 0x1f7   : > { %v2936_v13 = vpop.eup %2935 }
 0x1fe   : > { %917 = vperm.xlu1 %2923, %v2934_v11  }
 0x206   : > { %920 = vperm.xlu1 %2923, %v2936_v13  }
 0x267   : > { %v912_v18 = vpop.permute.xlu0 %911 }
 0x268   : > { %v915_v14 = vpop.permute.xlu1 %914  ;;  %v922_v22 = vperm.slane %v912_v18, %v3693_v40 }
 0x269   : > { %v923_v21 = vperm.slane %v915_v14, %v3698_v42 }
 0x26b   : > { %v924_v26 = vsel %vm877_vm2, %v923_v21, %v922_v22 }
 0x270   : > { %v918_v17 = vpop.permute.xlu1 %917 }
 0x271   : > { %v925_v24 = vperm.slane %v918_v17, %v3693_v40 }
 0x278   : > { %v921_v23 = vpop.permute.xlu1 %920 }
 0x279   : > { %v926_v25 = vperm.slane %v921_v23, %v3698_v42 }
 0x27b   : > { %v927_v27 = vsel %vm877_vm2, %v926_v25, %v925_v24  ;;  %v1050_v25 = vpop.f32.mrf.mxu3 }
 0x27c   : > { %v928_v28 = vsel %vm882_vm3, %v927_v27, %v924_v26 }
 0x27d   : > { %v930_v29 = vsel %vm885_vm4, %v928_v28, 0.0 }
 0x27e   : > { %931 = vadd.xlane.f32.xlu2 %v930_v29  ;;  %v3801_v29 = vld [vmem:[%s4366_s21] ss:$0 sm:$0xff] }
 0x283   : > { %v1052_v28 = vpop.f32.mrf.mxu3 }
 0x2f1   : > { %v932_v30 = vpop.xlane.xlu2 %931 }
 0x2f2   : > { %2937 = vrcp.f32 %v932_v30  ;;  %v1051_v30 = vadd.f32 %v3801_v29, %v1050_v25 }
 0x2f8   : > { %v2938_v31 = vpop.eup %2937 }
 0x2f9   : > { %v935_v32 = vperm.slane %v2938_v31, 0  ;;  %v936_v33 = vperm.slane %v2938_v31, 1  ;;  %v2692_v31 = vmul.f32 -1.442695, %v1051_v30 }
 0x2fb   : > { %v3720_v34 = vmul.f32 %v2936_v13, %v936_v33  ;;  %v3722_v35 = vmul.f32 %v2934_v11, %v936_v33  ;;  %v3724_v36 = vmul.f32 %v2930_v2, %v935_v32  ;;  %v3734_v44 = vmul.f32 %v2932_v7, %v935_v32  ;;  %v3768_v2 = vld [vmem:[#allocation14 + $0x8] sm:$0xff]  ;;  %v3775_v11 = vld [vmem:[#allocation15] sm:$0xff]  ;;  %v3804_v32 = vld [vmem:[#allocation14] sm:$0xff] }
 0x2fc   : > { %1102 = vmatpush.bf16.msrb.mxu1 %v3768_v2  ;;  %1490 = vmatpush.bf16.msra.mxu0 %v3768_v2  ;;  %2939 = vpow2.f32 %v2692_v31 }
 0x2fd   : > { %v946_v38 = vpack.c.bf16 %v3720_v34, %v3720_v34  ;;  %v945_v39 = vpack.c.bf16 %v3722_v35, %v3722_v35  ;;  %v943_v43 = vpack.c.bf16 %v3724_v36, %v3724_v36  ;;  %v944_v52 = vpack.c.bf16 %v3734_v44, %v3734_v44  ;;  %1129 = vmatpush.bf16.msrb.mxu2 %v3775_v11 }
 0x2fe   : > { %1505 = vmatpush.bf16.msra.mxu3 %v3775_v11 }
 0x2ff   : > { %v990_v46 = vunpack.c.l.b16 %v946_v38  ;;  %v989_v47 = vunpack.c.l.b16 %v945_v39  ;;  %v949_v48 = vunpack.c.l.b16 %v943_v43  ;;  %v950_v55 = vunpack.c.l.b16 %v944_v52 }
 0x300   : > { %1103 = vmatpush.bf16.msrb.mxu1 %v3804_v32  ;;  %1491 = vmatpush.bf16.msra.mxu0 %v3804_v32 }
 0x301   : > { %v2677_v49 = vunpack.i.l.s16 %v990_v46  ;;  %v2676_v50 = vunpack.i.l.s16 %v989_v47  ;;  %v2669_v51 = vunpack.i.l.s16 %v949_v48  ;;  %v2670_v56 = vunpack.i.l.s16 %v950_v55 }
 0x303   : > { %998 = vperm.xlu1 %2923, %v2677_v49   ;;  %995 = vperm.xlu0 %2922, %v2676_v50  }
 0x304   : > { %955 = vperm.xlu2 %2921, %v2669_v51  }
 0x30b   : > { %958 = vperm.xlu0 %2922, %v2670_v56  }
 0x30c   : > { %1183 = vperm.xlu2 %2921, %v2659_v58  }
 0x313   : > { %1161 = vrot.lane.b32.xlu0 %v3755_v59, %s4331_s11 }
 0x31b   : > { %1190 = vperm.xlu0 %2922, %v1187_v60  }
 0x35e   : > { %v956_v14 = vpop.permute.xlu2 %955 }
 0x35f   : > { %v960_v18 = vperm.slane %v956_v14, %v3693_v40 }
 0x375   : > { %v999_v63 = vpop.permute.xlu1 %998  ;;  %v996_v0 = vpop.permute.xlu0 %995 }
 0x376   : > { %v1001_v7 = vperm.slane %v999_v63, %v3698_v42  ;;  %v1000_v8 = vperm.slane %v996_v0, %v3693_v40 }
 0x378   : > { %v1002_v10 = vsel %vm877_vm2, %v1001_v7, %v1000_v8 }
 0x379   : > { %v1003_v13 = vpack.c.b16 %v1002_v10, %v1002_v10  ;;  %v1079_v10 = vld [vmem:[%s3617_s8] sm:$0x3] }
 0x37b   : > { %2682 = vmatmul.msk.bf16.vlgmr.msra.gmra.mxu2 %vm970_vm6, %v1003_v13 }
 0x37c   : > { %1446 = vmatpush.bf16.msra.mxu2 %v3726_v37 }
 0x37d   : > { %v959_v17 = vpop.permute.xlu0 %958 }
 0x37e   : > { %v961_v21 = vperm.slane %v959_v17, %v3698_v42  ;;  %v3817_v17 = vld [vmem:[%s4367_s17] ss:$0 sm:$0xff] }
 0x380   : > { %v962_v22 = vsel %vm877_vm2, %v961_v21, %v960_v18  ;;  %1447 = vmatpush.bf16.msra.mxu2 %v3737_v45 }
 0x381   : > { %v963_v23 = vpack.c.b16 %v962_v22, %v962_v22 }
 0x383   : > { %2675 = vmatmul.msk.bf16.vlgmr.msra.gmra.mxu1 %vm970_vm6, %v963_v23 }
 0x384   : > { %1434 = vmatpush.bf16.msra.mxu1 %v3759_v61 }
 0x385   : > { %v3788_v24 = vpop.permute.xlu0 %1161 }
 0x38b   : > { %2710 = vmatmul.msk.bf16.vlgmr.msrb.gmra.mxu2 %vm808_vm1, %v3655_v6  ;;  %v2940_v6 = vpop.eup %2939 }
 0x38c   : > { %1775 = vmatpush.bf16.msrb.mxu2 %v3762_v62  ;;  %v1057_v33 = vadd.f32 1.0, %v2940_v6 }
 0x38d   : > { %v3793_v26 = vpop.permute.xlu0 %1190 }
 0x38e   : > { %v1193_v27 = vmul.f32 %v3793_v26, %v3650_v5  ;;  %2941 = vrcp.f32 %v1057_v33  ;;  %vm1063_vm7 = vweird.f32 %v1057_v33  ;;  %v1069_v46 = vand.u32 2147483648, %v1057_v33 }
 0x38f   : > { %v1067_v48 = vand.u32 2147483647, %v1057_v33 }
 0x390   : > { %1195 = vrot.lane.b32.xlu0 %v1193_v27, %s3389_s30  ;;  %v1070_v49 = vor.u32 1.1754944e-38, %v1069_v46 }
 0x391   : > { %vm1068_vm10 = vcmp.eq.f32.partialorder %v1067_v48, 8.507059e+37 }
 0x394   : > { %v2942_v5 = vpop.eup %2941 }
 0x395   : > { %v1059_v38 = vmul.f32 %v2942_v5, %v1057_v33  ;;  %vm1064_vm8 = vweird.f32 %v2942_v5 }
 0x396   : > { %vm1065_vm9 = vmor %vm1063_vm7, %vm1064_vm8 }
 0x397   : > { %v1060_v39 = vsub.f32 1.0, %v1059_v38 }
 0x399   : > { %v1061_v43 = vmul.f32 %v2942_v5, %v1060_v39 }
 0x39b   : > { %v1062_v47 = vadd.f32 %v2942_v5, %v1061_v43 }
 0x39d   : > { %v1066_v51 = vsel %vm1065_vm9, %v2942_v5, %v1062_v47 }
 0x39e   : > { %v1071_v55 = vsel %vm1068_vm10, %v1070_v49, %v1066_v51 }
 0x3fe   : > { %v1022_v50 = vpop.f32.mrf.mxu2 }
 0x3ff   : > { %v1075_v52 = vrot.slane %v1022_v50, 7 }
 0x400   : > { %v983_v54 = vpop.f32.mrf.mxu1 }
 0x401   : > { %v1076_v56 = vsel %vm882_vm3, %v1075_v52, %v983_v54 }
 0x402   : > { %v1078_v58 = vmul.f32 %v1076_v56, %v1071_v55 }
 0x404   : > { %v1080_v60 = vpack.c.bf16 %v1078_v58, %v1078_v58  ;;  %v3827_v58 = vpop.permute.xlu2 %1183 }
 0x406   : > { %v1024_v63 = vpop.f32.mrf.mxu2  ;;  %2701 = vmatmul.msk.bf16.vlgmr.msrb.gmra.mxu1 %vm808_vm1, %v1080_v60 }
 0x407   : > { %1634 = vmatpush.bf16.msrb.mxu1 %v3646_v3  ;;  %v1196_v63 = vpop.permute.xlu0 %1195 }
 0x408   : > { %v985_v0 = vpop.f32.mrf.mxu1 }
 0x40b   : > { %1635 = vmatpush.bf16.msrb.mxu1 %v3648_v4 }
 0x40e   : > { %v1131_v7 = vpop.f32.mrf.mxu2 }
 0x416   : > { %v1133_v8 = vpop.f32.mrf.mxu2 }
 0x483   : > { %v1105_v13 = vpop.f32.mrf.mxu1 }
 0x484   : > { %v1109_v14 = vadd.f32 %v1105_v13, %v1079_v10 }
 0x486   : > { %v1135_v18 = vadd.f32 %v1131_v7, %v1109_v14 }
 0x488   : > { %v1139_v21 = vadd.f32 %v3817_v17, %v1135_v18 }
 0x48a   : > { %2943 = vtanh.f32 %v1139_v21  ;;  %v2711_v25 = vmul.f32 -1.442695, %v1139_v21 }
 0x48b   : > { %v1107_v22 = vpop.f32.mrf.mxu1 }
 0x48c   : > { %2945 = vpow2.f32 %v2711_v25 }
 0x490   : > { %v2944_v23 = vpop.eup %2943 }
 0x491   : > { %1166 = vrot.lane.b32.xlu1 %v2944_v23, %s3390_s5 }
 0x492   : > { %v2946_v27 = vpop.eup %2945 }
 0x493   : > { %v1143_v28 = vadd.f32 1.0, %v2946_v27 }
 0x495   : > { %2947 = vrcp.f32 %v1143_v28  ;;  %v1155_v38 = vand.u32 2147483648, %v1143_v28  ;;  %vm1149_vm12 = vweird.f32 %v1143_v28  ;;  %v1153_v39 = vand.u32 2147483647, %v1143_v28 }
 0x497   : > { %v1156_v46 = vor.u32 1.1754944e-38, %v1155_v38  ;;  %vm1154_vm14 = vcmp.eq.f32.partialorder %v1153_v39, 8.507059e+37 }
 0x49b   : > { %v2948_v30 = vpop.eup %2947 }
 0x49c   : > { %v1145_v31 = vmul.f32 %v2948_v30, %v1143_v28  ;;  %vm1150_vm11 = vweird.f32 %v2948_v30 }
 0x49d   : > { %vm1151_vm13 = vmor %vm1149_vm12, %vm1150_vm11 }
 0x49e   : > { %v1146_v6 = vsub.f32 1.0, %v1145_v31 }
 0x4a0   : > { %v1147_v33 = vmul.f32 %v2948_v30, %v1146_v6 }
 0x4a2   : > { %v1148_v5 = vadd.f32 %v2948_v30, %v1147_v33 }
 0x4a4   : > { %v1152_v43 = vsel %vm1151_vm13, %v2948_v30, %v1148_v5 }
 0x4a5   : > { %v1157_v48 = vsel %vm1154_vm14, %v1156_v46, %v1152_v43 }
 0x4a6   : > { %v1164_v50 = vmul.f32 %v3788_v24, %v1157_v48 }
 0x503   : > { %v1167_v47 = vpop.permute.xlu1 %1166 }
 0x504   : > { %v1169_v49 = vmul.f32 %v1167_v47, %v1157_v48 }
 0x506   : > { %1171 = vrot.lane.b32.xlu1 %v1169_v49, %s4331_s11 }
 0x578   : > { %v1172_v51 = vpop.permute.xlu1 %1171 }
 0x579   : > { %v3823_v52 = vadd.f32 %v1172_v51, %v1164_v50 }
 0x57b   : > { %2949 = vtanh.f32 %v3823_v52 }
 0x581   : > { %v2950_v54 = vpop.eup %2949 }
 0x582   : > { %1177 = vrot.lane.b32.xlu1 %v2950_v54, %s3390_s5 }
 0x5f4   : > { %v1178_v55 = vpop.permute.xlu1 %1177 }
 0x5f5   : > { %v1180_v56 = vmul.f32 %v1178_v55, %v1157_v48 }
 0x5f7   : > { %v1186_v60 = vmul.f32 %v3827_v58, %v1180_v56 }
 0x5f9   : > { %v1198_v0 = vadd.f32 %v1196_v63, %v1186_v60 }
 0x5fb   : > { %1207 = vrot.lane.b32.xlu1 %v1198_v0, %s4331_s11 }
 0x66d   : > { %v1208_v24 = vpop.permute.xlu1 %1207 }
 0x66e   : > { %1211 = vst.msk [vmem:[#allocation2] sm:$0x3] %vm1210_vm15, %v1208_v24 }
 0x66f   : > { %1242 = vst.msk [vmem:[%s3637_s2] sm:$0x3] %vm1210_vm15, %v1208_v24 }
 0x675   : > { %v3834_v7 = vld [vmem:[#allocation2] sm:$0x3] }
 0x676   : > { %v3838_v8 = vpack.c.bf16 %v3834_v7, %v3834_v7 }
 0x678   : > { %2713 = vmatmul.msk.bf16.vlgmr.msrb.gmra.mxu0 %vm808_vm1, %v3838_v8  ;;  %2720 = vmatmul.msk.bf16.vlgmr.msra.gmra.mxu2 %vm808_vm1, %v3838_v8 }
 0x679   : > { %1808 = vmatpush.bf16.msrb.mxu0 %v3759_v61  ;;  %1878 = vmatpush.bf16.msra.mxu2 %v3766_v1 }
 0x67d   : > { %1879 = vmatpush.bf16.msra.mxu2 %v3775_v11 }
 0x6f5   : > { %v1263_v10 = vpop.f32.mrf.mxu0 }
 0x6f6   : > { %v1264_v13 = vadd.f32 %v3665_v9, %v1263_v10 }
 0x6f8   : > { %v1268_v14 = vrot.slane %v1264_v13, 1  ;;  %v1269_v18 = vperm.slane %v1264_v13, 0 }
 0x6fa   : > { %v1270_v21 = vperm.slane %v1268_v14, 0  ;;  %v1273_v22 = vadd.f32 %v1269_v18, %v3668_v12  ;;  %v1274_v23 = vadd.f32 %v1269_v18, %v3670_v15 }
 0x6fb   : > { %v3850_v25 = vpop.f32.mrf.mxu2 }
 0x6fc   : > { %v1278_v27 = vmax.f32 %v1274_v23, 0.0  ;;  %v1277_v28 = vmax.f32 %v1273_v22, 0.0  ;;  %v1275_v30 = vadd.f32 %v1270_v21, %v3672_v16  ;;  %v1276_v6 = vadd.f32 %v1270_v21, %v3680_v20 }
 0x6fd   : > { %v1265_v31 = vpop.f32.mrf.mxu0 }
 0x6fe   : > { %v1282_v33 = vmul.f32 %v3678_v19, %v1278_v27  ;;  %v1281_v5 = vmul.f32 %v3678_v19, %v1277_v28  ;;  %v1279_v38 = vmax.f32 %v1275_v30, 0.0  ;;  %v1280_v47 = vmax.f32 %v1276_v6, 0.0 }
 0x700   : > { %v1288_v39 = vsel %vm808_vm1, %v1282_v33, 0.0  ;;  %v1285_v43 = vsel %vm808_vm1, %v1281_v5, 0.0  ;;  %v1283_v46 = vmul.f32 %v3678_v19, %v1279_v38  ;;  %v1284_v50 = vmul.f32 %v3678_v19, %v1280_v47 }
 0x701   : > { %1289 = vadd.xlane.f32.xlu0 %v1288_v39  ;;  %1286 = vadd.xlane.f32.xlu2 %v1285_v43 }
 0x702   : > { %v1291_v48 = vsel %vm808_vm1, %v1283_v46, 0.0  ;;  %v1294_v51 = vsel %vm808_vm1, %v1284_v50, 0.0 }
 0x703   : > { %v1451_v49 = vpop.f32.mrf.mxu2  ;;  %1292 = vadd.xlane.f32.xlu1 %v1291_v48 }
 0x709   : > { %1295 = vadd.xlane.f32.xlu2 %v1294_v51 }
 0x774   : > { %v1287_v54 = vpop.xlane.xlu2 %1286  ;;  %v1290_v55 = vpop.xlane.xlu0 %1289 }
 0x775   : > { %v1298_v60 = vadd.f32 %v1290_v55, %v3695_v41  ;;  %v1297_v63 = vadd.f32 %v1287_v54, %v3695_v41 }
 0x776   : > { %v1293_v56 = vpop.xlane.xlu1 %1292 }
 0x777   : > { %v1299_v0 = vadd.f32 %v1293_v56, %v3695_v41  ;;  %v1306_v10 = vperm.slane %v1298_v60, %v3698_v42  ;;  %v1305_v13 = vperm.slane %v1297_v63, %v3693_v40 }
 0x779   : > { %v1308_v18 = vperm.slane %v1299_v0, %v3693_v40  ;;  %v1307_v22 = vsel %vm877_vm2, %v1306_v10, %v1305_v13 }
 0x77c   : > { %v1296_v24 = vpop.xlane.xlu2 %1295 }
 0x77d   : > { %v1300_v14 = vadd.f32 %v1296_v24, %v3695_v41 }
 0x77f   : > { %v1309_v21 = vperm.slane %v1300_v14, %v3698_v42 }
 0x781   : > { %v1310_v23 = vsel %vm877_vm2, %v1309_v21, %v1308_v18 }
 0x782   : > { %v1311_v27 = vsel %vm882_vm3, %v1310_v23, %v1307_v22  ;;  %v1244_v23 = vstv %s1243_s18  ;;  %s1991_s18 = sadd.s32 3, %s3740_s10 }
 0x783   : > { %v1313_v28 = vsel %vm885_vm4, %v1311_v27, -inf  ;;  %vm1245_vm0 = vcmp.gt.s32.totalorder %v3748_v53, %v1244_v23 }
 0x784   : > { %1314 = vmax.xlane.f32.xlu0 %v1313_v28  ;;  %v3885_v27 = vsel %vm1245_vm0, 1.0, %v3387_v57 }
 0x7f7   : > { %v1315_v30 = vpop.xlane.xlu0 %1314 }
 0x7f8   : > { %v1317_v31 = vperm.slane %v1315_v30, 0  ;;  %v1318_v6 = vperm.slane %v1315_v30, 1 }
 0x7fa   : > { %v1321_v33 = vsub.f32 %v1297_v63, %v1317_v31  ;;  %v1322_v5 = vsub.f32 %v1298_v60, %v1317_v31  ;;  %v1323_v38 = vsub.f32 %v1299_v0, %v1318_v6  ;;  %v1324_v47 = vsub.f32 %v1300_v14, %v1318_v6 }
 0x7fc   : > { %v1325_v39 = vmul.f32 1.442695, %v1321_v33  ;;  %v1327_v43 = vmul.f32 1.442695, %v1322_v5  ;;  %v1329_v46 = vmul.f32 1.442695, %v1323_v38 }
 0x7fd   : > { %v1331_v48 = vmul.f32 1.442695, %v1324_v47 }
 0x7fe   : > { %2951 = vpow2.f32 %v1325_v39 }
 0x7ff   : > { %2953 = vpow2.f32 %v1327_v43 }
 0x800   : > { %2955 = vpow2.f32 %v1329_v46 }
 0x801   : > { %2957 = vpow2.f32 %v1331_v48 }
 0x804   : > { %v2952_v49 = vpop.eup %2951 }
 0x805   : > { %v2954_v50 = vpop.eup %2953  ;;  %1338 = vperm.xlu2 %2921, %v2952_v49  }
 0x806   : > { %v2956_v51 = vpop.eup %2955  ;;  %1341 = vperm.xlu1 %2923, %v2954_v50  }
 0x807   : > { %1344 = vperm.xlu0 %2922, %v2956_v51   ;;  %v2958_v54 = vpop.eup %2957 }
 0x80d   : > { %1347 = vperm.xlu2 %2921, %v2958_v54  }
 0x85f   : > { %v1339_v55 = vpop.permute.xlu2 %1338 }
 0x860   : > { %v1349_v63 = vperm.slane %v1339_v55, %v3693_v40 }
 0x867   : > { %v1348_v56 = vpop.permute.xlu2 %1347 }
 0x868   : > { %v1353_v10 = vperm.slane %v1348_v56, %v3698_v42 }
 0x878   : > { %v1342_v60 = vpop.permute.xlu1 %1341 }
 0x879   : > { %v1345_v0 = vpop.permute.xlu0 %1344  ;;  %v1350_v24 = vperm.slane %v1342_v60, %v3698_v42 }
 0x87a   : > { %v1352_v13 = vperm.slane %v1345_v0, %v3693_v40 }
 0x87b   : > { %v1351_v14 = vsel %vm877_vm2, %v1350_v24, %v1349_v63 }
 0x87c   : > { %v1354_v18 = vsel %vm877_vm2, %v1353_v10, %v1352_v13 }
 0x87d   : > { %v1355_v21 = vsel %vm882_vm3, %v1354_v18, %v1351_v14 }
 0x87e   : > { %v1357_v22 = vsel %vm885_vm4, %v1355_v21, 0.0 }
 0x87f   : > { %1358 = vadd.xlane.f32.xlu1 %v1357_v22 }
 0x898   : > { %1556 = vperm.xlu1 %2923, %v3885_v27  }
 0x8f2   : > { %v1359_v28 = vpop.xlane.xlu1 %1358 }
 0x8f3   : > { %2959 = vrcp.f32 %v1359_v28 }
 0x8f9   : > { %v2960_v30 = vpop.eup %2959 }
 0x8fa   : > { %v1362_v31 = vperm.slane %v2960_v30, 0  ;;  %v1363_v6 = vperm.slane %v2960_v30, 1  ;;  %v1199_v30 = vmul.f32 %v3827_v58, %v3823_v52 }
 0x8fc   : > { %v3888_v33 = vmul.f32 %v2954_v50, %v1362_v31  ;;  %v3890_v5 = vmul.f32 %v2952_v49, %v1362_v31  ;;  %v3896_v39 = vmul.f32 %v2958_v54, %v1363_v6  ;;  %v3898_v43 = vmul.f32 %v2956_v51, %v1363_v6 }
 0x8fd   : > { %v1200_v51 = vmul.f32 %v3793_v26, %v3755_v59 }
 0x8fe   : > { %v1371_v38 = vpack.c.bf16 %v3888_v33, %v3888_v33  ;;  %v1370_v53 = vpack.c.bf16 %v3890_v5, %v3890_v5  ;;  %v1373_v50 = vpack.c.bf16 %v3896_v39, %v3896_v39  ;;  %v1372_v49 = vpack.c.bf16 %v3898_v43, %v3898_v43 }
 0x900   : > { %v1377_v46 = vunpack.c.l.b16 %v1371_v38  ;;  %v1376_v47 = vunpack.c.l.b16 %v1370_v53  ;;  %v1410_v56 = vunpack.c.l.b16 %v1373_v50  ;;  %v1409_v60 = vunpack.c.l.b16 %v1372_v49 }
 0x902   : > { %v2715_v48 = vunpack.i.l.s16 %v1377_v46  ;;  %v2714_v55 = vunpack.i.l.s16 %v1376_v47  ;;  %v2718_v63 = vunpack.i.l.s16 %v1410_v56  ;;  %v2717_v0 = vunpack.i.l.s16 %v1409_v60 }
 0x904   : > { %1385 = vperm.xlu2 %2921, %v2715_v48   ;;  %1382 = vperm.xlu0 %2922, %v2714_v55  }
 0x90c   : > { %1418 = vperm.xlu2 %2921, %v2718_v63   ;;  %1415 = vperm.xlu0 %2922, %v2717_v0  }
 0x914   : > { %1202 = vrot.lane.b32.xlu0 %v1200_v51, %s4331_s11 }
 0x95e   : > { %v1386_v54 = vpop.permute.xlu2 %1385 }
 0x95f   : > { %v1388_v10 = vperm.slane %v1386_v54, %v3698_v42 }
 0x966   : > { %v1419_v21 = vpop.permute.xlu2 %1418 }
 0x967   : > { %v1421_v23 = vperm.slane %v1419_v21, %v3698_v42 }
 0x976   : > { %v1383_v24 = vpop.permute.xlu0 %1382 }
 0x977   : > { %v1387_v13 = vperm.slane %v1383_v24, %v3693_v40 }
 0x979   : > { %v1389_v14 = vsel %vm877_vm2, %v1388_v10, %v1387_v13 }
 0x97a   : > { %v1390_v18 = vpack.c.b16 %v1389_v14, %v1389_v14 }
 0x97c   : > { %2716 = vmatmul.msk.bf16.vlgmr.msrb.gmra.mxu3 %vm970_vm6, %v1390_v18 }
 0x97d   : > { %1820 = vmatpush.bf16.msrb.mxu3 %v3726_v37  ;;  %v1450_v37 = vadd.f32 %v3801_v29, %v3850_v25 }
 0x97e   : > { %v1416_v22 = vpop.permute.xlu0 %1415 }
 0x97f   : > { %v1420_v59 = vperm.slane %v1416_v22, %v3693_v40 }
 0x981   : > { %v1422_v26 = vsel %vm877_vm2, %v1421_v23, %v1420_v59  ;;  %1821 = vmatpush.bf16.msrb.mxu3 %v3737_v45  ;;  %v2721_v45 = vmul.f32 -1.442695, %v1450_v37  ;;  %v2722_v59 = vld [vmem:[%s3617_s8 + $0x2] sm:$0x3] }
 0x982   : > { %v1423_v28 = vpack.c.b16 %v1422_v26, %v1422_v26 }
 0x983   : > { %2961 = vpow2.f32 %v2721_v45 }
 0x984   : > { %2719 = vmatmul.msk.bf16.vlgmr.msra.gmra.mxu1 %vm970_vm6, %v1423_v28 }
 0x985   : > { %1864 = vmatpush.bf16.msra.mxu1 %v3768_v2 }
 0x986   : > { %v1203_v31 = vpop.permute.xlu0 %1202 }
 0x987   : > { %v1205_v6 = vadd.f32 %v1203_v31, %v1199_v30 }
 0x989   : > { %1213 = vrot.lane.b32.xlu2 %v1205_v6, %s3389_s30  ;;  %1865 = vmatpush.bf16.msra.mxu1 %v3804_v32  ;;  %v2962_v38 = vpop.eup %2961 }
 0x98a   : > { %v1456_v58 = vadd.f32 1.0, %v2962_v38 }
 0x98c   : > { %2724 = vmatmul.msk.bf16.vlgmr.msra.gmra.mxu3 %vm808_vm1, %v3838_v8  ;;  %2963 = vrcp.f32 %v1456_v58  ;;  %v1560_v8 = vsub.f32 1.0, %v3885_v27  ;;  %v1468_v55 = vand.u32 2147483648, %v1456_v58  ;;  %vm1462_vm7 = vweird.f32 %v1456_v58 }
 0x98d   : > { %2149 = vmatpush.bf16.msra.mxu3 %v3762_v62  ;;  %v1466_v49 = vand.u32 2147483647, %v1456_v58 }
 0x98e   : > { %v1469_v63 = vor.u32 1.1754944e-38, %v1468_v55 }
 0x98f   : > { %vm1467_vm9 = vcmp.eq.f32.partialorder %v1466_v49, 8.507059e+37 }
 0x992   : > { %v2964_v46 = vpop.eup %2963 }
 0x993   : > { %v1458_v62 = vmul.f32 %v2964_v46, %v1456_v58  ;;  %vm1463_vm5 = vweird.f32 %v2964_v46 }
 0x994   : > { %vm1464_vm8 = vmor %vm1462_vm7, %vm1463_vm5 }
 0x995   : > { %v1459_v47 = vsub.f32 1.0, %v1458_v62 }
 0x997   : > { %v1460_v25 = vmul.f32 %v2964_v46, %v1459_v47 }
 0x999   : > { %v1461_v48 = vadd.f32 %v2964_v46, %v1460_v25 }
 0x99b   : > { %v1465_v60 = vsel %vm1464_vm8, %v2964_v46, %v1461_v48 }
 0x99c   : > { %v1470_v51 = vsel %vm1467_vm9, %v1469_v63, %v1465_v60 }
 0x9e3   : > { %v1214_v52 = vpop.permute.xlu2 %1213 }
 0x9e4   : > { %1216 = vst.msk [vmem:[#allocation3] sm:$0x3] %vm1210_vm15, %v1214_v52 }
 0x9eb   : > { %v3928_v53 = vld [vmem:[#allocation3] sm:$0x3] }
 0x9ec   : > { %1534 = vrot.lane.b32.xlu2 %v3928_v53, %s4331_s11 }
 0x9f4   : > { %1563 = vperm.xlu2 %2921, %v1560_v8  }
 0x9ff   : > { %v1403_v50 = vpop.f32.mrf.mxu3 }
 0xa01   : > { %v1436_v56 = vpop.f32.mrf.mxu1 }
 0xa02   : > { %v1474_v0 = vrot.slane %v1436_v56, 7 }
 0xa04   : > { %v1475_v27 = vsel %vm882_vm3, %v1474_v0, %v1403_v50 }
 0xa05   : > { %v1477_v54 = vmul.f32 %v1475_v27, %v1470_v51  ;;  %v3950_v27 = vpop.permute.xlu1 %1556 }
 0xa07   : > { %v1480_v24 = vpack.c.bf16 %v1477_v54, %v1477_v54  ;;  %v1405_v10 = vpop.f32.mrf.mxu3 }
 0xa09   : > { %v1438_v13 = vpop.f32.mrf.mxu1  ;;  %2723 = vmatmul.msk.bf16.vlgmr.msra.gmra.mxu0 %vm808_vm1, %v1480_v24 }
 0xa0a   : > { %2008 = vmatpush.bf16.msra.mxu0 %v3646_v3 }
 0xa0e   : > { %2009 = vmatpush.bf16.msra.mxu0 %v3648_v4 }
 0xa0f   : > { %v1507_v14 = vpop.f32.mrf.mxu3 }
 0xa17   : > { %v1509_v18 = vpop.f32.mrf.mxu3 }
 0xa46   : > { %v1535_v21 = vpop.permute.xlu2 %1534 }
 0xa4e   : > { %v3937_v22 = vpop.permute.xlu2 %1563 }
 0xa4f   : > { %v1566_v23 = vmul.f32 %v3937_v22, %v3834_v7 }
 0xa51   : > { %1568 = vrot.lane.b32.xlu2 %v1566_v23, %s3389_s30 }
 0xa86   : > { %v1493_v26 = vpop.f32.mrf.mxu0 }
 0xa87   : > { %v1497_v28 = vadd.f32 %v2722_v59, %v1493_v26 }
 0xa89   : > { %v1511_v30 = vadd.f32 %v1507_v14, %v1497_v28 }
 0xa8b   : > { %v1512_v31 = vadd.f32 %v3817_v17, %v1511_v30 }
 0xa8d   : > { %2965 = vtanh.f32 %v1512_v31  ;;  %v2725_v4 = vmul.f32 -1.442695, %v1512_v31 }
 0xa8e   : > { %v1495_v3 = vpop.f32.mrf.mxu0 }
 0xa8f   : > { %2967 = vpow2.f32 %v2725_v4 }
 0xa93   : > { %v2966_v6 = vpop.eup %2965 }
 0xa94   : > { %1539 = vrot.lane.b32.xlu0 %v2966_v6, %s3390_s5 }
 0xa95   : > { %v2968_v37 = vpop.eup %2967 }
 0xa96   : > { %v1516_v45 = vadd.f32 1.0, %v2968_v37 }
 0xa98   : > { %2969 = vrcp.f32 %v1516_v45  ;;  %v1528_v8 = vand.u32 2147483648, %v1516_v45  ;;  %vm1522_vm11 = vweird.f32 %v1516_v45  ;;  %v1526_v62 = vand.u32 2147483647, %v1516_v45 }
 0xa9a   : > { %v1529_v25 = vor.u32 1.1754944e-38, %v1528_v8  ;;  %vm1527_vm13 = vcmp.eq.f32.partialorder %v1526_v62, 8.507059e+37 }
 0xa9e   : > { %v2970_v38 = vpop.eup %2969 }
 0xa9f   : > { %v1518_v7 = vmul.f32 %v2970_v38, %v1516_v45  ;;  %vm1523_vm10 = vweird.f32 %v2970_v38 }
 0xaa0   : > { %vm1524_vm12 = vmor %vm1522_vm11, %vm1523_vm10 }
 0xaa1   : > { %v1519_v52 = vsub.f32 1.0, %v1518_v7 }
 0xaa3   : > { %v1520_v58 = vmul.f32 %v2970_v38, %v1519_v52 }
 0xaa5   : > { %v1521_v46 = vadd.f32 %v2970_v38, %v1520_v58 }
 0xaa7   : > { %v1525_v47 = vsel %vm1524_vm12, %v2970_v38, %v1521_v46 }
 0xaa8   : > { %v1530_v48 = vsel %vm1527_vm13, %v1529_v25, %v1525_v47 }
 0xaa9   : > { %v1537_v49 = vmul.f32 %v1535_v21, %v1530_v48 }
 0xaab   : > { %v1569_v24 = vpop.permute.xlu2 %1568 }
 0xb06   : > { %v1540_v55 = vpop.permute.xlu0 %1539 }
 0xb07   : > { %v1542_v50 = vmul.f32 %v1540_v55, %v1530_v48 }
 0xb09   : > { %1544 = vrot.lane.b32.xlu0 %v1542_v50, %s4331_s11 }
 0xb7b   : > { %v1545_v56 = vpop.permute.xlu0 %1544 }
 0xb7c   : > { %v3946_v60 = vadd.f32 %v1545_v56, %v1537_v49 }
 0xb7e   : > { %2971 = vtanh.f32 %v3946_v60 }
 0xb84   : > { %v2972_v63 = vpop.eup %2971 }
 0xb85   : > { %1550 = vrot.lane.b32.xlu0 %v2972_v63, %s3390_s5 }
 0xbf7   : > { %v1551_v0 = vpop.permute.xlu0 %1550 }
 0xbf8   : > { %v1553_v51 = vmul.f32 %v1551_v0, %v1530_v48 }
 0xbfa   : > { %v1559_v54 = vmul.f32 %v3950_v27, %v1553_v51 }
 0xbfc   : > { %v1571_v10 = vadd.f32 %v1569_v24, %v1559_v54 }
 0xbfe   : > { %1580 = vrot.lane.b32.xlu0 %v1571_v10, %s4331_s11 }
 0xc70   : > { %v1581_v13 = vpop.permute.xlu0 %1580 }
 0xc71   : > { %1583 = vst.msk [vmem:[#allocation2] sm:$0x3] %vm1210_vm15, %v1581_v13 }
 0xc72   : > { %2727 = vst.msk [vmem:[%s3637_s2 + $0x2] sm:$0x3] %vm1210_vm15, %v1581_v13 }
 0xc78   : > { %v3957_v14 = vld [vmem:[#allocation2] sm:$0x3] }
 0xc79   : > { %v3961_v18 = vpack.c.bf16 %v3957_v14, %v3957_v14 }
 0xc7b   : > { %2729 = vmatmul.msk.bf16.vlgmr.msrb.gmra.mxu1 %vm808_vm1, %v3961_v18  ;;  %2736 = vmatmul.msk.bf16.vlgmr.msrb.gmra.mxu3 %vm808_vm1, %v3961_v18 }
 0xc7c   : > { %2182 = vmatpush.bf16.msrb.mxu1 %v3759_v61  ;;  %2252 = vmatpush.bf16.msrb.mxu3 %v3766_v1 }
 0xc80   : > { %2253 = vmatpush.bf16.msrb.mxu3 %v3775_v11 }
 0xcf8   : > { %v1637_v21 = vpop.f32.mrf.mxu1 }
 0xcf9   : > { %v1638_v23 = vadd.f32 %v3665_v9, %v1637_v21 }
 0xcfb   : > { %v1642_v59 = vrot.slane %v1638_v23, 1  ;;  %v1643_v26 = vperm.slane %v1638_v23, 0 }
 0xcfd   : > { %v1644_v28 = vperm.slane %v1642_v59, 0  ;;  %v1647_v30 = vadd.f32 %v1643_v26, %v3668_v12  ;;  %v1648_v31 = vadd.f32 %v1643_v26, %v3670_v15 }
 0xcfe   : > { %v3973_v3 = vpop.f32.mrf.mxu3 }
 0xcff   : > { %v1652_v6 = vmax.f32 %v1648_v31, 0.0  ;;  %v1651_v4 = vmax.f32 %v1647_v30, 0.0  ;;  %v1649_v61 = vadd.f32 %v1644_v28, %v3672_v16  ;;  %v1650_v1 = vadd.f32 %v1644_v28, %v3680_v20  ;;  %v3986_v20 = vld [vmem:[%s4364_s16] ss:$0 sm:$0xff] }
 0xd00   : > { %v1639_v37 = vpop.f32.mrf.mxu1 }
 0xd01   : > { %v1656_v11 = vmul.f32 %v3678_v19, %v1652_v6  ;;  %v1655_v9 = vmul.f32 %v3678_v19, %v1651_v4  ;;  %v1653_v45 = vmax.f32 %v1649_v61, 0.0  ;;  %v1654_v7 = vmax.f32 %v1650_v1, 0.0 }
 0xd03   : > { %v1662_v38 = vsel %vm808_vm1, %v1656_v11, 0.0  ;;  %v1659_v12 = vsel %vm808_vm1, %v1655_v9, 0.0  ;;  %v1657_v15 = vmul.f32 %v3678_v19, %v1653_v45  ;;  %v1658_v58 = vmul.f32 %v3986_v20, %v1654_v7 }
 0xd04   : > { %1663 = vadd.xlane.f32.xlu0 %v1662_v38  ;;  %1660 = vadd.xlane.f32.xlu2 %v1659_v12 }
 0xd05   : > { %v1665_v52 = vsel %vm808_vm1, %v1657_v15, 0.0  ;;  %v1668_v46 = vsel %vm808_vm1, %v1658_v58, 0.0 }
 0xd06   : > { %v1825_v16 = vpop.f32.mrf.mxu3  ;;  %1666 = vadd.xlane.f32.xlu1 %v1665_v52 }
 0xd0c   : > { %1669 = vadd.xlane.f32.xlu2 %v1668_v46 }
 0xd77   : > { %v1661_v8 = vpop.xlane.xlu2 %1660  ;;  %v1664_v62 = vpop.xlane.xlu0 %1663 }
 0xd78   : > { %v1672_v47 = vadd.f32 %v1664_v62, %v3695_v41  ;;  %v1671_v25 = vadd.f32 %v1661_v8, %v3695_v41 }
 0xd79   : > { %v1667_v19 = vpop.xlane.xlu1 %1666 }
 0xd7a   : > { %v1673_v48 = vadd.f32 %v1667_v19, %v3695_v41  ;;  %v1680_v50 = vperm.slane %v1672_v47, %v3698_v42  ;;  %v1679_v49 = vperm.slane %v1671_v25, %v3693_v40 }
 0xd7c   : > { %v1682_v63 = vperm.slane %v1673_v48, %v3693_v40  ;;  %v1681_v51 = vsel %vm877_vm2, %v1680_v50, %v1679_v49 }
 0xd7f   : > { %v1670_v55 = vpop.xlane.xlu2 %1669 }
 0xd80   : > { %v1674_v56 = vadd.f32 %v1670_v55, %v3695_v41 }
 0xd82   : > { %v1683_v0 = vperm.slane %v1674_v56, %v3698_v42 }
 0xd84   : > { %v1684_v54 = vsel %vm877_vm2, %v1683_v0, %v1682_v63 }
 0xd85   : > { %v1685_v24 = vsel %vm882_vm3, %v1684_v54, %v1681_v51 }
 0xd86   : > { %v1687_v10 = vsel %vm885_vm4, %v1685_v24, -inf }
 0xd87   : > { %1688 = vmax.xlane.f32.xlu0 %v1687_v10 }
 0xdfa   : > { %v1689_v13 = vpop.xlane.xlu0 %1688 }
 0xdfb   : > { %v1691_v21 = vperm.slane %v1689_v13, 0  ;;  %v1692_v23 = vperm.slane %v1689_v13, 1 }
 0xdfd   : > { %v1695_v59 = vsub.f32 %v1671_v25, %v1691_v21  ;;  %v1696_v26 = vsub.f32 %v1672_v47, %v1691_v21  ;;  %v1697_v28 = vsub.f32 %v1673_v48, %v1692_v23  ;;  %v1698_v4 = vsub.f32 %v1674_v56, %v1692_v23 }
 0xdff   : > { %v1699_v30 = vmul.f32 1.442695, %v1695_v59  ;;  %v1701_v31 = vmul.f32 1.442695, %v1696_v26  ;;  %v1703_v6 = vmul.f32 1.442695, %v1697_v28 }
 0xe00   : > { %v1705_v61 = vmul.f32 1.442695, %v1698_v4 }
 0xe01   : > { %2973 = vpow2.f32 %v1699_v30 }
 0xe02   : > { %2975 = vpow2.f32 %v1701_v31  ;;  %v1573_v31 = vmul.f32 %v3937_v22, %v3928_v53 }
 0xe03   : > { %2977 = vpow2.f32 %v1703_v6 }
 0xe04   : > { %2979 = vpow2.f32 %v1705_v61 }
 0xe07   : > { %v2974_v37 = vpop.eup %2973 }
 0xe08   : > { %v2976_v1 = vpop.eup %2975  ;;  %1712 = vperm.xlu2 %2921, %v2974_v37  }
 0xe09   : > { %v2978_v11 = vpop.eup %2977  ;;  %1715 = vperm.xlu0 %2922, %v2976_v1  }
 0xe0a   : > { %1718 = vperm.xlu1 %2923, %v2978_v11   ;;  %v2980_v9 = vpop.eup %2979 }
 0xe10   : > { %1721 = vperm.xlu2 %2921, %v2980_v9  }
 0xe62   : > { %v1713_v45 = vpop.permute.xlu2 %1712 }
 0xe63   : > { %v1723_v15 = vperm.slane %v1713_v45, %v3693_v40  ;;  %v3018_v45 = vld [vmem:[#allocation12 + $0x8] sm:$0xff] }
 0xe6a   : > { %v1722_v38 = vpop.permute.xlu2 %1721 }
 0xe6b   : > { %v1727_v16 = vperm.slane %v1722_v38, %v3698_v42 }
 0xe7b   : > { %v1716_v12 = vpop.permute.xlu0 %1715 }
 0xe7c   : > { %v1719_v7 = vpop.permute.xlu1 %1718  ;;  %v1724_v52 = vperm.slane %v1716_v12, %v3698_v42 }
 0xe7d   : > { %v1726_v58 = vperm.slane %v1719_v7, %v3693_v40 }
 0xe7e   : > { %v1725_v46 = vsel %vm877_vm2, %v1724_v52, %v1723_v15  ;;  %v3019_v15 = vld [vmem:[#allocation12] sm:$0xff]  ;;  %v1572_v52 = vmul.f32 %v3950_v27, %v3946_v60 }
 0xe7f   : > { %v1728_v8 = vsel %vm877_vm2, %v1727_v16, %v1726_v58 }
 0xe80   : > { %v1729_v62 = vsel %vm882_vm3, %v1728_v8, %v1725_v46  ;;  %v1824_v46 = vadd.f32 %v3801_v29, %v3973_v3 }
 0xe81   : > { %v1731_v19 = vsel %vm885_vm4, %v1729_v62, 0.0 }
 0xe82   : > { %1732 = vadd.xlane.f32.xlu0 %v1731_v19  ;;  %v2737_v8 = vmul.f32 -1.442695, %v1824_v46 }
 0xef5   : > { %v1733_v47 = vpop.xlane.xlu0 %1732 }
 0xef6   : > { %2981 = vrcp.f32 %v1733_v47 }
 0xef7   : > { %2983 = vpow2.f32 %v2737_v8 }
 0xefc   : > { %v2982_v25 = vpop.eup %2981 }
 0xefd   : > { %v1736_v48 = vperm.slane %v2982_v25, 0  ;;  %v1737_v55 = vperm.slane %v2982_v25, 1  ;;  %v2984_v62 = vpop.eup %2983 }
 0xefe   : > { %v1830_v47 = vadd.f32 1.0, %v2984_v62 }
 0xeff   : > { %v4010_v50 = vmul.f32 %v2976_v1, %v1736_v48  ;;  %v4012_v49 = vmul.f32 %v2974_v37, %v1736_v48  ;;  %v4018_v0 = vmul.f32 %v2980_v9, %v1737_v55  ;;  %v4020_v51 = vmul.f32 %v2978_v11, %v1737_v55 }
 0xf00   : > { %2985 = vrcp.f32 %v1830_v47  ;;  %vm1836_vm5 = vweird.f32 %v1830_v47 }
 0xf01   : > { %v1745_v56 = vpack.c.bf16 %v4010_v50, %v4010_v50  ;;  %v1744_v63 = vpack.c.bf16 %v4012_v49, %v4012_v49  ;;  %v1747_v21 = vpack.c.bf16 %v4018_v0, %v4018_v0  ;;  %v1746_v23 = vpack.c.bf16 %v4020_v51, %v4020_v51 }
 0xf03   : > { %v1751_v54 = vunpack.c.l.b16 %v1745_v56  ;;  %v1750_v24 = vunpack.c.l.b16 %v1744_v63  ;;  %v1784_v59 = vunpack.c.l.b16 %v1747_v21  ;;  %v1783_v26 = vunpack.c.l.b16 %v1746_v23 }
 0xf04   : > { %v1842_v56 = vand.u32 2147483648, %v1830_v47 }
 0xf05   : > { %v2731_v10 = vunpack.i.l.s16 %v1751_v54  ;;  %v2730_v13 = vunpack.i.l.s16 %v1750_v24  ;;  %v2734_v28 = vunpack.i.l.s16 %v1784_v59  ;;  %v2733_v30 = vunpack.i.l.s16 %v1783_v26 }
 0xf06   : > { %v2986_v27 = vpop.eup %2985  ;;  %v1840_v54 = vand.u32 2147483647, %v1830_v47 }
 0xf07   : > { %1759 = vperm.xlu2 %2921, %v2731_v10   ;;  %1756 = vperm.xlu1 %2923, %v2730_v13   ;;  %v1832_v3 = vmul.f32 %v2986_v27, %v1830_v47  ;;  %vm1837_vm0 = vweird.f32 %v2986_v27  ;;  %v1843_v13 = vor.u32 1.1754944e-38, %v1842_v56 }
 0xf08   : > { %vm1838_vm7 = vmor %vm1836_vm5, %vm1837_vm0  ;;  %vm1841_vm8 = vcmp.eq.f32.partialorder %v1840_v54, 8.507059e+37 }
 0xf09   : > { %v1833_v25 = vsub.f32 1.0, %v1832_v3 }
 0xf0b   : > { %v1834_v48 = vmul.f32 %v2986_v27, %v1833_v25 }
 0xf0d   : > { %v1835_v55 = vadd.f32 %v2986_v27, %v1834_v48 }
 0xf0f   : > { %1792 = vperm.xlu2 %2921, %v2734_v28   ;;  %1789 = vperm.xlu1 %2923, %v2733_v30   ;;  %v1839_v10 = vsel %vm1838_vm7, %v2986_v27, %v1835_v55 }
 0xf10   : > { %v1844_v23 = vsel %vm1841_vm8, %v1843_v13, %v1839_v10 }
 0xf17   : > { %1575 = vrot.lane.b32.xlu1 %v1573_v31, %s4331_s11 }
 0xf61   : > { %v1760_v6 = vpop.permute.xlu2 %1759 }
 0xf62   : > { %v1762_v61 = vperm.slane %v1760_v6, %v3698_v42 }
 0xf69   : > { %v1793_v9 = vpop.permute.xlu2 %1792 }
 0xf6a   : > { %v1795_v12 = vperm.slane %v1793_v9, %v3698_v42 }
 0xf79   : > { %v1757_v4 = vpop.permute.xlu1 %1756 }
 0xf7a   : > { %v1761_v37 = vperm.slane %v1757_v4, %v3693_v40 }
 0xf7c   : > { %v1763_v1 = vsel %vm877_vm2, %v1762_v61, %v1761_v37 }
 0xf7d   : > { %v1764_v11 = vpack.c.b16 %v1763_v1, %v1763_v1 }
 0xf7f   : > { %2732 = vmatmul.msk.bf16.vlgmr.msrb.gmra.mxu2 %vm970_vm6, %v1764_v11  ;;  %v2738_v11 = vld [vmem:[%s3617_s8 + $0x4] sm:$0x3] }
 0xf80   : > { %2194 = vmatpush.bf16.msrb.mxu2 %v3018_v45 }
 0xf81   : > { %v1790_v38 = vpop.permute.xlu1 %1789 }
 0xf82   : > { %v1794_v53 = vperm.slane %v1790_v38, %v3693_v40 }
 0xf84   : > { %v1796_v22 = vsel %vm877_vm2, %v1795_v12, %v1794_v53  ;;  %2195 = vmatpush.bf16.msrb.mxu2 %v3019_v15 }
 0xf85   : > { %v1797_v7 = vpack.c.b16 %v1796_v22, %v1796_v22 }
 0xf87   : > { %2735 = vmatmul.msk.bf16.vlgmr.msrb.gmra.mxu0 %vm970_vm6, %v1797_v7 }
 0xf88   : > { %2238 = vmatpush.bf16.msrb.mxu0 %v3768_v2  ;;  %v1618_v2 = vstv %s1617_s0  ;;  %s2366_s0 = scalar_lea.sflag [#allocation7], %s3614_s6 }
 0xf89   : > { %v1576_v16 = vpop.permute.xlu1 %1575 }
 0xf8a   : > { %v1578_v58 = vadd.f32 %v1576_v16, %v1572_v52 }
 0xf8c   : > { %1585 = vrot.lane.b32.xlu2 %v1578_v58, %s3389_s30  ;;  %2239 = vmatpush.bf16.msrb.mxu0 %v3804_v32  ;;  %v4051_v32 = vld [vmem:[%s4365_s7] sm:$0x3] }
 0xf8d   : > { %vm1619_vm14 = vcmp.gt.s32.totalorder %v4051_v32, %v1618_v2 }
 0xf8e   : > { %v2728_v29 = vsel %vm1619_vm14, 1.0, %v3387_v57 }
 0xf8f   : > { %2740 = vmatmul.msk.bf16.vlgmr.msra.gmra.mxu2 %vm808_vm1, %v3961_v18  ;;  %v1934_v18 = vsub.f32 1.0, %v2728_v29 }
 0xfe6   : > { %v1586_v19 = vpop.permute.xlu2 %1585 }
 0xfe7   : > { %1588 = vst.msk [vmem:[#allocation3] sm:$0x3] %vm1210_vm15, %v1586_v19 }
 0xfee   : > { %v4054_v60 = vld [vmem:[#allocation3] sm:$0x3] }
 0xfef   : > { %1908 = vrot.lane.b32.xlu2 %v4054_v60, %s4331_s11 }
 0xff7   : > { %1937 = vperm.xlu2 %2921, %v1934_v18  }
0x1002   : > { %v1777_v63 = vpop.f32.mrf.mxu2 }
0x1004   : > { %v1810_v24 = vpop.f32.mrf.mxu0 }
0x1005   : > { %v1848_v21 = vrot.slane %v1810_v24, 7 }
0x1007   : > { %v1849_v59 = vsel %vm882_vm3, %v1848_v21, %v1777_v63 }
0x1008   : > { %v1851_v26 = vmul.f32 %v1849_v59, %v1844_v23 }
0x100a   : > { %v1854_v28 = vpack.c.bf16 %v1851_v26, %v1851_v26  ;;  %v1779_v30 = vpop.f32.mrf.mxu2  ;;  %v3021_v26 = vld [vmem:[%s4363_s14] ss:$0 sm:$0xff] }
0x100c   : > { %v1812_v31 = vpop.f32.mrf.mxu0  ;;  %2739 = vmatmul.msk.bf16.vlgmr.msra.gmra.mxu1 %vm808_vm1, %v1854_v28 }
0x1012   : > { %v1881_v6 = vpop.f32.mrf.mxu2 }
0x101a   : > { %v1883_v4 = vpop.f32.mrf.mxu2 }
0x101b   : > { %v3022_v4 = vld [vmem:[#allocation5] sm:$0xff] }
0x1049   : > { %v1909_v61 = vpop.permute.xlu2 %1908 }
0x1051   : > { %v4061_v37 = vpop.permute.xlu2 %1937 }
0x1052   : > { %v1940_v1 = vmul.f32 %v4061_v37, %v3957_v14 }
0x1054   : > { %1942 = vrot.lane.b32.xlu2 %v1940_v1, %s3389_s30  ;;  %v3023_v1 = vld [vmem:[#allocation5 + $0x8] sm:$0xff] }
0x1089   : > { %v1867_v9 = vpop.f32.mrf.mxu1 }
0x108a   : > { %v1871_v45 = vadd.f32 %v2738_v11, %v1867_v9 }
0x108c   : > { %v1885_v38 = vadd.f32 %v1881_v6, %v1871_v45 }
0x108e   : > { %v1886_v12 = vadd.f32 %v3817_v17, %v1885_v38 }
0x1090   : > { %2987 = vtanh.f32 %v1886_v12  ;;  %v2741_v15 = vmul.f32 -1.442695, %v1886_v12  ;;  %v3024_v12 = vld [vmem:[#allocation5 + $0x10] sm:$0xff] }
0x1091   : > { %v1869_v53 = vpop.f32.mrf.mxu1 }
0x1092   : > { %2989 = vpow2.f32 %v2741_v15  ;;  %v3025_v15 = vld [vmem:[#allocation5 + $0x18] sm:$0xff] }
0x1096   : > { %v2988_v22 = vpop.eup %2987 }
0x1097   : > { %1913 = vrot.lane.b32.xlu1 %v2988_v22, %s3390_s5 }
0x1098   : > { %v2990_v7 = vpop.eup %2989 }
0x1099   : > { %v1890_v52 = vadd.f32 1.0, %v2990_v7 }
0x109b   : > { %2991 = vrcp.f32 %v1890_v52  ;;  %v1902_v62 = vand.u32 2147483648, %v1890_v52  ;;  %vm1896_vm10 = vweird.f32 %v1890_v52  ;;  %v1900_v19 = vand.u32 2147483647, %v1890_v52 }
0x109d   : > { %v1903_v47 = vor.u32 1.1754944e-38, %v1902_v62  ;;  %vm1901_vm12 = vcmp.eq.f32.partialorder %v1900_v19, 8.507059e+37 }
0x10a1   : > { %v2992_v16 = vpop.eup %2991 }
0x10a2   : > { %v1892_v14 = vmul.f32 %v2992_v16, %v1890_v52  ;;  %vm1897_vm9 = vweird.f32 %v2992_v16 }
0x10a3   : > { %vm1898_vm11 = vmor %vm1896_vm10, %vm1897_vm9 }
0x10a4   : > { %v1893_v58 = vsub.f32 1.0, %v1892_v14 }
0x10a6   : > { %v1894_v46 = vmul.f32 %v2992_v16, %v1893_v58 }
0x10a8   : > { %v1895_v8 = vadd.f32 %v2992_v16, %v1894_v46 }
0x10aa   : > { %v1899_v17 = vsel %vm1898_vm11, %v2992_v16, %v1895_v8 }
0x10ab   : > { %v1904_v2 = vsel %vm1901_vm12, %v1903_v47, %v1899_v17 }
0x10ac   : > { %v1911_v3 = vmul.f32 %v1909_v61, %v1904_v2 }
0x10ae   : > { %v1943_v10 = vpop.permute.xlu2 %1942 }
0x1109   : > { %v1914_v27 = vpop.permute.xlu1 %1913 }
0x110a   : > { %v1916_v18 = vmul.f32 %v1914_v27, %v1904_v2 }
0x110c   : > { %1918 = vrot.lane.b32.xlu1 %v1916_v18, %s4331_s11 }
0x1114   : > { %1930 = vperm.xlu1 %2923, %v2728_v29  }
0x117e   : > { %v1919_v25 = vpop.permute.xlu1 %1918 }
0x117f   : > { %v4070_v48 = vadd.f32 %v1919_v25, %v1911_v3 }
0x1181   : > { %2993 = vtanh.f32 %v4070_v48 }
0x1186   : > { %v4074_v54 = vpop.permute.xlu1 %1930 }
0x1187   : > { %v2994_v55 = vpop.eup %2993 }
0x1188   : > { %1924 = vrot.lane.b32.xlu0 %v2994_v55, %s3390_s5 }
0x11fa   : > { %v1925_v56 = vpop.permute.xlu0 %1924 }
0x11fb   : > { %v1927_v63 = vmul.f32 %v1925_v56, %v1904_v2 }
0x11fd   : > { %v1933_v24 = vmul.f32 %v4074_v54, %v1927_v63 }
0x11ff   : > { %v1945_v13 = vadd.f32 %v1943_v10, %v1933_v24 }
0x1201   : > { %1954 = vrot.lane.b32.xlu1 %v1945_v13, %s4331_s11 }
0x1273   : > { %v1955_v29 = vpop.permute.xlu1 %1954 }
0x1274   : > { %1957 = vst.msk [vmem:[#allocation2] sm:$0x3] %vm1210_vm15, %v1955_v29 }
0x1275   : > { %2743 = vst.msk [vmem:[%s3637_s2 + $0x4] sm:$0x3] %vm1210_vm15, %v1955_v29 }
0x127b   : > { %v4081_v21 = vld [vmem:[#allocation2] sm:$0x3] }
0x127c   : > { %v4085_v23 = vpack.c.bf16 %v4081_v21, %v4081_v21 }
0x127e   : > { %2745 = vmatmul.msk.bf16.vlgmr.msra.gmra.mxu0 %vm808_vm1, %v4085_v23  ;;  %2752 = vmatmul.msk.bf16.vlgmr.msrb.gmra.mxu2 %vm808_vm1, %v4085_v23 }
0x12fb   : > { %v2011_v59 = vpop.f32.mrf.mxu0 }
0x12fc   : > { %v2012_v28 = vadd.f32 %v3021_v26, %v2011_v59 }
0x12fe   : > { %v2016_v30 = vrot.slane %v2012_v28, 1  ;;  %v2017_v31 = vperm.slane %v2012_v28, 0 }
0x1300   : > { %v2018_v6 = vperm.slane %v2016_v30, 0  ;;  %v2021_v61 = vadd.f32 %v3022_v4, %v2017_v31  ;;  %v2022_v11 = vadd.f32 %v3023_v1, %v2017_v31 }
0x1301   : > { %v4094_v9 = vpop.f32.mrf.mxu2 }
0x1302   : > { %v2026_v45 = vmax.f32 %v2022_v11, 0.0  ;;  %v2025_v38 = vmax.f32 %v2021_v61, 0.0  ;;  %v2023_v53 = vadd.f32 %v3024_v12, %v2018_v6  ;;  %v2024_v7 = vadd.f32 %v3025_v15, %v2018_v6 }
0x1303   : > { %v2013_v22 = vpop.f32.mrf.mxu0 }
0x1304   : > { %v2030_v52 = vmul.f32 %v3986_v20, %v2026_v45  ;;  %v2029_v16 = vmul.f32 %v3986_v20, %v2025_v38  ;;  %v2027_v14 = vmax.f32 %v2023_v53, 0.0  ;;  %v2028_v62 = vmax.f32 %v2024_v7, 0.0 }
0x1306   : > { %v2036_v58 = vsel %vm808_vm1, %v2030_v52, 0.0  ;;  %v2033_v46 = vsel %vm808_vm1, %v2029_v16, 0.0  ;;  %v2031_v8 = vmul.f32 %v3986_v20, %v2027_v14  ;;  %v2032_v47 = vmul.f32 %v3986_v20, %v2028_v62 }
0x1307   : > { %2037 = vadd.xlane.f32.xlu0 %v2036_v58  ;;  %2034 = vadd.xlane.f32.xlu2 %v2033_v46 }
0x1308   : > { %v2039_v19 = vsel %vm808_vm1, %v2031_v8, 0.0  ;;  %v2042_v2 = vsel %vm808_vm1, %v2032_v47, 0.0 }
0x1309   : > { %v2199_v17 = vpop.f32.mrf.mxu2  ;;  %2040 = vadd.xlane.f32.xlu1 %v2039_v19 }
0x130f   : > { %2043 = vadd.xlane.f32.xlu2 %v2042_v2 }
0x137a   : > { %v2035_v27 = vpop.xlane.xlu2 %2034  ;;  %v2038_v18 = vpop.xlane.xlu0 %2037 }
0x137b   : > { %v2046_v25 = vadd.f32 %v2038_v18, %v3695_v41  ;;  %v2045_v55 = vadd.f32 %v2035_v27, %v3695_v41 }
0x137c   : > { %v2041_v3 = vpop.xlane.xlu1 %2040 }
0x137d   : > { %v2047_v56 = vadd.f32 %v2041_v3, %v3695_v41  ;;  %v2054_v24 = vperm.slane %v2046_v25, %v3698_v42  ;;  %v2053_v10 = vperm.slane %v2045_v55, %v3693_v40  ;;  %v1992_v3 = vstv %s1991_s18  ;;  %s4368_s18 = sld [smem:[#allocation41_spill]] }
0x137e   : > { %vm1993_vm13 = vcmp.gt.s32.totalorder %v4051_v32, %v1992_v3 }
0x137f   : > { %v2056_v20 = vperm.slane %v2047_v56, %v3693_v40  ;;  %v2055_v59 = vsel %vm877_vm2, %v2054_v24, %v2053_v10 }
0x1382   : > { %v2044_v63 = vpop.xlane.xlu2 %2043 }
0x1383   : > { %v2048_v13 = vadd.f32 %v2044_v63, %v3695_v41 }
0x1385   : > { %v2057_v29 = vperm.slane %v2048_v13, %v3698_v42 }
0x1387   : > { %v2058_v26 = vsel %vm877_vm2, %v2057_v29, %v2056_v20 }
0x1388   : > { %v2059_v28 = vsel %vm882_vm3, %v2058_v26, %v2055_v59 }
0x1389   : > { %v2061_v30 = vsel %vm885_vm4, %v2059_v28, -inf }
0x138a   : > { %2062 = vmax.xlane.f32.xlu0 %v2061_v30 }
0x13fd   : > { %v2063_v31 = vpop.xlane.xlu0 %2062 }
0x13fe   : > { %v2065_v6 = vperm.slane %v2063_v31, 0  ;;  %v2066_v4 = vperm.slane %v2063_v31, 1 }
0x1400   : > { %v2069_v61 = vsub.f32 %v2045_v55, %v2065_v6  ;;  %v2070_v1 = vsub.f32 %v2046_v25, %v2065_v6  ;;  %v2071_v11 = vsub.f32 %v2047_v56, %v2066_v4  ;;  %v2072_v12 = vsub.f32 %v2048_v13, %v2066_v4 }
0x1401   : > { %v4127_v25 = vsel %vm1993_vm13, 1.0, %v3387_v57 }
0x1402   : > { %v2073_v41 = vmul.f32 1.442695, %v2069_v61  ;;  %v2075_v45 = vmul.f32 1.442695, %v2070_v1  ;;  %v2077_v38 = vmul.f32 1.442695, %v2071_v11 }
0x1403   : > { %v2079_v53 = vmul.f32 1.442695, %v2072_v12  ;;  %v2308_v55 = vsub.f32 1.0, %v4127_v25  ;;  %v1947_v12 = vmul.f32 %v4061_v37, %v4054_v60 }
0x1404   : > { %2995 = vpow2.f32 %v2073_v41 }
0x1405   : > { %2997 = vpow2.f32 %v2075_v45 }
0x1406   : > { %2999 = vpow2.f32 %v2077_v38 }
0x1407   : > { %3001 = vpow2.f32 %v2079_v53 }
0x140a   : > { %v2996_v22 = vpop.eup %2995 }
0x140b   : > { %v2998_v15 = vpop.eup %2997  ;;  %2086 = vperm.xlu1 %2923, %v2996_v22  }
0x140c   : > { %v3000_v7 = vpop.eup %2999  ;;  %2089 = vperm.xlu2 %2921, %v2998_v15  }
0x140d   : > { %2092 = vperm.xlu0 %2922, %v3000_v7   ;;  %v3002_v52 = vpop.eup %3001 }
0x1414   : > { %2095 = vperm.xlu2 %2921, %v3002_v52  }
0x1466   : > { %v2090_v16 = vpop.permute.xlu2 %2089 }
0x1467   : > { %v2098_v46 = vperm.slane %v2090_v16, %v3698_v42 }
0x146e   : > { %v2096_v14 = vpop.permute.xlu2 %2095 }
0x146f   : > { %v2101_v19 = vperm.slane %v2096_v14, %v3698_v42 }
0x147d   : > { %v2087_v58 = vpop.permute.xlu1 %2086 }
0x147e   : > { %v2097_v8 = vperm.slane %v2087_v58, %v3693_v40  ;;  %v1946_v58 = vmul.f32 %v4074_v54, %v4070_v48 }
0x147f   : > { %v2093_v62 = vpop.permute.xlu0 %2092 }
0x1480   : > { %v2100_v17 = vperm.slane %v2093_v62, %v3693_v40  ;;  %v2099_v47 = vsel %vm877_vm2, %v2098_v46, %v2097_v8  ;;  %v3026_v62 = vld [vmem:[%s4366_s21] ss:$0 sm:$0xff] }
0x1482   : > { %v2102_v2 = vsel %vm877_vm2, %v2101_v19, %v2100_v17  ;;  %v2198_v19 = vadd.f32 %v3026_v62, %v4094_v9 }
0x1483   : > { %v2103_v27 = vsel %vm882_vm3, %v2102_v2, %v2099_v47 }
0x1484   : > { %v2105_v18 = vsel %vm885_vm4, %v2103_v27, 0.0  ;;  %v2753_v17 = vmul.f32 -1.442695, %v2198_v19 }
0x1485   : > { %2106 = vadd.xlane.f32.xlu1 %v2105_v18 }
0x149e   : > { %2311 = vperm.xlu1 %2923, %v2308_v55  }
0x14f8   : > { %v2107_v56 = vpop.xlane.xlu1 %2106 }
0x14f9   : > { %3003 = vrcp.f32 %v2107_v56 }
0x14fa   : > { %3005 = vpow2.f32 %v2753_v17 }
0x14ff   : > { %v3004_v63 = vpop.eup %3003 }
0x1500   : > { %v2110_v24 = vperm.slane %v3004_v63, 0  ;;  %v2111_v10 = vperm.slane %v3004_v63, 1  ;;  %v3006_v47 = vpop.eup %3005 }
0x1501   : > { %v2204_v27 = vadd.f32 1.0, %v3006_v47 }
0x1502   : > { %v2115_v13 = vmul.f32 %v2998_v15, %v2110_v24  ;;  %v4130_v20 = vmul.f32 %v2996_v22, %v2110_v24  ;;  %v4134_v26 = vmul.f32 %v3002_v52, %v2111_v10  ;;  %v4136_v32 = vmul.f32 %v3000_v7, %v2111_v10 }
0x1503   : > { %3007 = vrcp.f32 %v2204_v27  ;;  %v2216_v55 = vand.u32 2147483648, %v2204_v27  ;;  %vm2210_vm14 = vweird.f32 %v2204_v27  ;;  %v2214_v63 = vand.u32 2147483647, %v2204_v27 }
0x1504   : > { %v2119_v29 = vpack.c.bf16 %v2115_v13, %v2115_v13  ;;  %v2118_v59 = vpack.c.bf16 %v4130_v20, %v4130_v20  ;;  %v2121_v6 = vpack.c.bf16 %v4134_v26, %v4134_v26  ;;  %v2120_v4 = vpack.c.bf16 %v4136_v32, %v4136_v32 }
0x1505   : > { %vm2215_vm5 = vcmp.eq.f32.partialorder %v2214_v63, 8.507059e+37 }
0x1506   : > { %v2125_v57 = vunpack.c.l.b16 %v2119_v29  ;;  %v2124_v28 = vunpack.c.l.b16 %v2118_v59  ;;  %v2158_v61 = vunpack.c.l.b16 %v2121_v6  ;;  %v2157_v1 = vunpack.c.l.b16 %v2120_v4  ;;  %v2754_v4 = vld [vmem:[%s3617_s8 + $0x6] sm:$0x3]  ;;  %s4330_s8 = sshll.u32 %s3364_s26, 3 }
0x1507   : > { %s2383_s10 = scalar_lea.hbm %s4368_s18, %s4330_s8 }
0x1508   : > { %v2747_v30 = vunpack.i.l.s16 %v2125_v57  ;;  %v2746_v31 = vunpack.i.l.s16 %v2124_v28  ;;  %v2750_v41 = vunpack.i.l.s16 %v2158_v61  ;;  %v2749_v45 = vunpack.i.l.s16 %v2157_v1  ;;  %s2386_s22 = sshll.u32 %s2383_s10, 4  ;;  %s2387_s22 = int_to_ptr.hbm [resolvable:$true] %s2386_s22 }
0x1509   : > { %v3008_v54 = vpop.eup %3007 }
0x150a   : > { %2133 = vperm.xlu2 %2921, %v2747_v30   ;;  %2130 = vperm.xlu0 %2922, %v2746_v31  }
0x1510   : > { %v4142_v11 = vpop.permute.xlu1 %2311 }
0x1511   : > { %v2314_v38 = vmul.f32 %v4142_v11, %v4081_v21 }
0x1512   : > { %2166 = vperm.xlu2 %2921, %v2750_v41   ;;  %2163 = vperm.xlu0 %2922, %v2749_v45   ;;  %v3027_v45 = vld [vmem:[%s4367_s17] ss:$0 sm:$0xff] }
0x1513   : > { %2316 = vrot.lane.b32.xlu1 %v2314_v38, %s3389_s30 }
0x151a   : > { %1949 = vrot.lane.b32.xlu0 %v1947_v12, %s4331_s11 }
0x151b   : > { %1603 = vperm.xlu1 %2923, %v3896_v39  }
0x1523   : > { %1974 = vperm.xlu1 %2923, %v4020_v51  }
0x152b   : > { %2345 = vperm.xlu1 %2923, %v2115_v13   ;;  %v2217_v13 = vor.u32 1.1754944e-38, %v2216_v55 }
0x1564   : > { %v2134_v53 = vpop.permute.xlu2 %2133 }
0x1565   : > { %v2136_v15 = vperm.slane %v2134_v53, %v3698_v42 }
0x156c   : > { %v2167_v16 = vpop.permute.xlu2 %2166 }
0x156d   : > { %v2169_v37 = vperm.slane %v2167_v16, %v3698_v42 }
0x157c   : > { %v2131_v22 = vpop.permute.xlu0 %2130 }
0x157d   : > { %v2135_v21 = vperm.slane %v2131_v22, %v3693_v40 }
0x157f   : > { %v2137_v7 = vsel %vm877_vm2, %v2136_v15, %v2135_v21 }
0x1580   : > { %v2138_v52 = vpack.c.b16 %v2137_v7, %v2137_v7 }
0x1582   : > { %2748 = vmatmul.msk.bf16.vlgmr.msra.gmra.mxu3 %vm970_vm6, %v2138_v52 }
0x1584   : > { %v2164_v60 = vpop.permute.xlu0 %2163 }
0x1585   : > { %v2168_v39 = vperm.slane %v2164_v60, %v3693_v40 }
0x1587   : > { %v2170_v51 = vsel %vm877_vm2, %v2169_v37, %v2168_v39 }
0x1588   : > { %v2171_v14 = vpack.c.b16 %v2170_v51, %v2170_v51 }
0x158a   : > { %2751 = vmatmul.msk.bf16.vlgmr.msrb.gmra.mxu1 %vm970_vm6, %v2171_v14  ;;  %vm2211_vm6 = vweird.f32 %v3008_v54 }
0x158b   : > { %vm2212_vm0 = vmor %vm2210_vm14, %vm2211_vm6 }
0x158c   : > { %v1950_v46 = vpop.permute.xlu0 %1949 }
0x158d   : > { %v1952_v8 = vadd.f32 %v1950_v46, %v1946_v58 }
0x158f   : > { %1959 = vrot.lane.b32.xlu2 %v1952_v8, %s3389_s30 }
0x1592   : > { %2756 = vmatmul.msk.bf16.vlgmr.msrb.gmra.mxu3 %vm808_vm1, %v4085_v23  ;;  %v2206_v23 = vmul.f32 %v3008_v54, %v2204_v27 }
0x1594   : > { %v2207_v18 = vsub.f32 1.0, %v2206_v23 }
0x1596   : > { %v2208_v3 = vmul.f32 %v3008_v54, %v2207_v18 }
0x1598   : > { %v2209_v9 = vadd.f32 %v3008_v54, %v2208_v3 }
0x159a   : > { %v2213_v10 = vsel %vm2212_vm0, %v3008_v54, %v2209_v9 }
0x159b   : > { %v2218_v59 = vsel %vm2215_vm5, %v2217_v13, %v2213_v10 }
0x15e9   : > { %v1960_v2 = vpop.permute.xlu2 %1959 }
0x15ea   : > { %1962 = vst.msk [vmem:[#allocation3] sm:$0x3] %vm1210_vm15, %v1960_v2 }
0x15f1   : > { %v4170_v48 = vld [vmem:[#allocation3] sm:$0x3] }
0x15f2   : > { %2282 = vrot.lane.b32.xlu2 %v4170_v48, %s4331_s11 }
0x15fa   : > { %1222 = vperm.xlu2 %2921, %v3724_v36  }
0x1602   : > { %1228 = vperm.xlu2 %2921, %v3722_v35  }
0x1605   : > { %v2151_v56 = vpop.f32.mrf.mxu3 }
0x1607   : > { %v2184_v24 = vpop.f32.mrf.mxu1 }
0x1608   : > { %v2222_v29 = vrot.slane %v2184_v24, 7 }
0x160a   : > { %v2223_v36 = vsel %vm882_vm3, %v2222_v29, %v2151_v56  ;;  %1594 = vperm.xlu2 %2921, %v3890_v5  }
0x160b   : > { %v2225_v57 = vmul.f32 %v2223_v36, %v2218_v59 }
0x160d   : > { %v2228_v35 = vpack.c.bf16 %v2225_v57, %v2225_v57  ;;  %v2153_v28 = vpop.f32.mrf.mxu3 }
0x160f   : > { %v2186_v30 = vpop.f32.mrf.mxu1  ;;  %2755 = vmatmul.msk.bf16.vlgmr.msrb.gmra.mxu0 %vm808_vm1, %v2228_v35 }
0x1615   : > { %v2255_v31 = vpop.f32.mrf.mxu3 }
0x161d   : > { %v2257_v6 = vpop.f32.mrf.mxu3 }
0x164c   : > { %v2283_v62 = vpop.permute.xlu2 %2282 }
0x168c   : > { %v2241_v61 = vpop.f32.mrf.mxu0 }
0x168d   : > { %v2245_v1 = vadd.f32 %v2754_v4, %v2241_v61 }
0x168f   : > { %v2259_v41 = vadd.f32 %v2255_v31, %v2245_v1 }
0x1691   : > { %v2260_v38 = vadd.f32 %v3027_v45, %v2259_v41 }
0x1693   : > { %3009 = vtanh.f32 %v2260_v38  ;;  %v2757_v53 = vmul.f32 -1.442695, %v2260_v38 }
0x1694   : > { %v2243_v12 = vpop.f32.mrf.mxu0 }
0x1695   : > { %3011 = vpow2.f32 %v2757_v53 }
0x1699   : > { %v3010_v5 = vpop.eup %3009 }
0x169a   : > { %2287 = vrot.lane.b32.xlu0 %v3010_v5, %s3390_s5 }
0x169b   : > { %v3012_v22 = vpop.eup %3011 }
0x169c   : > { %v2264_v15 = vadd.f32 1.0, %v3012_v22 }
0x169e   : > { %3013 = vrcp.f32 %v2264_v15  ;;  %v2276_v37 = vand.u32 2147483648, %v2264_v15  ;;  %vm2270_vm7 = vweird.f32 %v2264_v15  ;;  %v2274_v39 = vand.u32 2147483647, %v2264_v15 }
0x16a0   : > { %v2277_v14 = vor.u32 1.1754944e-38, %v2276_v37  ;;  %vm2275_vm9 = vcmp.eq.f32.partialorder %v2274_v39, 8.507059e+37 }
0x16a4   : > { %v3014_v21 = vpop.eup %3013 }
0x16a5   : > { %v2266_v7 = vmul.f32 %v3014_v21, %v2264_v15  ;;  %vm2271_vm1 = vweird.f32 %v3014_v21 }
0x16a6   : > { %vm2272_vm8 = vmor %vm2270_vm7, %vm2271_vm1 }
0x16a7   : > { %v2267_v52 = vsub.f32 1.0, %v2266_v7 }
0x16a9   : > { %v2268_v16 = vmul.f32 %v3014_v21, %v2267_v52 }
0x16ab   : > { %v2269_v60 = vadd.f32 %v3014_v21, %v2268_v16 }
0x16ad   : > { %v2273_v51 = vsel %vm2272_vm8, %v3014_v21, %v2269_v60 }
0x16ae   : > { %v2278_v58 = vsel %vm2275_vm9, %v2277_v14, %v2273_v51 }
0x16af   : > { %v2285_v19 = vmul.f32 %v2283_v62, %v2278_v58 }
0x170c   : > { %v2288_v46 = vpop.permute.xlu0 %2287 }
0x170d   : > { %v2290_v8 = vmul.f32 %v2288_v46, %v2278_v58 }
0x170f   : > { %2292 = vrot.lane.b32.xlu0 %v2290_v8, %s4331_s11 }
0x1717   : > { %1225 = vperm.xlu0 %2922, %v3734_v44   ;;  %v1223_v44 = vpop.permute.xlu2 %1222 }
0x171f   : > { %1231 = vperm.xlu0 %2922, %v3720_v34  }
0x1727   : > { %1597 = vperm.xlu0 %2922, %v3888_v33   ;;  %v1229_v33 = vpop.permute.xlu2 %1228 }
0x172f   : > { %2304 = vperm.xlu0 %2922, %v4127_v25   ;;  %v1595_v55 = vpop.permute.xlu2 %1594 }
0x1730   : > { %v1605_v10 = vperm.slane %v1595_v55, %v3693_v40 }
0x1737   : > { %1600 = vperm.xlu0 %2922, %v3898_v43  }
0x173f   : > { %1971 = vperm.xlu0 %2922, %v4010_v50   ;;  %v2321_v50 = vmul.f32 %v4142_v11, %v4170_v48  ;;  %v2317_v11 = vpop.permute.xlu1 %2316 }
0x1747   : > { %2342 = vperm.xlu0 %2922, %v4130_v20   ;;  %v1233_v20 = vperm.slane %v1223_v44, %v3693_v40  ;;  %v1604_v9 = vpop.permute.xlu1 %1603 }
0x1748   : > { %v1609_v24 = vperm.slane %v1604_v9, %v3698_v42 }
0x174f   : > { %2351 = vperm.xlu0 %2922, %v4134_v26   ;;  %v1236_v26 = vperm.slane %v1229_v33, %v3693_v40  ;;  %v1975_v4 = vpop.permute.xlu1 %1974 }
0x1750   : > { %v1982_v45 = vperm.slane %v1975_v4, %v3693_v40 }
0x1757   : > { %v2346_v15 = vpop.permute.xlu1 %2345 }
0x1758   : > { %v2354_v16 = vperm.slane %v2346_v15, %v3698_v42 }
0x1781   : > { %v2293_v17 = vpop.permute.xlu0 %2292 }
0x1782   : > { %v2295_v47 = vadd.f32 %v2293_v17, %v2285_v19 }
0x1784   : > { %3015 = vtanh.f32 %v2295_v47 }
0x1789   : > { %v1226_v34 = vpop.permute.xlu0 %1225 }
0x178a   : > { %v3016_v2 = vpop.eup %3015  ;;  %v1234_v43 = vperm.slane %v1226_v34, %v3698_v42 }
0x178b   : > { %2298 = vrot.lane.b32.xlu2 %v3016_v2, %s3390_s5 }
0x178c   : > { %v1235_v54 = vsel %vm877_vm2, %v1234_v43, %v1233_v20 }
0x1791   : > { %v1232_v25 = vpop.permute.xlu0 %1231 }
0x1792   : > { %v1237_v27 = vperm.slane %v1232_v25, %v3698_v42 }
0x1793   : > { %2323 = vrot.lane.b32.xlu2 %v2321_v50, %s4331_s11 }
0x1794   : > { %v1238_v23 = vsel %vm877_vm2, %v1237_v27, %v1236_v26 }
0x1795   : > { %v1239_v18 = vsel %vm882_vm3, %v1238_v23, %v1235_v54 }
0x1796   : > { %1241 = vst.msk [vmem:[%s3635_s15] sm:$0x3] %vm885_vm4, %v1239_v18 }
0x1799   : > { %v1598_v3 = vpop.permute.xlu0 %1597 }
0x179a   : > { %v1606_v56 = vperm.slane %v1598_v3, %v3698_v42 }
0x179b   : > { %1968 = vperm.xlu2 %2921, %v4012_v49  }
0x179c   : > { %v1607_v29 = vsel %vm877_vm2, %v1606_v56, %v1605_v10 }
0x17a1   : > { %v2305_v48 = vpop.permute.xlu0 %2304 }
0x17a2   : > { %v2320_v28 = vmul.f32 %v2305_v48, %v2295_v47 }
0x17a3   : > { %1977 = vperm.xlu2 %2921, %v4018_v0  }
0x17a9   : > { %v1601_v63 = vpop.permute.xlu0 %1600 }
0x17aa   : > { %v1608_v13 = vperm.slane %v1601_v63, %v3693_v40 }
0x17ab   : > { %2348 = vperm.xlu2 %2921, %v4136_v32  }
0x17ac   : > { %v1610_v49 = vsel %vm877_vm2, %v1609_v24, %v1608_v13 }
0x17ad   : > { %v1611_v59 = vsel %vm882_vm3, %v1610_v49, %v1607_v29 }
0x17ae   : > { %2726 = vst.msk [vmem:[%s3635_s15 + $0x2] sm:$0x3] %vm885_vm4, %v1611_v59 }
0x17b1   : > { %v1972_v32 = vpop.permute.xlu0 %1971 }
0x17b2   : > { %v1980_v38 = vperm.slane %v1972_v32, %v3698_v42 }
0x17b9   : > { %v2343_v61 = vpop.permute.xlu0 %2342 }
0x17ba   : > { %v2353_v7 = vperm.slane %v2343_v61, %v3693_v40 }
0x17bc   : > { %v2355_v39 = vsel %vm877_vm2, %v2354_v16, %v2353_v7 }
0x17c1   : > { %v2352_v21 = vpop.permute.xlu0 %2351 }
0x17c2   : > { %v2357_v60 = vperm.slane %v2352_v21, %v3698_v42 }
0x17e5   : > { %v2299_v0 = vpop.permute.xlu2 %2298 }
0x17e6   : > { %v2301_v36 = vmul.f32 %v2299_v0, %v2278_v58 }
0x17e8   : > { %v2307_v57 = vmul.f32 %v2305_v48, %v2301_v36 }
0x17ea   : > { %v2319_v35 = vadd.f32 %v2317_v11, %v2307_v57 }
0x17ec   : > { %2328 = vrot.lane.b32.xlu1 %v2319_v35, %s4331_s11  ;;  %s3258_s11 = scalar_lea.hbm %s4368_s18, 16 }
0x17ed   : > { %v2324_v30 = vpop.permute.xlu2 %2323 }
0x17ee   : > { %v2326_v31 = vadd.f32 %v2324_v30, %v2320_v28 }
0x17f0   : > { %2333 = vrot.lane.b32.xlu2 %v2326_v31, %s3389_s30  ;;  %s3252_s30 = sshra.s32 %s2387_s22, 4  ;;  %s3253_s30 = int_to_ptr.hbm [resolvable:$true] %s3252_s30 }
0x17f1   : > { %s3254_s5 = scalar_lea.hbm %s3253_s30, 8  ;;  %p3259_p11 = scmp.lt.s32.totalorder %s3253_s30, %s4368_s18 }
0x17f2   : > { %p3255_p1 = scmp.ne.s32.totalorder %s3253_s30, %s3254_s5  ;;  %p3260_p12 = scmp.lt.s32.totalorder %s3258_s11, %s3254_s5 }
0x17f4   : > { %p3256_p9 = pnand %p3255_p1, %p3582_p2  ;;  %p3261_p13 = por %p3260_p12, %p3259_p11 }
0x17f5   : > { %v1969_v6 = vpop.permute.xlu2 %1968 }
0x17f6   : > { %v1979_v1 = vperm.slane %v1969_v6, %v3693_v40  ;;  %p3257_p10 = pneg %p3256_p9 }
0x17f8   : > { %v1981_v5 = vsel %vm877_vm2, %v1980_v38, %v1979_v1  ;;  %p3262_p0 = pnand %p3261_p13, %p3257_p10 }
0x17fd   : > { %v1978_v41 = vpop.permute.xlu2 %1977 }
0x17fe   : > { %v1983_v12 = vperm.slane %v1978_v41, %v3698_v42 }
0x1800   : > { %v1984_v53 = vsel %vm877_vm2, %v1983_v12, %v1982_v45 }
0x1801   : > { %v1985_v22 = vsel %vm882_vm3, %v1984_v53, %v1981_v5 }
0x1802   : > { %2742 = vst.msk [vmem:[%s3635_s15 + $0x4] sm:$0x3] %vm885_vm4, %v1985_v22 }
0x1805   : > { %v2349_v52 = vpop.permute.xlu2 %2348 }
0x1806   : > { %v2356_v37 = vperm.slane %v2349_v52, %v3693_v40 }
0x1808   : > { %v2358_v51 = vsel %vm877_vm2, %v2357_v60, %v2356_v37 }
0x1809   : > { %v2359_v14 = vsel %vm882_vm3, %v2358_v51, %v2355_v39 }
0x180a   : > { %2758 = vst.msk [vmem:[%s3635_s15 + $0x6] sm:$0x3] %vm885_vm4, %v2359_v14 }
0x180b   : > { %3265 = shalt.err (!%p3262_p0)
}
0x180c   : > { %s3391_s15 = smov 2   ;;  %s4369_s7 = smov 32  }
0x180d   : > { %2807 = dma.vmem_to_hbm [thread:$0]  (%p3582_p2), %s2385_s28, 128, %s2387_s22, %s2366_s0, %s4369_s7, %s4369_s7, %s3391_s15  }
0x180e   : > { %s4370_s3 = sshll.u32 %s3364_s26, 3  ;;  %s4371_s8 = sld [smem:[#allocation42_spill]] }
0x180f   : > { %s2402_s5 = sshll.u32 %s3637_s2, 4  ;;  %s2371_s12 = scalar_lea.sflag [#allocation19], %s3614_s6  ;;  %s2403_s5 = int_to_ptr.vmem [resolvable:$true] %s2402_s5 }
0x1814   : > { %s2401_s30 = scalar_lea.hbm %s4371_s8, %s4370_s3  ;;  %s3286_s3 = scalar_lea.hbm %s4371_s8, 16 }
0x1815   : > { %s2404_s10 = sshll.u32 %s2401_s30, 4  ;;  %s2405_s10 = int_to_ptr.hbm [resolvable:$true] %s2404_s10 }
0x1816   : > { %s3280_s28 = sshra.s32 %s2405_s10, 4  ;;  %s3281_s28 = int_to_ptr.hbm [resolvable:$true] %s3280_s28 }
0x1817   : > { %s3282_s22 = scalar_lea.hbm %s3281_s28, 8  ;;  %p3287_p3 = scmp.lt.s32.totalorder %s3281_s28, %s4371_s8 }
0x1818   : > { %p3283_p4 = scmp.ne.s32.totalorder %s3281_s28, %s3282_s22  ;;  %p3288_p1 = scmp.lt.s32.totalorder %s3286_s3, %s3282_s22 }
0x181a   : > { %p3284_p7 = pnand %p3283_p4, %p3582_p2  ;;  %p3289_p9 = por %p3288_p1, %p3287_p3 }
0x181c   : > { %p3285_p8 = pneg %p3284_p7 }
0x181e   : > { %p3290_p10 = pnand %p3289_p9, %p3285_p8 }
0x184a   : > { %v2334_v40 = vpop.permute.xlu2 %2333 }
0x184b   : > { %2336 = vst.msk [vmem:[#allocation3] sm:$0x3] %vm1210_vm15, %v2334_v40 }
0x185e   : > { %v2329_v42 = vpop.permute.xlu1 %2328 }
0x185f   : > { %2331 = vst.msk [vmem:[#allocation2] sm:$0x3] %vm1210_vm15, %v2329_v42 }
0x1860   : > { %2759 = vst.msk [vmem:[%s3637_s2 + $0x6] sm:$0x3] %vm1210_vm15, %v2329_v42 }
0x1861   : > { %3293 = shalt.err (!%p3290_p10)
}
0x1862   : > { %2808 = dma.vmem_to_hbm [thread:$0]  (%p3582_p2), %s2403_s5, 128, %s2405_s10, %s2371_s12, %s4369_s7, %s4369_s7, %s3391_s15  }
0x1863 PF: > { %s2419_s6 = sand.u32 1, %s3352_s23   ;;  %p2835_p11 = pnand %p2643_p6, %p3589_p5 }
0x1864   : > { %s2420_s2 = scalar_lea.sflag [#allocation7], %s2419_s6 }
0x1865   : > { %p2836_p12 = pneg %p2835_p11 }
0x1867   : > { %3343 = dma.done.wait (%p2836_p12), %s2420_s2, 128  }
0x1868   : > { %3345 = vsyncadd (%p2836_p12), %s2420_s2, 4294967168  ;;  %s2430_s30 = scalar_lea.sflag [#allocation19], %s2419_s6 }
0x1869   : > { %3347 = dma.done.wait (%p2836_p12), %s2430_s30, 128  }
0x186a   : > { %3349 = vsyncadd (%p2836_p12), %s2430_s30, 4294967168  ;;  %s39_s9 = sadd.s32 1, %s3372_s9   ;;  %s4372_s23 = smov %s3356_s24 }
0x186b   : > { %p36_p13 = scmp.ge.s32.totalorder %s39_s9, 4   ;;  %s4373_s24 = smov %s3360_s25 }
0x186c   : > { %s4374_s25 = smov %s3587_s19  ;;  %s4375_s26 = smov %s3368_s27 }
0x186d   : > { %s4376_s27 = smov %s4378_s1  ;;  %38 = sbr.rel (!%p36_p13) target bundleno = 26 (0x1a), region = 189 }
0x1872   :  { %2436 = vsyncpa [#allocation6], 1 }
0x1873   :  { %2438 = vsyncpa [#allocation6 + $0x1], 1 }
0x1874   :  { %2439 = vsyncpa [#allocation9], 1 }
0x1875   :  { %2440 = vsyncpa [#allocation13], 1 }
0x1876   :  { %2441 = vsyncpa [#allocation16], 1 }
0x1877   :  { %2442 = vsyncpa [#allocation7], 1 }
0x1878   :  { %2444 = vsyncpa [#allocation7 + $0x1], 1 }
0x1879   :  { %2445 = vsyncpa [#allocation19], 1 }
0x187a   :  { %2447 = vsyncpa [#allocation19 + $0x1], 1 }

// kernel: tpu_custom_call.1
= control target key start
LH: loop header
LB: loop body
LE: loop exit
PB: predicated region body
PF: predicated region fallthrough
CT: control target
= control target key end

     0   :  { %s3992_s0 = inlined_call_operand.vmem [shape: s32[2,1], index: 0, kind: input, shape index: {}]   ;;  %s3993_s1 = inlined_call_operand.hbm [shape: f32[2,16,32], index: 1, kind: input, shape index: {}]   ;;  %s3994_s2 = inlined_call_operand.hbm [shape: bf16[2,16,32], index: 2, kind: input, shape index: {}]   ;;  %s3995_s3 = inlined_call_operand.hbm [shape: f32[8,2,128], index: 3, kind: input, shape index: {}]   ;;  %s3996_s4 = inlined_call_operand.vmem [shape: f32[2,32], index: 4, kind: input, shape index: {}]   ;;  %s3997_s5 = inlined_call_operand.vmem [shape: f32[2,32], index: 5, kind: input, shape index: {}]   ;;  %s3998_s6 = inlined_call_operand.hbm [shape: bf16[32,32], index: 6, kind: input, shape index: {}]   ;;  %s3999_s7 = inlined_call_operand.vmem [shape: f32[1,32], index: 7, kind: input, shape index: {}]   ;;  %s4000_s8 = inlined_call_operand.vmem [shape: f32[1,32], index: 8, kind: input, shape index: {}]   ;;  %s4001_s9 = inlined_call_operand.<no memory space> [shape: f32[1,1], index: 9, kind: input, shape index: {}]   ;;  %s4002_s10 = inlined_call_operand.hbm [shape: bf16[32,32], index: 10, kind: input, shape index: {}]   ;;  %s4003_s11 = inlined_call_operand.vmem [shape: f32[1,32], index: 11, kind: input, shape index: {}]   ;;  %s4004_s12 = inlined_call_operand.hbm [shape: bf16[32,128], index: 12, kind: input, shape index: {}]   ;;  %s4005_s13 = inlined_call_operand.hbm [shape: bf16[32,128], index: 13, kind: input, shape index: {}]   ;;  %s4006_s14 = inlined_call_operand.vmem [shape: f32[1,128], index: 14, kind: input, shape index: {}]   ;;  %s4007_s15 = inlined_call_operand.hbm [shape: f32[8,2,16], index: 15, kind: output, shape index: {0}]   ;;  %s4008_s16 = inlined_call_operand.hbm [shape: f32[8,2,32], index: 16, kind: output, shape index: {1}]  }
   0x1   :  { %4020 = sst [smem:[#allocation28_spill]] %s3992_s0  ;;  %v22_v0 = vstv %s4001_s9 }
   0x2   :  { %4021 = sst [smem:[#allocation29_spill]] %s3993_s1  ;;  %23 = vst [vmem:[#allocation4] sm:$0x1] %v22_v0 }
   0x3   :  { %4022 = sst [smem:[#allocation30_spill]] %s3994_s2 }
   0x4   :  { %4023 = sst [smem:[#allocation31_spill]] %s3995_s3 }
   0x5   :  { %4024 = sst [smem:[#allocation32_spill]] %s3996_s4 }
   0x6   :  { %4025 = sst [smem:[#allocation33_spill]] %s3997_s5 }
   0x7   :  { %4026 = sst [smem:[#allocation34_spill]] %s3998_s6 }
   0x8   :  { %4027 = sst [smem:[#allocation35_spill]] %s3999_s7 }
   0x9   :  { %4028 = sst [smem:[#allocation36_spill]] %s4000_s8 }
   0xa   :  { %4029 = sst [smem:[#allocation37_spill]] %s4002_s10 }
   0xb   :  { %4030 = sst [smem:[#allocation38_spill]] %s4003_s11 }
   0xc   :  { %4031 = sst [smem:[#allocation39_spill]] %s4004_s12 }
   0xd   :  { %4032 = sst [smem:[#allocation40_spill]] %s4005_s13 }
   0xe   :  { %4033 = sst [smem:[#allocation41_spill]] %s4006_s14 }
   0xf   :  { %4034 = sst [smem:[#allocation42_spill]] %s4007_s15 }
  0x10   :  { %4035 = sst [smem:[#allocation43_spill]] %s4008_s16 }
  0x11   :  { %24 = vsyncpa [#allocation6], 0 }
  0x12   :  { %25 = vsyncpa [#allocation9], 0 }
  0x13   :  { %26 = vsyncpa [#allocation13], 0 }
  0x14   :  { %27 = vsyncpa [#allocation16], 0 }
  0x15   :  { %28 = vsyncpa [#allocation7], 0 }
  0x16   :  { %30 = vsyncpa [#allocation7 + $0x1], 0 }
  0x17   :  { %31 = vsyncpa [#allocation19], 0 }
  0x18   :  { %33 = vsyncpa [#allocation19 + $0x1], 0  ;;  %s3264_s23 = smov 0   ;;  %s3266_s24 = smov 0  }
  0x19   :  { %s3268_s25 = smov 0   ;;  %s3270_s26 = smov 0  }
  0x1a   :  { %s3272_s27 = smov 0   ;;  %s3274_s9 = smov 0  }
  0x1b LB: > { %s3295_s28 = sadd.s32 4294967295, %s3156_s9   ;;  %p2444_p0 = scmp.ge.s32.totalorder %s3156_s9, 1  ;;  %s3156_s9 = sphi %s3274_s9, %s39_s9   ;;  %s3152_s27 = sphi %s3272_s27, %s4063_s27   ;;  %s3148_s26 = sphi %s3270_s26, %s4062_s26   ;;  %s3144_s25 = sphi %s3268_s25, %s4061_s25   ;;  %s3140_s24 = sphi %s3266_s24, %s4060_s24   ;;  %s3136_s23 = sphi %s3264_s23, %s4059_s23  }
  0x1c   : > { %p152_p1 = scmp.eq.s32.totalorder %s3295_s28, 0  ;;  %p459_p2 = scmp.lt.s32.totalorder %s3156_s9, 3 }
  0x1d   : > { %s4036_s1 = sld [smem:[#allocation29_spill]]  ;;  %s3158_s18 = smov [#allocation5]  }
  0x1e   : > { %p3303_p3 = pnand %p2444_p0, %p459_p2  ;;  %s483_s19 = sshll.u32 %s3158_s18, 4  ;;  %s484_s19 = int_to_ptr.vmem [resolvable:$true] %s483_s19 }
  0x1f   : > { %p2454_p6 = scmp.ge.s32.totalorder %s3156_s9, 2  ;;  %s4039_s2 = sld [smem:[#allocation30_spill]] }
  0x20   : > { %p2597_p4 = pneg %p3303_p3  ;;  %s3159_s30 = smov 128  }
  0x21   : > { %s3161_s18 = smov [#allocation8]   ;;  %s3162_s15 = smov 64  }
  0x22   : > { %p3311_p5 = pnand %p2597_p4, %p152_p1  ;;  %s501_s16 = sshll.u32 %s3161_s18, 4  ;;  %s502_s16 = int_to_ptr.vmem [resolvable:$true] %s501_s16 }
  0x23   : > { %s481_s0 = sshll.u32 %s4036_s1, 4  ;;  %s3160_s1 = smov 8   ;;  %s482_s0 = int_to_ptr.hbm [resolvable:$true] %s481_s0 }
  0x24   : > { %2600 = dma.hbm_to_vmem [thread:$0]  (!%p3311_p5), %s482_s0, 512, %s484_s19, [#allocation6], %s3159_s30, %s3159_s30, %s3160_s1  }
  0x25   : > { %s499_s29 = sshll.u32 %s4039_s2, 4  ;;  %s3163_s14 = smov 4   ;;  %s500_s29 = int_to_ptr.hbm [resolvable:$true] %s499_s29 }
  0x26   : > { %2603 = dma.hbm_to_vmem [thread:$0]  (!%p3311_p5), %s500_s29, 256, %s502_s16, [#allocation9], %s3162_s15, %s3162_s15, %s3163_s14  }
  0x27   : > { %s4040_s10 = sld [smem:[#allocation37_spill]]  ;;  %s3164_s21 = smov [#allocation12]  }
  0x28   : > { %s552_s22 = sshll.u32 %s3164_s21, 4  ;;  %s4041_s6 = sld [smem:[#allocation34_spill]]  ;;  %s553_s22 = int_to_ptr.vmem [resolvable:$true] %s552_s22 }
  0x29   : > { %s3165_s0 = smov [#allocation11]   ;;  %s4042_s12 = sld [smem:[#allocation39_spill]] }
  0x2a   : > { %s529_s16 = sshll.u32 %s3165_s0, 4  ;;  %s4043_s13 = sld [smem:[#allocation40_spill]]  ;;  %s530_s16 = int_to_ptr.vmem [resolvable:$true] %s529_s16 }
  0x2b   : > { %s3166_s11 = smov [#allocation14]   ;;  %s3167_s18 = smov [#allocation15]  }
  0x2c   : > { %s569_s30 = sshll.u32 %s3166_s11, 4  ;;  %s583_s21 = sshll.u32 %s3167_s18, 4  ;;  %s570_s30 = int_to_ptr.vmem [resolvable:$true] %s569_s30  ;;  %s584_s21 = int_to_ptr.vmem [resolvable:$true] %s583_s21 }
  0x2d   : > { %s550_s7 = sshll.u32 %s4040_s10, 4  ;;  %s138_s0 = sadd.s32 1, %s3144_s25  ;;  %s551_s7 = int_to_ptr.hbm [resolvable:$true] %s550_s7 }
  0x2e   : > { %s527_s1 = sshll.u32 %s4041_s6, 4  ;;  %p145_p8 = scmp.ne.s32.totalorder %s3144_s25, %s3140_s24  ;;  %s528_s1 = int_to_ptr.hbm [resolvable:$true] %s527_s1 }
  0x2f   : > { %2609 = dma.hbm_to_vmem [thread:$0]  (!%p3311_p5), %s551_s7, 256, %s553_s22, [#allocation13], %s3162_s15, %s3162_s15, %s3163_s14  }
  0x30   : > { %s567_s8 = sshll.u32 %s4042_s12, 4  ;;  %s581_s7 = sshll.u32 %s4043_s13, 4  ;;  %s568_s8 = int_to_ptr.hbm [resolvable:$true] %s567_s8  ;;  %s582_s7 = int_to_ptr.hbm [resolvable:$true] %s581_s7 }
  0x31   : > { %2606 = dma.hbm_to_vmem [thread:$0]  (!%p3311_p5), %s528_s1, 256, %s530_s16, [#allocation9], %s3162_s15, %s3162_s15, %s3163_s14  }
  0x32   : > { %2612 = dma.hbm_to_vmem [thread:$0]  (!%p3311_p5), %s568_s8, 256, %s570_s30, [#allocation13], %s3162_s15, %s3162_s15, %s3163_s14  }
  0x33   : > { %2615 = dma.hbm_to_vmem [thread:$0]  (!%p3311_p5), %s582_s7, 256, %s584_s21, [#allocation16], %s3162_s15, %s3162_s15, %s3163_s14  }
  0x34   : > { %s2443_s22 = sadd.s32 4294967294, %s3156_s9   ;;  %s48_s1 = sadd.s32 1, %s3152_s27 }
  0x35   : > { %p49_p7 = scmp.ge.s32.totalorder %s48_s1, 2  ;;  %p146_p9 = scmp.eq.s32.totalorder %s3156_s9, 0 }
  0x36   : > { %p151_p11 = scmp.ne.s32.totalorder %s3140_s24, %s3136_s23  ;;  %p418_p12 = scmp.eq.s32.totalorder %s3295_s28, 1 }
  0x37   : > { %s4065_s1 = smov (%p49_p7, %s48_s1), 0  ;;  %p3351_p10 = por %p146_p9, %p145_p8 }
  0x38   : > { %s133_s14 = ssub.s32 %s3152_s27, %s4065_s1  ;;  %p3362_p0 = por %p152_p1, %p151_p11 }
  0x39   : > { %p136_p13 = scmp.eq.s32.totalorder %s133_s14, 0  ;;  %p3366_p2 = por %p418_p12, %p145_p8 }
  0x3a   : > { %p424_p4 = scmp.eq.s32.totalorder %s2443_s22, 1  ;;  %p2633_p7 = scmp.lt.s32.totalorder %s3156_s9, 2 }
  0x3b   : > { %s3371_s19 = scalar_select %p136_p13, %s3144_s25, %s138_s0  }
  0x3c   : > { %p3373_p5 = por %p424_p4, %p151_p11  ;;  %s600_s8 = sand.u32 1, %s3156_s9  }
  0x3d   : > { %s602_s2 = sand.u32 1, %s3144_s25   ;;  %s2547_s7 = sshll.u32 %s3152_s27, 3 }
  0x3e   : > { %s2455_s5 = sshll.u32 %s602_s2, 3  ;;  %s4048_s3 = sld [smem:[#allocation31_spill]] }
  0x3f   : > { %s604_s21 = scalar_lea.vmem [#allocation10], %s2455_s5  ;;  %p2617_p8 = pnand %p2633_p7, %p3351_p10 }
  0x40   : > { %s613_s14 = sshll.u32 %s604_s21, 4  ;;  %s601_s22 = scalar_lea.sflag [#allocation6], %s600_s8  ;;  %s614_s14 = int_to_ptr.vmem [resolvable:$true] %s613_s14 }
  0x41   : > { %s3168_s0 = smov 32   ;;  %s3169_s10 = smov 2  }
  0x42   : > { %625 = sbr.rel (%p3303_p3) target bundleno = 5783 (0x1697), region = 80 }
  0x44   : > { %s610_s18 = scalar_lea.hbm %s4048_s3, %s2547_s7 }
  0x45   : > { %s611_s6 = sshll.u32 %s610_s18, 4  ;;  %s612_s6 = int_to_ptr.hbm [resolvable:$true] %s611_s6 }
  0x46   : > { %2619 = dma.hbm_to_vmem [thread:$0]  (!%p2617_p8), %s612_s6, 128, %s614_s14, %s601_s22, %s3168_s0, %s3168_s0, %s3169_s10  }
  0x47   : > { %3103 = dma.done.wait (%p152_p1), [#allocation6], 512  }
  0x48   : > { %3105 = vsyncadd (%p152_p1), [#allocation6], 4294966784 }
  0x49   : > { %3107 = dma.done.wait (%p152_p1), [#allocation9], 256  }
  0x4a   : > { %3109 = vsyncadd (%p152_p1), [#allocation9], 4294967040  ;;  %s637_s16 = sand.u32 1, %s3295_s28   ;;  %s3398_s6 = sand.u32 1, %s3140_s24  }
  0x4b   : > { %s2461_s10 = sshll.u32 %s3398_s6, 3  ;;  %s638_s17 = scalar_lea.sflag [#allocation6], %s637_s16 }
  0x4c   : > { %s3401_s8 = scalar_lea.vmem [#allocation10], %s2461_s10 }
  0x4d   : > { %3111 = dma.done.wait (%p3362_p0), %s638_s17, 128  }
  0x4e   : > { %3113 = vsyncadd (%p3362_p0), %s638_s17, 4294967168 }
  0x4f   : > { %3115 = dma.done.wait (%p152_p1), [#allocation9], 256  }
  0x50   : > { %3117 = vsyncadd (%p152_p1), [#allocation9], 4294967040 }
  0x51   : > { %3119 = dma.done.wait (%p152_p1), [#allocation13], 512  }
  0x52   : > { %3121 = vsyncadd (%p152_p1), [#allocation13], 4294966784 }
  0x53   : > { %3123 = dma.done.wait (%p152_p1), [#allocation16], 256  }
  0x54   : > { %3125 = vsyncadd (%p152_p1), [#allocation16], 4294967040  ;;  %s3419_s15 = scalar_lea.vmem [#allocation17], %s2461_s10  ;;  %s3421_s2 = scalar_lea.vmem [#allocation18], %s2461_s10 }
  0x55   : > { %p2468_p3 = scmp.ne.s32.totalorder %s3148_s26, 0 }
  0x56   : > { %s4049_s4 = sld [smem:[#allocation32_spill]] (!%p2468_p3) }
  0x57   : > { %749 = sbr.rel (%p2468_p3) target bundleno = 95 (0x5f), region = 112  ;;  %s4050_s18 = sld [smem:[#allocation33_spill]] (!%p2468_p3) }
  0x5c   : > { %v750_v1 = vld [vmem:[%s4049_s4] sm:$0x3]  ;;  %vm751_vm0 = vcmask 254976  }
  0x5d   : > { %v753_v2 = vld [vmem:[%s4050_s18] sm:$0x3]  ;;  %752 = vst.msk [vmem:[#allocation2] sm:$0x3] %vm751_vm0, %v750_v1 }
  0x5e   : > { %754 = vst.msk [vmem:[#allocation3] sm:$0x3] %vm751_vm0, %v753_v2 }
  0x5f PF: > { %v3430_v3 = vld [vmem:[#allocation11 + $0x8] sm:$0xff]  ;;  %v3432_v4 = vld [vmem:[#allocation11] sm:$0xff]  ;;  %vm808_vm1 = vcmask 261120   ;;  %v2712_v7 = vld [vmem:[#allocation4] ss:$0 sm:$0xff]  ;;  %v3170_v8 = vmov 0   ;;  %v872_v38 = vlaneseq }
  0x60   : > { %818 = vmatpush.bf16.msra.mxu0 %v3430_v3  ;;  %2707 = vset.pattern.permute.xlu2 %v3170_v8  ;;  %s4051_s14 = sld [smem:[#allocation35_spill]]  ;;  %v3454_v12 = vld [vmem:[#allocation5] sm:$0xff]  ;;  %v3456_v15 = vld [vmem:[#allocation5 + $0x8] sm:$0xff]  ;;  %v3458_v16 = vld [vmem:[#allocation5 + $0x10] sm:$0xff]  ;;  %vm877_vm2 = vcmask 130112   ;;  %vm882_vm3 = vcmask 1041409  }
  0x61   : > { %2709 = vset.pattern.permute.xlu1 %v3170_v8  ;;  %861 = vperm.xlu2 %2707, %v2712_v7   ;;  %s4052_s16 = sld [smem:[#allocation36_spill]]  ;;  %v3466_v20 = vld [vmem:[#allocation5 + $0x18] sm:$0xff]  ;;  %v3479_v40 = vand.u32 127, %v872_v38  ;;  %vm885_vm4 = vcmask 123904   ;;  %s3519_s10 = sshll.u32 %s3148_s26, 2  ;;  %vm1172_vm14 = vcmask 254976  }
  0x62   : > { %2708 = vset.pattern.permute.xlu0 %v3170_v8  ;;  %s4053_s7 = sld [smem:[#allocation28_spill]]  ;;  %s4016_s11 = smov 32  }
  0x63   : > { %v3484_v42 = vadd.s32 4294967288, %v3479_v40  ;;  %s4054_s28 = sld [smem:[#allocation38_spill]]  ;;  %s3173_s21 = smov 96  }
  0x64   : > { %v3434_v5 = vld [vmem:[#allocation2] sm:$0x3]  ;;  %819 = vmatpush.bf16.msra.mxu0 %v3432_v4  ;;  %s4055_s17 = sld [smem:[#allocation41_spill]]  ;;  %s3174_s5 = smov 64  }
  0x65   : > { %v3439_v6 = vpack.c.bf16 %v3434_v5, %v3434_v5  ;;  %s1189_s30 = sadd.s32 1, %s3519_s10  ;;  %s1518_s0 = sadd.s32 2, %s3519_s10 }
  0x66   : > { %v3451_v9 = vld [vmem:[%s4051_s14] ss:$0 sm:$0xff]  ;;  %s1847_s22 = sadd.s32 3, %s3519_s10  ;;  %s2177_s3 = scalar_lea.sflag [#allocation7], %s3398_s6 }
  0x67   : > { %2479 = vmatmul.msk.bf16.vlgmr.msra.gmra.mxu0 %vm808_vm1, %v3439_v6  ;;  %v3464_v19 = vld [vmem:[%s4052_s16] ss:$0 sm:$0xff] }
  0x68   : > { %1206 = vmatpush.bf16.msrb.mxu0 %v3430_v3 }
  0x6c   : > { %1207 = vmatpush.bf16.msrb.mxu0 %v3432_v4 }
  0x70   : > { %1535 = vmatpush.bf16.msra.mxu0 %v3430_v3 }
  0x74   : > { %1536 = vmatpush.bf16.msra.mxu0 %v3432_v4 }
  0xbb   : > { %v3481_v41 = vpop.permute.xlu2 %861 }
  0xe4   : > { %v821_v10 = vpop.f32.mrf.mxu0 }
  0xe5   : > { %v822_v11 = vadd.f32 %v3451_v9, %v821_v10 }
  0xe7   : > { %v826_v13 = vrot.slane %v822_v11, 1  ;;  %v827_v14 = vperm.slane %v822_v11, 0 }
  0xe9   : > { %v828_v17 = vperm.slane %v826_v13, 0  ;;  %v831_v18 = vadd.f32 %v827_v14, %v3454_v12  ;;  %v832_v21 = vadd.f32 %v827_v14, %v3456_v15  ;;  %v3498_v14 = vld [vmem:[#allocation12 + $0x8] sm:$0xff] }
  0xea   : > { %1010 = vmatpush.bf16.msra.mxu1 %v3498_v14 }
  0xeb   : > { %v835_v22 = vmax.f32 %v831_v18, 0.0  ;;  %v833_v23 = vadd.f32 %v828_v17, %v3458_v16  ;;  %v834_v27 = vadd.f32 %v828_v17, %v3466_v20  ;;  %v836_v30 = vmax.f32 %v832_v21, 0.0  ;;  %v3501_v17 = vld [vmem:[#allocation12] sm:$0xff] }
  0xec   : > { %v823_v24 = vpop.f32.mrf.mxu0 }
  0xed   : > { %v842_v25 = vmul.f32 %v3464_v19, %v835_v22  ;;  %v837_v26 = vmax.f32 %v833_v23, 0.0  ;;  %v838_v32 = vmax.f32 %v834_v27, 0.0  ;;  %v843_v33 = vmul.f32 %v3464_v19, %v836_v30 }
  0xee   : > { %1011 = vmatpush.bf16.msra.mxu1 %v3501_v17 }
  0xef   : > { %v846_v28 = vsel %vm808_vm1, %v842_v25, 0.0  ;;  %v844_v29 = vmul.f32 %v3464_v19, %v837_v26  ;;  %v845_v34 = vmul.f32 %v3464_v19, %v838_v32  ;;  %v849_v35 = vsel %vm808_vm1, %v843_v33, 0.0 }
  0xf0   : > { %847 = vadd.xlane.f32.xlu0 %v846_v28 }
  0xf1   : > { %v852_v31 = vsel %vm808_vm1, %v844_v29, 0.0  ;;  %v855_v36 = vsel %vm808_vm1, %v845_v34, 0.0  ;;  %2488 = vmatmul.msk.bf16.vlgmr.msra.gmra.mxu1 %vm808_vm1, %v3439_v6 }
  0xf2   : > { %853 = vadd.xlane.f32.xlu1 %v852_v31  ;;  %1364 = vmatpush.bf16.msrb.mxu1 %v3498_v14 }
  0xf6   : > { %1365 = vmatpush.bf16.msrb.mxu1 %v3501_v17 }
  0xf8   : > { %850 = vadd.xlane.f32.xlu0 %v849_v35 }
  0xfa   : > { %856 = vadd.xlane.f32.xlu1 %v855_v36  ;;  %1693 = vmatpush.bf16.msra.mxu1 %v3498_v14 }
  0xfe   : > { %1694 = vmatpush.bf16.msra.mxu1 %v3501_v17 }
 0x163   : > { %v848_v37 = vpop.xlane.xlu0 %847 }
 0x164   : > { %v864_v44 = vadd.f32 %v3481_v41, %v848_v37 }
 0x165   : > { %v854_v39 = vpop.xlane.xlu1 %853 }
 0x166   : > { %v866_v45 = vadd.f32 %v3481_v41, %v854_v39  ;;  %v874_v50 = vperm.slane %v864_v44, %v3479_v40  ;;  %v3524_v39 = vld [vmem:[%s4053_s7] sm:$0x3] }
 0x168   : > { %v879_v51 = vperm.slane %v866_v45, %v3479_v40 }
 0x16b   : > { %v851_v43 = vpop.xlane.xlu0 %850 }
 0x16c   : > { %v865_v46 = vadd.f32 %v3481_v41, %v851_v43  ;;  %v786_v43 = vstv %s3519_s10 }
 0x16d   : > { %v857_v47 = vpop.xlane.xlu1 %856  ;;  %vm787_vm5 = vcmp.gt.s32.totalorder %v3524_v39, %v786_v43 }
 0x16e   : > { %v876_v48 = vperm.slane %v865_v46, %v3484_v42  ;;  %v867_v49 = vadd.f32 %v3481_v41, %v857_v47  ;;  %v3529_v47 = vld [vmem:[#allocation3] sm:$0x3] }
 0x170   : > { %v880_v52 = vperm.slane %v867_v49, %v3484_v42  ;;  %v878_v53 = vsel %vm877_vm2, %v876_v48, %v874_v50 }
 0x172   : > { %v881_v54 = vsel %vm877_vm2, %v880_v52, %v879_v51  ;;  %v3536_v51 = vld [vmem:[%s4054_s28] ss:$0 sm:$0xff] }
 0x173   : > { %v883_v55 = vsel %vm882_vm3, %v881_v54, %v878_v53  ;;  %v3539_v54 = vld [vmem:[#allocation15 + $0x8] sm:$0xff] }
 0x174   : > { %v886_v56 = vsel %vm885_vm4, %v883_v55, -inf  ;;  %1090 = vmatpush.bf16.msra.mxu3 %v3539_v54  ;;  %v3542_v55 = vld [vmem:[#allocation15] sm:$0xff] }
 0x175   : > { %887 = vmax.xlane.f32.xlu2 %v886_v56 }
 0x178   : > { %1091 = vmatpush.bf16.msra.mxu3 %v3542_v55 }
 0x17b   : > { %2507 = vmatmul.msk.bf16.vlgmr.msra.gmra.mxu3 %vm808_vm1, %v3439_v6 }
 0x17c   : > { %1421 = vmatpush.bf16.msrb.mxu3 %v3539_v54 }
 0x180   : > { %1422 = vmatpush.bf16.msrb.mxu3 %v3542_v55 }
 0x184   : > { %1750 = vmatpush.bf16.msra.mxu3 %v3539_v54 }
 0x188   : > { %1751 = vmatpush.bf16.msra.mxu3 %v3542_v55 }
 0x1e8   : > { %v888_v57 = vpop.xlane.xlu2 %887 }
 0x1e9   : > { %v890_v58 = vperm.slane %v888_v57, 0  ;;  %v891_v61 = vperm.slane %v888_v57, 1  ;;  %v3544_v57 = vld [vmem:[#allocation14 + $0x8] sm:$0xff] }
 0x1ea   : > { %1064 = vmatpush.bf16.msra.mxu2 %v3544_v57 }
 0x1eb   : > { %v894_v59 = vsub.f32 %v864_v44, %v890_v58  ;;  %v895_v60 = vsub.f32 %v865_v46, %v890_v58  ;;  %v896_v0 = vsub.f32 %v866_v45, %v891_v61  ;;  %v897_v8 = vsub.f32 %v867_v49, %v891_v61  ;;  %v1013_v49 = vpop.f32.mrf.mxu1 }
 0x1ec   : > { %v3171_v44 = vmov 0.0   ;;  %v1014_v52 = vadd.f32 %v3536_v51, %v1013_v49 }
 0x1ed   : > { %v898_v62 = vmul.f32 1.442695, %v894_v59  ;;  %v900_v63 = vmul.f32 1.442695, %v895_v60  ;;  %v902_v1 = vmul.f32 1.442695, %v896_v0 }
 0x1ee   : > { %v904_v10 = vmul.f32 1.442695, %v897_v8  ;;  %v2470_v45 = vsel %vm787_vm5, 1.0, %v3171_v44  ;;  %v2489_v53 = vmul.f32 -1.442695, %v1014_v52  ;;  %v2559_v59 = vld [vmem:[#allocation8] sm:$0xff]  }
 0x1ef   : > { %2715 = vpow2.f32 %v898_v62  ;;  %v1149_v48 = vsub.f32 1.0, %v2470_v45  ;;  %v3551_v60 = vld [vmem:[#allocation14] sm:$0xff]  ;;  %v3553_v61 = vunpack.c.h.bf16 %v2559_v59  ;;  %v3556_v62 = vunpack.c.l.bf16 %v2559_v59  ;;  %v2566_v0 = vld [vmem:[#allocation8 + $0x8] sm:$0xff]  }
 0x1f0   : > { %2717 = vpow2.f32 %v900_v63  ;;  %1065 = vmatpush.bf16.msra.mxu2 %v3551_v60 }
 0x1f1   : > { %2719 = vpow2.f32 %v902_v1 }
 0x1f2   : > { %2721 = vpow2.f32 %v904_v10  ;;  %v3566_v10 = vunpack.c.l.bf16 %v2566_v0 }
 0x1f3   : > { %v1015_v50 = vpop.f32.mrf.mxu1 }
 0x1f4   : > { %1407 = vmatpush.bf16.msrb.mxu2 %v3544_v57 }
 0x1f5   : > { %v2716_v2 = vpop.eup %2715 }
 0x1f6   : > { %v2718_v7 = vpop.eup %2717  ;;  %911 = vperm.xlu0 %2708, %v2716_v2  }
 0x1f7   : > { %914 = vperm.xlu1 %2709, %v2718_v7   ;;  %v2720_v11 = vpop.eup %2719 }
 0x1f8   : > { %v2722_v13 = vpop.eup %2721  ;;  %1408 = vmatpush.bf16.msrb.mxu2 %v3551_v60 }
 0x1ff   : > { %917 = vperm.xlu1 %2709, %v2720_v11  }
 0x207   : > { %920 = vperm.xlu1 %2709, %v2722_v13  }
 0x268   : > { %v912_v22 = vpop.permute.xlu0 %911 }
 0x269   : > { %v915_v18 = vpop.permute.xlu1 %914  ;;  %v922_v24 = vperm.slane %v912_v22, %v3479_v40 }
 0x26a   : > { %v923_v23 = vperm.slane %v915_v18, %v3484_v42 }
 0x26c   : > { %v924_v28 = vsel %vm877_vm2, %v923_v23, %v922_v24 }
 0x271   : > { %v918_v21 = vpop.permute.xlu1 %917 }
 0x272   : > { %v925_v26 = vperm.slane %v918_v21, %v3479_v40  ;;  %v3569_v21 = vunpack.c.h.bf16 %v2566_v0 }
 0x279   : > { %v921_v25 = vpop.permute.xlu1 %920 }
 0x27a   : > { %v926_v27 = vperm.slane %v921_v25, %v3484_v42 }
 0x27c   : > { %v927_v29 = vsel %vm877_vm2, %v926_v27, %v925_v26 }
 0x27d   : > { %v928_v30 = vsel %vm882_vm3, %v927_v29, %v924_v28 }
 0x27e   : > { %v930_v31 = vsel %vm885_vm4, %v928_v30, 0.0 }
 0x27f   : > { %931 = vadd.xlane.f32.xlu2 %v930_v31 }
 0x2f2   : > { %v932_v32 = vpop.xlane.xlu2 %931 }
 0x2f3   : > { %2723 = vrcp.f32 %v932_v32 }
 0x2f4   : > { %2725 = vpow2.f32 %v2489_v53 }
 0x2f9   : > { %v2724_v33 = vpop.eup %2723 }
 0x2fa   : > { %v936_v34 = vperm.slane %v2724_v33, 1  ;;  %v935_v35 = vperm.slane %v2724_v33, 0  ;;  %v2726_v56 = vpop.eup %2725 }
 0x2fb   : > { %v1020_v58 = vadd.f32 1.0, %v2726_v56 }
 0x2fc   : > { %v941_v36 = vmul.f32 %v2720_v11, %v936_v34  ;;  %v940_v37 = vmul.f32 %v2718_v7, %v935_v35  ;;  %v939_v38 = vmul.f32 %v2716_v2, %v935_v35  ;;  %v942_v46 = vmul.f32 %v2722_v13, %v936_v34 }
 0x2fd   : > { %2727 = vrcp.f32 %v1020_v58  ;;  %vm1026_vm6 = vweird.f32 %v1020_v58  ;;  %v1032_v53 = vand.u32 2147483648, %v1020_v58  ;;  %v1030_v59 = vand.u32 2147483647, %v1020_v58 }
 0x2fe   : > { %959 = vperm.xlu2 %2707, %v941_v36   ;;  %954 = vperm.xlu1 %2709, %v940_v37  }
 0x2ff   : > { %949 = vperm.xlu0 %2708, %v939_v38   ;;  %vm1031_vm9 = vcmp.eq.f32.partialorder %v1030_v59, 8.507059e+37 }
 0x303   : > { %v2728_v8 = vpop.eup %2727 }
 0x304   : > { %v1022_v22 = vmul.f32 %v2728_v8, %v1020_v58  ;;  %vm1027_vm7 = vweird.f32 %v2728_v8 }
 0x305   : > { %vm1028_vm8 = vmor %vm1026_vm6, %vm1027_vm7 }
 0x306   : > { %1145 = vperm.xlu2 %2707, %v2470_v45   ;;  %v1023_v32 = vsub.f32 1.0, %v1022_v22 }
 0x307   : > { %964 = vperm.xlu0 %2708, %v942_v46  }
 0x308   : > { %v1024_v46 = vmul.f32 %v2728_v8, %v1023_v32 }
 0x30a   : > { %v1025_v56 = vadd.f32 %v2728_v8, %v1024_v46 }
 0x30f   : > { %1123 = vrot.lane.b32.xlu0 %v3529_v47, %s4016_s11 }
 0x317   : > { %1152 = vperm.xlu0 %2708, %v1149_v48  }
 0x358   : > { %v960_v13 = vpop.permute.xlu2 %959 }
 0x359   : > { %v969_v24 = vmul.f32 %v3566_v10, %v960_v13  ;;  %v1182_v29 = vperm.slane %v960_v13, %v3479_v40 }
 0x35b   : > { %v980_v33 = vsel %vm808_vm1, %v969_v24, 0.0 }
 0x370   : > { %v955_v63 = vpop.permute.xlu1 %954 }
 0x371   : > { %v968_v1 = vmul.f32 %v3553_v61, %v955_v63  ;;  %v950_v6 = vpop.permute.xlu0 %949  ;;  %v1180_v25 = vperm.slane %v955_v63, %v3484_v42 }
 0x372   : > { %v967_v2 = vmul.f32 %v3556_v62, %v950_v6  ;;  %v1179_v26 = vperm.slane %v950_v6, %v3479_v40  ;;  %v1033_v6 = vor.u32 1.1754944e-38, %v1032_v53 }
 0x373   : > { %v972_v7 = vsel %vm808_vm1, %v968_v1, 0.0 }
 0x374   : > { %v971_v11 = vsel %vm808_vm1, %v967_v2, 0.0  ;;  %v1181_v34 = vsel %vm877_vm2, %v1180_v25, %v1179_v26  ;;  %v1029_v2 = vsel %vm1028_vm8, %v2728_v8, %v1025_v56  ;;  %v1093_v8 = vpop.f32.mrf.mxu3  ;;  %v1041_v26 = vld [vmem:[%s3401_s8] sm:$0x3] }
 0x375   : > { %v973_v18 = vadd.f32 %v972_v7, %v971_v11  ;;  %v1034_v22 = vsel %vm1031_vm9, %v1033_v6, %v1029_v2 }
 0x377   : > { %v974_v23 = vrot.slane %v973_v18, 4 }
 0x379   : > { %v975_v27 = vadd.f32 %v974_v23, %v973_v18  ;;  %v965_v28 = vpop.permute.xlu0 %964 }
 0x37a   : > { %v970_v30 = vmul.f32 %v3569_v21, %v965_v28  ;;  %v1183_v31 = vperm.slane %v965_v28, %v3484_v42 }
 0x37b   : > { %v976_v37 = vrot.slane %v975_v27, 2 }
 0x37c   : > { %v981_v35 = vsel %vm808_vm1, %v970_v30, 0.0  ;;  %v1184_v36 = vsel %vm877_vm2, %v1183_v31, %v1182_v29  ;;  %v1095_v25 = vpop.f32.mrf.mxu3 }
 0x37d   : > { %v982_v38 = vadd.f32 %v981_v35, %v980_v33  ;;  %v1185_v43 = vsel %vm882_vm3, %v1184_v36, %v1181_v34  ;;  %v977_v48 = vadd.f32 %v976_v37, %v975_v27 }
 0x37e   : > { %1187 = vst.msk [vmem:[%s3419_s15] sm:$0x3] %vm885_vm4, %v1185_v43 }
 0x37f   : > { %v983_v45 = vrot.slane %v982_v38, 4  ;;  %v978_v63 = vrot.slane %v977_v48, 1 }
 0x381   : > { %v984_v49 = vadd.f32 %v983_v45, %v982_v38  ;;  %v1124_v50 = vpop.permute.xlu0 %1123  ;;  %v979_v11 = vadd.f32 %v978_v63, %v977_v48 }
 0x383   : > { %v985_v52 = vrot.slane %v984_v49, 2 }
 0x385   : > { %v986_v0 = vadd.f32 %v985_v52, %v984_v49 }
 0x387   : > { %v987_v1 = vrot.slane %v986_v0, 1 }
 0x389   : > { %v3584_v7 = vpop.permute.xlu0 %1152  ;;  %v988_v13 = vadd.f32 %v987_v1, %v986_v0 }
 0x38a   : > { %v1155_v18 = vmul.f32 %v3584_v7, %v3434_v5  ;;  %v3597_v5 = vld [vmem:[%s4055_s17] ss:$0 sm:$0xff] }
 0x38b   : > { %v1038_v23 = vsel %vm882_vm3, %v988_v13, %v979_v11  ;;  %v3606_v13 = vpop.permute.xlu2 %1145 }
 0x38c   : > { %1157 = vrot.lane.b32.xlu0 %v1155_v18, %s3173_s21  ;;  %v1040_v58 = vmul.f32 %v1038_v23, %v1034_v22 }
 0x38e   : > { %v1042_v24 = vpack.c.bf16 %v1040_v58, %v1040_v58 }
 0x390   : > { %2498 = vmatmul.msk.bf16.vlgmr.msra.gmra.mxu2 %vm808_vm1, %v1042_v24 }
 0x391   : > { %1736 = vmatpush.bf16.msra.mxu2 %v3544_v57 }
 0x395   : > { %1737 = vmatpush.bf16.msra.mxu2 %v3551_v60 }
 0x3fe   : > { %v1158_v22 = vpop.permute.xlu0 %1157 }
 0x413   : > { %v1067_v27 = vpop.f32.mrf.mxu2 }
 0x414   : > { %v1071_v28 = vadd.f32 %v1067_v27, %v1041_v26 }
 0x416   : > { %v1097_v29 = vadd.f32 %v1093_v8, %v1071_v28 }
 0x418   : > { %v1101_v30 = vadd.f32 %v3597_v5, %v1097_v29 }
 0x41a   : > { %2729 = vtanh.f32 %v1101_v30  ;;  %v2508_v33 = vmul.f32 -1.442695, %v1101_v30 }
 0x41b   : > { %v1069_v31 = vpop.f32.mrf.mxu2 }
 0x41c   : > { %2731 = vpow2.f32 %v2508_v33 }
 0x420   : > { %v2730_v32 = vpop.eup %2729 }
 0x421   : > { %1128 = vrot.lane.b32.xlu1 %v2730_v32, %s3174_s5 }
 0x422   : > { %v2732_v34 = vpop.eup %2731 }
 0x423   : > { %v1105_v35 = vadd.f32 1.0, %v2732_v34 }
 0x425   : > { %2733 = vrcp.f32 %v1105_v35  ;;  %v1117_v46 = vand.u32 2147483648, %v1105_v35  ;;  %vm1111_vm11 = vweird.f32 %v1105_v35  ;;  %v1115_v48 = vand.u32 2147483647, %v1105_v35 }
 0x427   : > { %v1118_v52 = vor.u32 1.1754944e-38, %v1117_v46  ;;  %vm1116_vm13 = vcmp.eq.f32.partialorder %v1115_v48, 8.507059e+37 }
 0x42b   : > { %v2734_v36 = vpop.eup %2733 }
 0x42c   : > { %v1107_v37 = vmul.f32 %v2734_v36, %v1105_v35  ;;  %vm1112_vm10 = vweird.f32 %v2734_v36 }
 0x42d   : > { %vm1113_vm12 = vmor %vm1111_vm11, %vm1112_vm10 }
 0x42e   : > { %v1108_v38 = vsub.f32 1.0, %v1107_v37 }
 0x430   : > { %v1109_v43 = vmul.f32 %v2734_v36, %v1108_v38 }
 0x432   : > { %v1110_v45 = vadd.f32 %v2734_v36, %v1109_v43 }
 0x434   : > { %v1114_v49 = vsel %vm1113_vm12, %v2734_v36, %v1110_v45 }
 0x435   : > { %v1119_v56 = vsel %vm1116_vm13, %v1118_v52, %v1114_v49 }
 0x436   : > { %v1126_v63 = vmul.f32 %v1124_v50, %v1119_v56 }
 0x493   : > { %v1129_v53 = vpop.permute.xlu1 %1128 }
 0x494   : > { %v1131_v59 = vmul.f32 %v1129_v53, %v1119_v56 }
 0x496   : > { %1133 = vrot.lane.b32.xlu1 %v1131_v59, %s4016_s11 }
 0x508   : > { %v1134_v0 = vpop.permute.xlu1 %1133 }
 0x509   : > { %v3602_v1 = vadd.f32 %v1134_v0, %v1126_v63 }
 0x50b   : > { %2735 = vtanh.f32 %v3602_v1 }
 0x511   : > { %v2736_v6 = vpop.eup %2735 }
 0x512   : > { %1139 = vrot.lane.b32.xlu1 %v2736_v6, %s3174_s5 }
 0x584   : > { %v1140_v2 = vpop.permute.xlu1 %1139 }
 0x585   : > { %v1142_v11 = vmul.f32 %v1140_v2, %v1119_v56 }
 0x587   : > { %v1148_v18 = vmul.f32 %v3606_v13, %v1142_v11 }
 0x589   : > { %v1160_v23 = vadd.f32 %v1158_v22, %v1148_v18 }
 0x58b   : > { %1169 = vrot.lane.b32.xlu1 %v1160_v23, %s4016_s11 }
 0x5fd   : > { %v1170_v50 = vpop.permute.xlu1 %1169 }
 0x5fe   : > { %1173 = vst.msk [vmem:[#allocation2] sm:$0x3] %vm1172_vm14, %v1170_v50 }
 0x5ff   : > { %1188 = vst.msk [vmem:[%s3421_s2] sm:$0x3] %vm1172_vm14, %v1170_v50 }
 0x605   : > { %v3613_v58 = vld [vmem:[#allocation2] sm:$0x3] }
 0x606   : > { %v1196_v24 = vpack.c.bf16 %v3613_v58, %v3613_v58 }
 0x608   : > { %2510 = vmatmul.msk.bf16.vlgmr.msrb.gmra.mxu0 %vm808_vm1, %v1196_v24  ;;  %2511 = vmatmul.msk.bf16.vlgmr.msrb.gmra.mxu1 %vm808_vm1, %v1196_v24 }
 0x609   : > { %2515 = vmatmul.msk.bf16.vlgmr.msrb.gmra.mxu3 %vm808_vm1, %v1196_v24  ;;  %1864 = vmatpush.bf16.msrb.mxu0 %v3430_v3 }
 0x60a   : > { %2022 = vmatpush.bf16.msrb.mxu1 %v3498_v14  ;;  %2079 = vmatpush.bf16.msrb.mxu3 %v3539_v54 }
 0x60d   : > { %1865 = vmatpush.bf16.msrb.mxu0 %v3432_v4 }
 0x60e   : > { %2023 = vmatpush.bf16.msrb.mxu1 %v3501_v17  ;;  %2080 = vmatpush.bf16.msrb.mxu3 %v3542_v55 }
 0x685   : > { %v1209_v8 = vpop.f32.mrf.mxu0  ;;  %v3626_v25 = vpop.f32.mrf.mxu1 }
 0x686   : > { %v1210_v26 = vadd.f32 %v3451_v9, %v1209_v8 }
 0x688   : > { %v1214_v27 = vrot.slane %v1210_v26, 1  ;;  %v1215_v28 = vperm.slane %v1210_v26, 0 }
 0x68a   : > { %v1216_v29 = vperm.slane %v1214_v27, 0  ;;  %v1219_v3 = vadd.f32 %v1215_v28, %v3454_v12  ;;  %v1220_v14 = vadd.f32 %v1215_v28, %v3456_v15 }
 0x68c   : > { %v3631_v30 = vpop.f32.mrf.mxu3  ;;  %v1224_v54 = vmax.f32 %v1220_v14, 0.0  ;;  %v1223_v4 = vmax.f32 %v1219_v3, 0.0  ;;  %v1221_v17 = vadd.f32 %v1216_v29, %v3458_v16  ;;  %v1222_v55 = vadd.f32 %v1216_v29, %v3466_v20 }
 0x68d   : > { %v1211_v31 = vpop.f32.mrf.mxu0  ;;  %v1369_v32 = vpop.f32.mrf.mxu1 }
 0x68e   : > { %v1228_v33 = vmul.f32 %v3464_v19, %v1224_v54  ;;  %v1227_v34 = vmul.f32 %v3464_v19, %v1223_v4  ;;  %v1225_v35 = vmax.f32 %v1221_v17, 0.0  ;;  %v1226_v43 = vmax.f32 %v1222_v55, 0.0 }
 0x690   : > { %v1234_v36 = vsel %vm808_vm1, %v1228_v33, 0.0  ;;  %v1231_v37 = vsel %vm808_vm1, %v1227_v34, 0.0  ;;  %v1229_v38 = vmul.f32 %v3464_v19, %v1225_v35  ;;  %v1230_v48 = vmul.f32 %v3464_v19, %v1226_v43 }
 0x691   : > { %1235 = vadd.xlane.f32.xlu0 %v1234_v36  ;;  %1232 = vadd.xlane.f32.xlu2 %v1231_v37 }
 0x692   : > { %v1237_v45 = vsel %vm808_vm1, %v1229_v38, 0.0  ;;  %v1240_v49 = vsel %vm808_vm1, %v1230_v48, 0.0 }
 0x693   : > { %1238 = vadd.xlane.f32.xlu1 %v1237_v45 }
 0x694   : > { %v1426_v46 = vpop.f32.mrf.mxu3 }
 0x699   : > { %1241 = vadd.xlane.f32.xlu2 %v1240_v49 }
 0x704   : > { %v1233_v52 = vpop.xlane.xlu2 %1232  ;;  %v1236_v53 = vpop.xlane.xlu0 %1235 }
 0x705   : > { %v1244_v59 = vadd.f32 %v1236_v53, %v3481_v41  ;;  %v1243_v63 = vadd.f32 %v1233_v52, %v3481_v41 }
 0x706   : > { %v1239_v56 = vpop.xlane.xlu1 %1238 }
 0x707   : > { %v1245_v0 = vadd.f32 %v1239_v56, %v3481_v41  ;;  %v1252_v2 = vperm.slane %v1244_v59, %v3484_v42  ;;  %v1251_v11 = vperm.slane %v1243_v63, %v3479_v40 }
 0x709   : > { %v1254_v19 = vperm.slane %v1245_v0, %v3479_v40  ;;  %v1253_v23 = vsel %vm877_vm2, %v1252_v2, %v1251_v11 }
 0x70c   : > { %v1242_v6 = vpop.xlane.xlu2 %1241 }
 0x70d   : > { %v1246_v18 = vadd.f32 %v1242_v6, %v3481_v41 }
 0x70f   : > { %v1255_v22 = vperm.slane %v1246_v18, %v3484_v42 }
 0x711   : > { %v1256_v50 = vsel %vm877_vm2, %v1255_v22, %v1254_v19 }
 0x712   : > { %v1257_v24 = vsel %vm882_vm3, %v1256_v50, %v1253_v23 }
 0x713   : > { %v1259_v8 = vsel %vm885_vm4, %v1257_v24, -inf  ;;  %v1368_v24 = vadd.f32 %v3536_v51, %v3626_v25 }
 0x714   : > { %1260 = vmax.xlane.f32.xlu0 %v1259_v8 }
 0x715   : > { %v2512_v8 = vmul.f32 -1.442695, %v1368_v24 }
 0x787   : > { %v1261_v26 = vpop.xlane.xlu0 %1260 }
 0x788   : > { %v1263_v27 = vperm.slane %v1261_v26, 0  ;;  %v1264_v28 = vperm.slane %v1261_v26, 1 }
 0x78a   : > { %v1267_v29 = vsub.f32 %v1243_v63, %v1263_v27  ;;  %v1268_v3 = vsub.f32 %v1244_v59, %v1263_v27  ;;  %v1269_v14 = vsub.f32 %v1245_v0, %v1264_v28  ;;  %v1270_v55 = vsub.f32 %v1246_v18, %v1264_v28 }
 0x78b   : > { %v1190_v63 = vstv %s1189_s30  ;;  %s2195_s30 = sshll.u32 %s3419_s15, 4  ;;  %s2196_s30 = int_to_ptr.vmem [resolvable:$true] %s2195_s30 }
 0x78c   : > { %v1271_v54 = vmul.f32 1.442695, %v1267_v29  ;;  %v1273_v4 = vmul.f32 1.442695, %v1268_v3  ;;  %v1275_v17 = vmul.f32 1.442695, %v1269_v14  ;;  %vm1191_vm15 = vcmp.gt.s32.totalorder %v3524_v39, %v1190_v63 }
 0x78d   : > { %v1277_v31 = vmul.f32 1.442695, %v1270_v55  ;;  %v3666_v0 = vsel %vm1191_vm15, 1.0, %v3171_v44  ;;  %v1162_v39 = vmul.f32 %v3584_v7, %v3529_v47  ;;  %v1161_v63 = vmul.f32 %v3606_v13, %v3602_v1 }
 0x78e   : > { %2737 = vpow2.f32 %v1271_v54 }
 0x78f   : > { %2739 = vpow2.f32 %v1273_v4 }
 0x790   : > { %2741 = vpow2.f32 %v1275_v17 }
 0x791   : > { %2743 = vpow2.f32 %v1277_v31 }
 0x794   : > { %v2738_v32 = vpop.eup %2737 }
 0x795   : > { %v2740_v33 = vpop.eup %2739  ;;  %1284 = vperm.xlu2 %2707, %v2738_v32  }
 0x796   : > { %v2742_v34 = vpop.eup %2741  ;;  %1287 = vperm.xlu1 %2709, %v2740_v33  }
 0x797   : > { %1290 = vperm.xlu0 %2708, %v2742_v34   ;;  %v2744_v35 = vpop.eup %2743 }
 0x79d   : > { %1293 = vperm.xlu2 %2707, %v2744_v35  }
 0x7ef   : > { %v1285_v36 = vpop.permute.xlu2 %1284 }
 0x7f0   : > { %v1295_v43 = vperm.slane %v1285_v36, %v3479_v40 }
 0x7f7   : > { %v1294_v37 = vpop.permute.xlu2 %1293 }
 0x7f8   : > { %v1299_v48 = vperm.slane %v1294_v37, %v3484_v42 }
 0x808   : > { %v1288_v38 = vpop.permute.xlu1 %1287 }
 0x809   : > { %v1291_v45 = vpop.permute.xlu0 %1290  ;;  %v1296_v46 = vperm.slane %v1288_v38, %v3484_v42 }
 0x80a   : > { %v1298_v49 = vperm.slane %v1291_v45, %v3479_v40 }
 0x80b   : > { %v1297_v52 = vsel %vm877_vm2, %v1296_v46, %v1295_v43 }
 0x80c   : > { %v1300_v53 = vsel %vm877_vm2, %v1299_v48, %v1298_v49 }
 0x80d   : > { %v1301_v56 = vsel %vm882_vm3, %v1300_v53, %v1297_v52 }
 0x80e   : > { %v1303_v59 = vsel %vm885_vm4, %v1301_v56, 0.0 }
 0x80f   : > { %1304 = vadd.xlane.f32.xlu1 %v1303_v59 }
 0x828   : > { %1473 = vperm.xlu1 %2709, %v3666_v0  }
 0x882   : > { %v1305_v6 = vpop.xlane.xlu1 %1304 }
 0x883   : > { %2745 = vrcp.f32 %v1305_v6 }
 0x884   : > { %2747 = vpow2.f32 %v2512_v8 }
 0x889   : > { %v2746_v2 = vpop.eup %2745 }
 0x88a   : > { %v1308_v11 = vperm.slane %v2746_v2, 0  ;;  %v1309_v22 = vperm.slane %v2746_v2, 1  ;;  %v2748_v26 = vpop.eup %2747 }
 0x88b   : > { %v1374_v27 = vadd.f32 1.0, %v2748_v26 }
 0x88c   : > { %v1313_v18 = vmul.f32 %v2740_v33, %v1308_v11  ;;  %v1312_v19 = vmul.f32 %v2738_v32, %v1308_v11  ;;  %v1315_v23 = vmul.f32 %v2744_v35, %v1309_v22  ;;  %v1314_v50 = vmul.f32 %v2742_v34, %v1309_v22 }
 0x88d   : > { %2749 = vrcp.f32 %v1374_v27  ;;  %v1386_v24 = vand.u32 2147483648, %v1374_v27  ;;  %vm1380_vm5 = vweird.f32 %v1374_v27  ;;  %v1384_v8 = vand.u32 2147483647, %v1374_v27 }
 0x88e   : > { %1323 = vperm.xlu2 %2707, %v1313_v18   ;;  %1318 = vperm.xlu0 %2708, %v1312_v19  }
 0x88f   : > { %v1387_v13 = vor.u32 1.1754944e-38, %v1386_v24  ;;  %vm1385_vm7 = vcmp.eq.f32.partialorder %v1384_v8, 8.507059e+37 }
 0x893   : > { %v2750_v54 = vpop.eup %2749 }
 0x894   : > { %v1376_v55 = vmul.f32 %v2750_v54, %v1374_v27  ;;  %vm1381_vm0 = vweird.f32 %v2750_v54 }
 0x895   : > { %vm1382_vm6 = vmor %vm1380_vm5, %vm1381_vm0 }
 0x896   : > { %1333 = vperm.xlu2 %2707, %v1315_v23   ;;  %1328 = vperm.xlu0 %2708, %v1314_v50   ;;  %v1377_v43 = vsub.f32 1.0, %v1376_v55 }
 0x898   : > { %v1378_v6 = vmul.f32 %v2750_v54, %v1377_v43 }
 0x89a   : > { %v1379_v23 = vadd.f32 %v2750_v54, %v1378_v6 }
 0x89e   : > { %1164 = vrot.lane.b32.xlu0 %v1162_v39, %s4016_s11 }
 0x8e8   : > { %v1324_v28 = vpop.permute.xlu2 %1323 }
 0x8e9   : > { %v1337_v29 = vmul.f32 %v3553_v61, %v1324_v28  ;;  %v1507_v35 = vperm.slane %v1324_v28, %v3484_v42  ;;  %v1383_v28 = vsel %vm1382_vm6, %v2750_v54, %v1379_v23 }
 0x8eb   : > { %v1341_v4 = vsel %vm808_vm1, %v1337_v29, 0.0 }
 0x8f0   : > { %v1334_v7 = vpop.permute.xlu2 %1333 }
 0x8f1   : > { %v1339_v31 = vmul.f32 %v3569_v21, %v1334_v7  ;;  %v1510_v36 = vperm.slane %v1334_v7, %v3484_v42  ;;  %v1477_v7 = vsub.f32 1.0, %v3666_v0 }
 0x8f3   : > { %v1350_v45 = vsel %vm808_vm1, %v1339_v31, 0.0 }
 0x900   : > { %v1319_v3 = vpop.permute.xlu0 %1318 }
 0x901   : > { %v1336_v14 = vmul.f32 %v3556_v62, %v1319_v3  ;;  %v1506_v32 = vperm.slane %v1319_v3, %v3479_v40  ;;  %v1388_v3 = vsel %vm1385_vm7, %v1387_v13, %v1383_v28 }
 0x903   : > { %v1340_v47 = vsel %vm808_vm1, %v1336_v14, 0.0  ;;  %v1508_v46 = vsel %vm877_vm2, %v1507_v35, %v1506_v32 }
 0x904   : > { %v1342_v17 = vadd.f32 %v1341_v4, %v1340_v47 }
 0x906   : > { %v1343_v25 = vrot.slane %v1342_v17, 4 }
 0x908   : > { %v1344_v33 = vadd.f32 %v1343_v25, %v1342_v17  ;;  %v1329_v34 = vpop.permute.xlu0 %1328  ;;  %v2513_v17 = vld [vmem:[%s3401_s8 + $0x2] sm:$0x3] }
 0x909   : > { %v1338_v37 = vmul.f32 %v3566_v10, %v1329_v34  ;;  %v1509_v38 = vperm.slane %v1329_v34, %v3479_v40 }
 0x90a   : > { %v1345_v52 = vrot.slane %v1344_v33, 2 }
 0x90b   : > { %v1349_v48 = vsel %vm808_vm1, %v1338_v37, 0.0  ;;  %v1511_v49 = vsel %vm877_vm2, %v1510_v36, %v1509_v38 }
 0x90c   : > { %v1351_v53 = vadd.f32 %v1350_v45, %v1349_v48  ;;  %v1512_v56 = vsel %vm882_vm3, %v1511_v49, %v1508_v46  ;;  %v1346_v2 = vadd.f32 %v1345_v52, %v1344_v33 }
 0x90d   : > { %2517 = vst.msk [vmem:[%s3419_s15 + $0x2] sm:$0x3] %vm885_vm4, %v1512_v56 }
 0x90e   : > { %v1352_v59 = vrot.slane %v1351_v53, 4  ;;  %v1347_v50 = vrot.slane %v1346_v2, 1 }
 0x910   : > { %v1353_v11 = vadd.f32 %v1352_v59, %v1351_v53  ;;  %v1165_v18 = vpop.permute.xlu0 %1164  ;;  %v1348_v29 = vadd.f32 %v1347_v50, %v1346_v2 }
 0x911   : > { %v1167_v19 = vadd.f32 %v1165_v18, %v1161_v63 }
 0x912   : > { %v1354_v22 = vrot.slane %v1353_v11, 2 }
 0x913   : > { %1175 = vrot.lane.b32.xlu2 %v1167_v19, %s3173_s21 }
 0x914   : > { %v1355_v39 = vadd.f32 %v1354_v22, %v1353_v11  ;;  %v3718_v22 = vpop.permute.xlu1 %1473 }
 0x916   : > { %v1356_v26 = vrot.slane %v1355_v39, 1 }
 0x918   : > { %v1357_v1 = vadd.f32 %v1356_v26, %v1355_v39 }
 0x91a   : > { %v1392_v14 = vsel %vm882_vm3, %v1357_v1, %v1348_v29 }
 0x91b   : > { %v1394_v4 = vmul.f32 %v1392_v14, %v1388_v3 }
 0x91d   : > { %v1397_v47 = vpack.c.bf16 %v1394_v4, %v1394_v4 }
 0x91f   : > { %2514 = vmatmul.msk.bf16.vlgmr.msrb.gmra.mxu2 %vm808_vm1, %v1397_v47 }
 0x920   : > { %2065 = vmatpush.bf16.msrb.mxu2 %v3544_v57 }
 0x924   : > { %2066 = vmatpush.bf16.msrb.mxu2 %v3551_v60 }
 0x96d   : > { %v1176_v27 = vpop.permute.xlu2 %1175 }
 0x96e   : > { %1178 = vst.msk [vmem:[#allocation3] sm:$0x3] %vm1172_vm14, %v1176_v27 }
 0x975   : > { %v3699_v54 = vld [vmem:[#allocation3] sm:$0x3] }
 0x976   : > { %1451 = vrot.lane.b32.xlu2 %v3699_v54, %s4016_s11 }
 0x97e   : > { %1480 = vperm.xlu2 %2707, %v1477_v7  }
 0x9a2   : > { %v1410_v55 = vpop.f32.mrf.mxu2 }
 0x9a3   : > { %v1414_v25 = vadd.f32 %v2513_v17, %v1410_v55 }
 0x9a5   : > { %v1428_v31 = vadd.f32 %v3631_v30, %v1414_v25 }
 0x9a7   : > { %v1429_v57 = vadd.f32 %v3597_v5, %v1428_v31 }
 0x9a9   : > { %2751 = vtanh.f32 %v1429_v57  ;;  %v2516_v0 = vmul.f32 -1.442695, %v1429_v57 }
 0x9aa   : > { %v1412_v60 = vpop.f32.mrf.mxu2 }
 0x9ab   : > { %2753 = vpow2.f32 %v2516_v0 }
 0x9af   : > { %v2752_v32 = vpop.eup %2751 }
 0x9b0   : > { %1456 = vrot.lane.b32.xlu0 %v2752_v32, %s3174_s5 }
 0x9b1   : > { %v2754_v36 = vpop.eup %2753 }
 0x9b2   : > { %v1433_v37 = vadd.f32 1.0, %v2754_v36 }
 0x9b4   : > { %2755 = vrcp.f32 %v1433_v37  ;;  %v1445_v48 = vand.u32 2147483648, %v1433_v37  ;;  %vm1439_vm9 = vweird.f32 %v1433_v37  ;;  %v1443_v49 = vand.u32 2147483647, %v1433_v37 }
 0x9b6   : > { %v1446_v53 = vor.u32 1.1754944e-38, %v1445_v48  ;;  %vm1444_vm11 = vcmp.eq.f32.partialorder %v1443_v49, 8.507059e+37 }
 0x9ba   : > { %v2756_v30 = vpop.eup %2755 }
 0x9bb   : > { %v1435_v38 = vmul.f32 %v2756_v30, %v1433_v37  ;;  %vm1440_vm8 = vweird.f32 %v2756_v30 }
 0x9bc   : > { %vm1441_vm10 = vmor %vm1439_vm9, %vm1440_vm8 }
 0x9bd   : > { %v1436_v43 = vsub.f32 1.0, %v1435_v38 }
 0x9bf   : > { %v1437_v45 = vmul.f32 %v2756_v30, %v1436_v43 }
 0x9c1   : > { %v1438_v46 = vadd.f32 %v2756_v30, %v1437_v45 }
 0x9c3   : > { %v1442_v52 = vsel %vm1441_vm10, %v2756_v30, %v1438_v46 }
 0x9d0   : > { %v1452_v33 = vpop.permute.xlu2 %1451 }
 0x9d8   : > { %v3708_v34 = vpop.permute.xlu2 %1480 }
 0x9d9   : > { %v1483_v35 = vmul.f32 %v3708_v34, %v3613_v58  ;;  %v1447_v58 = vsel %vm1444_vm11, %v1446_v53, %v1442_v52 }
 0x9da   : > { %v1454_v63 = vmul.f32 %v1452_v33, %v1447_v58 }
 0x9db   : > { %1485 = vrot.lane.b32.xlu2 %v1483_v35, %s3173_s21 }
 0xa22   : > { %v1457_v56 = vpop.permute.xlu0 %1456 }
 0xa23   : > { %v1459_v59 = vmul.f32 %v1457_v56, %v1447_v58 }
 0xa25   : > { %1461 = vrot.lane.b32.xlu0 %v1459_v59, %s4016_s11 }
 0xa35   : > { %v1486_v50 = vpop.permute.xlu2 %1485 }
 0xa97   : > { %v1462_v6 = vpop.permute.xlu0 %1461 }
 0xa98   : > { %v3714_v2 = vadd.f32 %v1462_v6, %v1454_v63 }
 0xa9a   : > { %2757 = vtanh.f32 %v3714_v2 }
 0xaa0   : > { %v2758_v11 = vpop.eup %2757 }
 0xaa1   : > { %1467 = vrot.lane.b32.xlu0 %v2758_v11, %s3174_s5 }
 0xb13   : > { %v1468_v18 = vpop.permute.xlu0 %1467 }
 0xb14   : > { %v1470_v19 = vmul.f32 %v1468_v18, %v1447_v58 }
 0xb16   : > { %v1476_v23 = vmul.f32 %v3718_v22, %v1470_v19 }
 0xb18   : > { %v1488_v39 = vadd.f32 %v1486_v50, %v1476_v23 }
 0xb1a   : > { %1497 = vrot.lane.b32.xlu0 %v1488_v39, %s4016_s11 }
 0xb8c   : > { %v1498_v24 = vpop.permute.xlu0 %1497 }
 0xb8d   : > { %1500 = vst.msk [vmem:[#allocation2] sm:$0x3] %vm1172_vm14, %v1498_v24 }
 0xb8e   : > { %2518 = vst.msk [vmem:[%s3421_s2 + $0x2] sm:$0x3] %vm1172_vm14, %v1498_v24 }
 0xb94   : > { %v3725_v8 = vld [vmem:[#allocation2] sm:$0x3] }
 0xb95   : > { %v1525_v26 = vpack.c.bf16 %v3725_v8, %v3725_v8 }
 0xb97   : > { %2520 = vmatmul.msk.bf16.vlgmr.msra.gmra.mxu0 %vm808_vm1, %v1525_v26  ;;  %2521 = vmatmul.msk.bf16.vlgmr.msra.gmra.mxu1 %vm808_vm1, %v1525_v26 }
 0xb98   : > { %2525 = vmatmul.msk.bf16.vlgmr.msra.gmra.mxu3 %vm808_vm1, %v1525_v26 }
 0xc14   : > { %v1538_v28 = vpop.f32.mrf.mxu0  ;;  %v3732_v29 = vpop.f32.mrf.mxu1 }
 0xc15   : > { %v1539_v1 = vadd.f32 %v3451_v9, %v1538_v28  ;;  %v3744_v9 = vld [vmem:[%s4052_s16] ss:$0 sm:$0xff] }
 0xc17   : > { %v1543_v13 = vrot.slane %v1539_v1, 1  ;;  %v1544_v3 = vperm.slane %v1539_v1, 0 }
 0xc19   : > { %v1545_v14 = vperm.slane %v1543_v13, 0  ;;  %v1548_v4 = vadd.f32 %v1544_v3, %v3454_v12  ;;  %v1549_v47 = vadd.f32 %v1544_v3, %v3456_v15 }
 0xc1b   : > { %v3737_v27 = vpop.f32.mrf.mxu3  ;;  %v1553_v7 = vmax.f32 %v1549_v47, 0.0  ;;  %v1552_v17 = vmax.f32 %v1548_v4, 0.0  ;;  %v1550_v55 = vadd.f32 %v1545_v14, %v3458_v16  ;;  %v1551_v25 = vadd.f32 %v1545_v14, %v3466_v20 }
 0xc1c   : > { %v1540_v31 = vpop.f32.mrf.mxu0  ;;  %v1698_v57 = vpop.f32.mrf.mxu1 }
 0xc1d   : > { %v1557_v60 = vmul.f32 %v3744_v9, %v1553_v7  ;;  %v1556_v12 = vmul.f32 %v3744_v9, %v1552_v17  ;;  %v1554_v15 = vmax.f32 %v1550_v55, 0.0  ;;  %v1555_v35 = vmax.f32 %v1551_v25, 0.0 }
 0xc1f   : > { %v1563_v32 = vsel %vm808_vm1, %v1557_v60, 0.0  ;;  %v1560_v33 = vsel %vm808_vm1, %v1556_v12, 0.0  ;;  %v1558_v16 = vmul.f32 %v3744_v9, %v1554_v15  ;;  %v1559_v36 = vmul.f32 %v3744_v9, %v1555_v35 }
 0xc20   : > { %1564 = vadd.xlane.f32.xlu0 %v1563_v32  ;;  %1561 = vadd.xlane.f32.xlu2 %v1560_v33 }
 0xc21   : > { %v1566_v20 = vsel %vm808_vm1, %v1558_v16, 0.0  ;;  %v1569_v37 = vsel %vm808_vm1, %v1559_v36, 0.0 }
 0xc22   : > { %1567 = vadd.xlane.f32.xlu1 %v1566_v20 }
 0xc23   : > { %v1755_v0 = vpop.f32.mrf.mxu3 }
 0xc28   : > { %1570 = vadd.xlane.f32.xlu2 %v1569_v37 }
 0xc93   : > { %v1562_v30 = vpop.xlane.xlu2 %1561  ;;  %v1565_v38 = vpop.xlane.xlu0 %1564 }
 0xc94   : > { %v1573_v45 = vadd.f32 %v1565_v38, %v3481_v41  ;;  %v1572_v46 = vadd.f32 %v1562_v30, %v3481_v41 }
 0xc95   : > { %v1568_v43 = vpop.xlane.xlu1 %1567 }
 0xc96   : > { %v1574_v48 = vadd.f32 %v1568_v43, %v3481_v41  ;;  %v1581_v52 = vperm.slane %v1573_v45, %v3484_v42  ;;  %v1580_v53 = vperm.slane %v1572_v46, %v3479_v40 }
 0xc98   : > { %v1583_v56 = vperm.slane %v1574_v48, %v3479_v40  ;;  %v1582_v63 = vsel %vm877_vm2, %v1581_v52, %v1580_v53 }
 0xc9b   : > { %v1571_v49 = vpop.xlane.xlu2 %1570 }
 0xc9c   : > { %v1575_v58 = vadd.f32 %v1571_v49, %v3481_v41  ;;  %v1697_v49 = vadd.f32 %v3536_v51, %v3732_v29 }
 0xc9e   : > { %v1584_v59 = vperm.slane %v1575_v58, %v3484_v42  ;;  %v2522_v52 = vmul.f32 -1.442695, %v1697_v49 }
 0xca0   : > { %v1585_v6 = vsel %vm877_vm2, %v1584_v59, %v1583_v56 }
 0xca1   : > { %v1586_v11 = vsel %vm882_vm3, %v1585_v6, %v1582_v63 }
 0xca2   : > { %v1588_v18 = vsel %vm885_vm4, %v1586_v11, -inf }
 0xca3   : > { %1589 = vmax.xlane.f32.xlu0 %v1588_v18 }
 0xd16   : > { %v1590_v19 = vpop.xlane.xlu0 %1589 }
 0xd17   : > { %v1592_v23 = vperm.slane %v1590_v19, 0  ;;  %v1593_v50 = vperm.slane %v1590_v19, 1 }
 0xd19   : > { %v1596_v39 = vsub.f32 %v1572_v46, %v1592_v23  ;;  %v1597_v24 = vsub.f32 %v1573_v45, %v1592_v23  ;;  %v1598_v26 = vsub.f32 %v1574_v48, %v1593_v50  ;;  %v1599_v3 = vsub.f32 %v1575_v58, %v1593_v50 }
 0xd1a   : > { %v1490_v48 = vmul.f32 %v3708_v34, %v3699_v54 }
 0xd1b   : > { %v1600_v28 = vmul.f32 1.442695, %v1596_v39  ;;  %v1602_v1 = vmul.f32 1.442695, %v1597_v24  ;;  %v1604_v13 = vmul.f32 1.442695, %v1598_v26 }
 0xd1c   : > { %v1606_v14 = vmul.f32 1.442695, %v1599_v3 }
 0xd1d   : > { %2759 = vpow2.f32 %v1600_v28 }
 0xd1e   : > { %2761 = vpow2.f32 %v1602_v1 }
 0xd1f   : > { %2763 = vpow2.f32 %v1604_v13 }
 0xd20   : > { %2765 = vpow2.f32 %v1606_v14 }
 0xd23   : > { %v2760_v4 = vpop.eup %2759 }
 0xd24   : > { %v2762_v47 = vpop.eup %2761  ;;  %1613 = vperm.xlu2 %2707, %v2760_v4  }
 0xd25   : > { %v2764_v7 = vpop.eup %2763  ;;  %1616 = vperm.xlu0 %2708, %v2762_v47  }
 0xd26   : > { %1619 = vperm.xlu1 %2709, %v2764_v7   ;;  %v2766_v17 = vpop.eup %2765 }
 0xd2c   : > { %1622 = vperm.xlu2 %2707, %v2766_v17  }
 0xd7e   : > { %v1614_v55 = vpop.permute.xlu2 %1613 }
 0xd7f   : > { %v1624_v57 = vperm.slane %v1614_v55, %v3479_v40 }
 0xd86   : > { %v1623_v25 = vpop.permute.xlu2 %1622 }
 0xd87   : > { %v1628_v15 = vperm.slane %v1623_v25, %v3484_v42 }
 0xd97   : > { %v1617_v31 = vpop.permute.xlu0 %1616 }
 0xd98   : > { %v1620_v60 = vpop.permute.xlu1 %1619  ;;  %v1625_v12 = vperm.slane %v1617_v31, %v3484_v42 }
 0xd99   : > { %v1627_v32 = vperm.slane %v1620_v60, %v3479_v40  ;;  %v1489_v60 = vmul.f32 %v3718_v22, %v3714_v2 }
 0xd9a   : > { %v1626_v33 = vsel %vm877_vm2, %v1625_v12, %v1624_v57 }
 0xd9b   : > { %v1629_v16 = vsel %vm877_vm2, %v1628_v15, %v1627_v32 }
 0xd9c   : > { %v1630_v35 = vsel %vm882_vm3, %v1629_v16, %v1626_v33 }
 0xd9d   : > { %v1632_v20 = vsel %vm885_vm4, %v1630_v35, 0.0 }
 0xd9e   : > { %1633 = vadd.xlane.f32.xlu0 %v1632_v20 }
 0xe11   : > { %v1634_v0 = vpop.xlane.xlu0 %1633 }
 0xe12   : > { %2767 = vrcp.f32 %v1634_v0 }
 0xe13   : > { %2769 = vpow2.f32 %v2522_v52 }
 0xe18   : > { %v2768_v36 = vpop.eup %2767 }
 0xe19   : > { %v1637_v37 = vperm.slane %v2768_v36, 0  ;;  %v1638_v43 = vperm.slane %v2768_v36, 1  ;;  %v2770_v53 = vpop.eup %2769 }
 0xe1a   : > { %v1703_v58 = vadd.f32 1.0, %v2770_v53  ;;  %v1519_v53 = vstv %s1518_s0 }
 0xe1b   : > { %v1642_v30 = vmul.f32 %v2762_v47, %v1637_v37  ;;  %v1641_v38 = vmul.f32 %v2760_v4, %v1637_v37  ;;  %v1644_v45 = vmul.f32 %v2766_v17, %v1638_v43  ;;  %v1643_v46 = vmul.f32 %v2764_v7, %v1638_v43 }
 0xe1c   : > { %2771 = vrcp.f32 %v1703_v58  ;;  %v1715_v20 = vand.u32 2147483648, %v1703_v58  ;;  %vm1709_vm13 = vweird.f32 %v1703_v58  ;;  %v1713_v37 = vand.u32 2147483647, %v1703_v58 }
 0xe1d   : > { %1652 = vperm.xlu2 %2707, %v1642_v30   ;;  %1647 = vperm.xlu1 %2709, %v1641_v38  }
 0xe1e   : > { %v1716_v43 = vor.u32 1.1754944e-38, %v1715_v20  ;;  %vm1714_vm0 = vcmp.eq.f32.partialorder %v1713_v37, 8.507059e+37 }
 0xe22   : > { %v2772_v11 = vpop.eup %2771 }
 0xe23   : > { %v1705_v23 = vmul.f32 %v2772_v11, %v1703_v58  ;;  %vm1710_vm12 = vweird.f32 %v2772_v11  ;;  %v3806_v58 = vld [vmem:[%s4053_s7] sm:$0x3] }
 0xe24   : > { %vm1711_vm15 = vmor %vm1709_vm13, %vm1710_vm12  ;;  %vm1520_vm5 = vcmp.gt.s32.totalorder %v3806_v58, %v1519_v53 }
 0xe25   : > { %1662 = vperm.xlu2 %2707, %v1644_v45   ;;  %1657 = vperm.xlu1 %2709, %v1643_v46   ;;  %v1706_v3 = vsub.f32 1.0, %v1705_v23 }
 0xe27   : > { %v1707_v57 = vmul.f32 %v2772_v11, %v1706_v3 }
 0xe29   : > { %v1708_v35 = vadd.f32 %v2772_v11, %v1707_v57 }
 0xe2b   : > { %v1712_v38 = vsel %vm1711_vm15, %v2772_v11, %v1708_v35 }
 0xe2c   : > { %v1717_v45 = vsel %vm1714_vm0, %v1716_v43, %v1712_v38 }
 0xe2d   : > { %1492 = vrot.lane.b32.xlu1 %v1490_v48, %s4016_s11 }
 0xe77   : > { %v1653_v56 = vpop.permute.xlu2 %1652 }
 0xe78   : > { %v1666_v59 = vmul.f32 %v3553_v61, %v1653_v56  ;;  %v1836_v26 = vperm.slane %v1653_v56, %v3484_v42 }
 0xe7a   : > { %v1670_v18 = vsel %vm808_vm1, %v1666_v59, 0.0  ;;  %v2519_v59 = vsel %vm1520_vm5, 1.0, %v3171_v44 }
 0xe7f   : > { %v1663_v34 = vpop.permute.xlu2 %1662 }
 0xe80   : > { %v1668_v29 = vmul.f32 %v3569_v21, %v1663_v34  ;;  %v1839_v28 = vperm.slane %v1663_v34, %v3484_v42 }
 0xe82   : > { %v1679_v14 = vsel %vm808_vm1, %v1668_v29, 0.0 }
 0xe8f   : > { %v1648_v63 = vpop.permute.xlu1 %1647 }
 0xe90   : > { %v1665_v6 = vmul.f32 %v3556_v62, %v1648_v63  ;;  %v1835_v50 = vperm.slane %v1648_v63, %v3479_v40  ;;  %v1806_v63 = vsub.f32 1.0, %v2519_v59 }
 0xe92   : > { %v1669_v54 = vsel %vm808_vm1, %v1665_v6, 0.0  ;;  %v1837_v4 = vsel %vm877_vm2, %v1836_v26, %v1835_v50  ;;  %v2523_v6 = vld [vmem:[%s3401_s8 + $0x4] sm:$0x3] }
 0xe93   : > { %v1671_v19 = vadd.f32 %v1670_v18, %v1669_v54 }
 0xe95   : > { %v1672_v51 = vrot.slane %v1671_v19, 4 }
 0xe97   : > { %v1673_v39 = vadd.f32 %v1672_v51, %v1671_v19  ;;  %v1658_v24 = vpop.permute.xlu1 %1657 }
 0xe98   : > { %v1667_v1 = vmul.f32 %v3566_v10, %v1658_v24  ;;  %v1838_v13 = vperm.slane %v1658_v24, %v3479_v40 }
 0xe99   : > { %v1674_v17 = vrot.slane %v1673_v39, 2 }
 0xe9a   : > { %v1678_v47 = vsel %vm808_vm1, %v1667_v1, 0.0  ;;  %v1840_v7 = vsel %vm877_vm2, %v1839_v28, %v1838_v13 }
 0xe9b   : > { %v1680_v55 = vadd.f32 %v1679_v14, %v1678_v47  ;;  %v1841_v25 = vsel %vm882_vm3, %v1840_v7, %v1837_v4  ;;  %v1675_v12 = vadd.f32 %v1674_v17, %v1673_v39 }
 0xe9c   : > { %2527 = vst.msk [vmem:[%s3419_s15 + $0x4] sm:$0x3] %vm885_vm4, %v1841_v25 }
 0xe9d   : > { %v1681_v31 = vrot.slane %v1680_v55, 4  ;;  %v1676_v0 = vrot.slane %v1675_v12, 1 }
 0xe9f   : > { %v1682_v15 = vadd.f32 %v1681_v31, %v1680_v55  ;;  %v1493_v32 = vpop.permute.xlu1 %1492  ;;  %v1677_v2 = vadd.f32 %v1676_v0, %v1675_v12 }
 0xea0   : > { %v1495_v33 = vadd.f32 %v1493_v32, %v1489_v60 }
 0xea1   : > { %v1683_v16 = vrot.slane %v1682_v15, 2 }
 0xea2   : > { %1502 = vrot.lane.b32.xlu2 %v1495_v33, %s3173_s21 }
 0xea3   : > { %v1684_v36 = vadd.f32 %v1683_v16, %v1682_v15 }
 0xea5   : > { %v1685_v30 = vrot.slane %v1684_v36, 1 }
 0xea7   : > { %v1686_v22 = vadd.f32 %v1685_v30, %v1684_v36  ;;  %v2805_v30 = vld [vmem:[%s4051_s14] ss:$0 sm:$0xff] }
 0xea9   : > { %v1721_v46 = vsel %vm882_vm3, %v1686_v22, %v1677_v2 }
 0xeaa   : > { %v1723_v48 = vmul.f32 %v1721_v46, %v1717_v45  ;;  %v2806_v45 = vld [vmem:[#allocation5] sm:$0xff] }
 0xeac   : > { %v1726_v49 = vpack.c.bf16 %v1723_v48, %v1723_v48  ;;  %v2807_v48 = vld [vmem:[#allocation5 + $0x8] sm:$0xff] }
 0xeae   : > { %2524 = vmatmul.msk.bf16.vlgmr.msra.gmra.mxu2 %vm808_vm1, %v1726_v49 }
 0xefc   : > { %v1503_v52 = vpop.permute.xlu2 %1502 }
 0xefd   : > { %1505 = vst.msk [vmem:[#allocation3] sm:$0x3] %vm1172_vm14, %v1503_v52 }
 0xf04   : > { %v3809_v56 = vld [vmem:[#allocation3] sm:$0x3] }
 0xf05   : > { %1780 = vrot.lane.b32.xlu2 %v3809_v56, %s4016_s11 }
 0xf0d   : > { %1809 = vperm.xlu2 %2707, %v1806_v63   ;;  %v2808_v63 = vld [vmem:[#allocation5 + $0x10] sm:$0xff] }
 0xf31   : > { %v1739_v11 = vpop.f32.mrf.mxu2 }
 0xf32   : > { %v1743_v18 = vadd.f32 %v2523_v6, %v1739_v11  ;;  %v2809_v11 = vld [vmem:[#allocation5 + $0x18] sm:$0xff] }
 0xf34   : > { %v1757_v54 = vadd.f32 %v3737_v27, %v1743_v18 }
 0xf36   : > { %v1758_v34 = vadd.f32 %v3597_v5, %v1757_v54 }
 0xf38   : > { %2773 = vtanh.f32 %v1758_v34  ;;  %v2526_v39 = vmul.f32 -1.442695, %v1758_v34 }
 0xf39   : > { %v1741_v19 = vpop.f32.mrf.mxu2 }
 0xf3a   : > { %2775 = vpow2.f32 %v2526_v39 }
 0xf3e   : > { %v2774_v23 = vpop.eup %2773 }
 0xf3f   : > { %1785 = vrot.lane.b32.xlu1 %v2774_v23, %s3174_s5 }
 0xf40   : > { %v2776_v24 = vpop.eup %2775 }
 0xf41   : > { %v1762_v26 = vadd.f32 1.0, %v2776_v24 }
 0xf43   : > { %2777 = vrcp.f32 %v1762_v26  ;;  %v1774_v3 = vand.u32 2147483648, %v1762_v26  ;;  %vm1768_vm7 = vweird.f32 %v1762_v26  ;;  %v1772_v14 = vand.u32 2147483647, %v1762_v26 }
 0xf45   : > { %v1775_v47 = vor.u32 1.1754944e-38, %v1774_v3  ;;  %vm1773_vm9 = vcmp.eq.f32.partialorder %v1772_v14, 8.507059e+37 }
 0xf49   : > { %v2778_v27 = vpop.eup %2777 }
 0xf4a   : > { %v1764_v5 = vmul.f32 %v2778_v27, %v1762_v26  ;;  %vm1769_vm6 = vweird.f32 %v2778_v27 }
 0xf4b   : > { %vm1770_vm8 = vmor %vm1768_vm7, %vm1769_vm6 }
 0xf4c   : > { %v1765_v28 = vsub.f32 1.0, %v1764_v5 }
 0xf4e   : > { %v1766_v1 = vmul.f32 %v2778_v27, %v1765_v28 }
 0xf50   : > { %v1767_v13 = vadd.f32 %v2778_v27, %v1766_v1 }
 0xf52   : > { %v1771_v4 = vsel %vm1770_vm8, %v2778_v27, %v1767_v13 }
 0xf5f   : > { %v1781_v51 = vpop.permute.xlu2 %1780 }
 0xf67   : > { %v3818_v29 = vpop.permute.xlu2 %1809 }
 0xf68   : > { %v1812_v50 = vmul.f32 %v3818_v29, %v3725_v8  ;;  %v1776_v8 = vsel %vm1773_vm9, %v1775_v47, %v1771_v4 }
 0xf69   : > { %v1783_v55 = vmul.f32 %v1781_v51, %v1776_v8 }
 0xf6a   : > { %1814 = vrot.lane.b32.xlu2 %v1812_v50, %s3173_s21 }
 0xfb1   : > { %v1786_v7 = vpop.permute.xlu1 %1785 }
 0xfb2   : > { %v1788_v17 = vmul.f32 %v1786_v7, %v1776_v8 }
 0xfb4   : > { %1790 = vrot.lane.b32.xlu1 %v1788_v17, %s4016_s11 }
 0xfbc   : > { %1802 = vperm.xlu1 %2709, %v2519_v59  }
 0xfc4   : > { %v1815_v33 = vpop.permute.xlu2 %1814 }
0x1026   : > { %v1791_v25 = vpop.permute.xlu1 %1790 }
0x1027   : > { %v3824_v31 = vadd.f32 %v1791_v25, %v1783_v55 }
0x1029   : > { %2779 = vtanh.f32 %v3824_v31 }
0x102e   : > { %v3828_v15 = vpop.permute.xlu1 %1802 }
0x102f   : > { %v2780_v57 = vpop.eup %2779 }
0x1030   : > { %1796 = vrot.lane.b32.xlu0 %v2780_v57, %s3174_s5 }
0x10a2   : > { %v1797_v60 = vpop.permute.xlu0 %1796 }
0x10a3   : > { %v1799_v12 = vmul.f32 %v1797_v60, %v1776_v8 }
0x10a5   : > { %v1805_v32 = vmul.f32 %v3828_v15, %v1799_v12 }
0x10a7   : > { %v1817_v16 = vadd.f32 %v1815_v33, %v1805_v32 }
0x10a9   : > { %1826 = vrot.lane.b32.xlu1 %v1817_v16, %s4016_s11 }
0x111b   : > { %v1827_v35 = vpop.permute.xlu1 %1826 }
0x111c   : > { %1829 = vst.msk [vmem:[#allocation2] sm:$0x3] %vm1172_vm14, %v1827_v35 }
0x111d   : > { %2528 = vst.msk [vmem:[%s3421_s2 + $0x4] sm:$0x3] %vm1172_vm14, %v1827_v35 }
0x1123   : > { %v3835_v20 = vld [vmem:[#allocation2] sm:$0x3] }
0x1124   : > { %v1854_v0 = vpack.c.bf16 %v3835_v20, %v3835_v20 }
0x1126   : > { %2530 = vmatmul.msk.bf16.vlgmr.msrb.gmra.mxu0 %vm808_vm1, %v1854_v0  ;;  %2531 = vmatmul.msk.bf16.vlgmr.msrb.gmra.mxu1 %vm808_vm1, %v1854_v0 }
0x1127   : > { %2535 = vmatmul.msk.bf16.vlgmr.msrb.gmra.mxu3 %vm808_vm1, %v1854_v0 }
0x11a3   : > { %v1867_v36 = vpop.f32.mrf.mxu0  ;;  %v3842_v37 = vpop.f32.mrf.mxu1 }
0x11a4   : > { %v1868_v38 = vadd.f32 %v2805_v30, %v1867_v36 }
0x11a6   : > { %v1872_v43 = vrot.slane %v1868_v38, 1  ;;  %v1873_v2 = vperm.slane %v1868_v38, 0 }
0x11a8   : > { %v1874_v22 = vperm.slane %v1872_v43, 0  ;;  %v1877_v46 = vadd.f32 %v2806_v45, %v1873_v2  ;;  %v1878_v49 = vadd.f32 %v2807_v48, %v1873_v2 }
0x11aa   : > { %v3847_v52 = vpop.f32.mrf.mxu3  ;;  %v1882_v53 = vmax.f32 %v1878_v49, 0.0  ;;  %v1881_v59 = vmax.f32 %v1877_v46, 0.0  ;;  %v1879_v6 = vadd.f32 %v2808_v63, %v1874_v22  ;;  %v1880_v18 = vadd.f32 %v2809_v11, %v1874_v22 }
0x11ab   : > { %v1869_v54 = vpop.f32.mrf.mxu0  ;;  %v2027_v34 = vpop.f32.mrf.mxu1 }
0x11ac   : > { %v1886_v19 = vmul.f32 %v3744_v9, %v1882_v53  ;;  %v1885_v23 = vmul.f32 %v3744_v9, %v1881_v59  ;;  %v1883_v51 = vmax.f32 %v1879_v6, 0.0  ;;  %v1884_v26 = vmax.f32 %v1880_v18, 0.0 }
0x11ae   : > { %v1892_v50 = vsel %vm808_vm1, %v1886_v19, 0.0  ;;  %v1889_v39 = vsel %vm808_vm1, %v1885_v23, 0.0  ;;  %v1887_v24 = vmul.f32 %v3744_v9, %v1883_v51  ;;  %v1888_v28 = vmul.f32 %v3744_v9, %v1884_v26 }
0x11af   : > { %1893 = vadd.xlane.f32.xlu0 %v1892_v50  ;;  %1890 = vadd.xlane.f32.xlu2 %v1889_v39 }
0x11b0   : > { %v1895_v27 = vsel %vm808_vm1, %v1887_v24, 0.0  ;;  %v1898_v1 = vsel %vm808_vm1, %v1888_v28, 0.0 }
0x11b1   : > { %1896 = vadd.xlane.f32.xlu1 %v1895_v27 }
0x11b2   : > { %v2084_v5 = vpop.f32.mrf.mxu3 }
0x11b7   : > { %1899 = vadd.xlane.f32.xlu2 %v1898_v1 }
0x1222   : > { %v1891_v13 = vpop.xlane.xlu2 %1890  ;;  %v1894_v3 = vpop.xlane.xlu0 %1893 }
0x1223   : > { %v1902_v4 = vadd.f32 %v1894_v3, %v3481_v41  ;;  %v1901_v47 = vadd.f32 %v1891_v13, %v3481_v41 }
0x1224   : > { %v1897_v14 = vpop.xlane.xlu1 %1896 }
0x1225   : > { %v1903_v8 = vadd.f32 %v1897_v14, %v3481_v41  ;;  %v1910_v17 = vperm.slane %v1902_v4, %v3484_v42  ;;  %v1909_v55 = vperm.slane %v1901_v47, %v3479_v40  ;;  %v1819_v14 = vmul.f32 %v3818_v29, %v3809_v56 }
0x1227   : > { %v1912_v9 = vperm.slane %v1903_v8, %v3479_v40  ;;  %v1911_v60 = vsel %vm877_vm2, %v1910_v17, %v1909_v55 }
0x122a   : > { %v1900_v7 = vpop.xlane.xlu2 %1899 }
0x122b   : > { %v1904_v25 = vadd.f32 %v1900_v7, %v3481_v41 }
0x122d   : > { %v1913_v57 = vperm.slane %v1904_v25, %v3484_v42 }
0x122f   : > { %v1914_v12 = vsel %vm877_vm2, %v1913_v57, %v1912_v9 }
0x1230   : > { %v1915_v32 = vsel %vm882_vm3, %v1914_v12, %v1911_v60 }
0x1231   : > { %v1917_v33 = vsel %vm885_vm4, %v1915_v32, -inf }
0x1232   : > { %1918 = vmax.xlane.f32.xlu0 %v1917_v33 }
0x12a5   : > { %v1919_v16 = vpop.xlane.xlu0 %1918 }
0x12a6   : > { %v1921_v35 = vperm.slane %v1919_v16, 0  ;;  %v1922_v0 = vperm.slane %v1919_v16, 1 }
0x12a8   : > { %v1925_v36 = vsub.f32 %v1901_v47, %v1921_v35  ;;  %v1926_v30 = vsub.f32 %v1902_v4, %v1921_v35  ;;  %v1927_v38 = vsub.f32 %v1903_v8, %v1922_v0  ;;  %v1928_v22 = vsub.f32 %v1904_v25, %v1922_v0  ;;  %v2810_v4 = vld [vmem:[%s4054_s28] ss:$0 sm:$0xff] }
0x12a9   : > { %v2026_v47 = vadd.f32 %v2810_v4, %v3842_v37 }
0x12aa   : > { %v1929_v41 = vmul.f32 1.442695, %v1925_v36  ;;  %v1931_v43 = vmul.f32 1.442695, %v1926_v30  ;;  %v1933_v2 = vmul.f32 1.442695, %v1927_v38 }
0x12ab   : > { %v1935_v45 = vmul.f32 1.442695, %v1928_v22  ;;  %v2532_v8 = vmul.f32 -1.442695, %v2026_v47 }
0x12ac   : > { %2781 = vpow2.f32 %v1929_v41 }
0x12ad   : > { %2783 = vpow2.f32 %v1931_v43 }
0x12ae   : > { %2785 = vpow2.f32 %v1933_v2 }
0x12af   : > { %2787 = vpow2.f32 %v1935_v45 }
0x12b2   : > { %v2782_v46 = vpop.eup %2781 }
0x12b3   : > { %v2784_v48 = vpop.eup %2783  ;;  %1942 = vperm.xlu1 %2709, %v2782_v46  }
0x12b4   : > { %v2786_v49 = vpop.eup %2785  ;;  %1945 = vperm.xlu2 %2707, %v2784_v48  }
0x12b5   : > { %1948 = vperm.xlu0 %2708, %v2786_v49   ;;  %v2788_v53 = vpop.eup %2787 }
0x12bc   : > { %1951 = vperm.xlu2 %2707, %v2788_v53  }
0x130e   : > { %v1946_v59 = vpop.permute.xlu2 %1945 }
0x130f   : > { %v1954_v11 = vperm.slane %v1946_v59, %v3484_v42 }
0x1316   : > { %v1952_v63 = vpop.permute.xlu2 %1951 }
0x1317   : > { %v1957_v34 = vperm.slane %v1952_v63, %v3484_v42 }
0x1325   : > { %v1943_v6 = vpop.permute.xlu1 %1942 }
0x1326   : > { %v1953_v18 = vperm.slane %v1943_v6, %v3479_v40 }
0x1327   : > { %v1949_v54 = vpop.permute.xlu0 %1948 }
0x1328   : > { %v1956_v19 = vperm.slane %v1949_v54, %v3479_v40  ;;  %v1955_v23 = vsel %vm877_vm2, %v1954_v11, %v1953_v18 }
0x132a   : > { %v1958_v51 = vsel %vm877_vm2, %v1957_v34, %v1956_v19 }
0x132b   : > { %v1959_v50 = vsel %vm882_vm3, %v1958_v51, %v1955_v23 }
0x132c   : > { %v1961_v39 = vsel %vm885_vm4, %v1959_v50, 0.0 }
0x132d   : > { %1962 = vadd.xlane.f32.xlu1 %v1961_v39 }
0x13a0   : > { %v1963_v24 = vpop.xlane.xlu1 %1962 }
0x13a1   : > { %2789 = vrcp.f32 %v1963_v24 }
0x13a2   : > { %2791 = vpow2.f32 %v2532_v8 }
0x13a7   : > { %v2790_v26 = vpop.eup %2789 }
0x13a8   : > { %v1966_v27 = vperm.slane %v2790_v26, 0  ;;  %v1967_v1 = vperm.slane %v2790_v26, 1  ;;  %v2792_v7 = vpop.eup %2791 }
0x13a9   : > { %v2032_v17 = vadd.f32 1.0, %v2792_v7  ;;  %v2811_v7 = vld [vmem:[%s4055_s17] ss:$0 sm:$0xff] }
0x13aa   : > { %v1971_v5 = vmul.f32 %v2784_v48, %v1966_v27  ;;  %v1970_v28 = vmul.f32 %v2782_v46, %v1966_v27  ;;  %v1973_v13 = vmul.f32 %v2788_v53, %v1967_v1  ;;  %v1972_v3 = vmul.f32 %v2786_v49, %v1967_v1 }
0x13ab   : > { %2793 = vrcp.f32 %v2032_v17  ;;  %v2044_v18 = vand.u32 2147483648, %v2032_v17  ;;  %v2042_v19 = vand.u32 2147483647, %v2032_v17 }
0x13ac   : > { %1981 = vperm.xlu2 %2707, %v1971_v5   ;;  %1976 = vperm.xlu0 %2708, %v1970_v28   ;;  %v1848_v28 = vstv %s1847_s22  ;;  %s4056_s22 = sld [smem:[#allocation42_spill]] }
0x13ad   : > { %vm2043_vm11 = vcmp.eq.f32.partialorder %v2042_v19, 8.507059e+37  ;;  %vm1849_vm12 = vcmp.gt.s32.totalorder %v3806_v58, %v1848_v28 }
0x13b1   : > { %v2794_v56 = vpop.eup %2793 }
0x13b2   : > { %v2034_v33 = vmul.f32 %v2794_v56, %v2032_v17  ;;  %vm2039_vm10 = vweird.f32 %v2794_v56  ;;  %s3042_s12 = scalar_lea.hbm %s4056_s22, 16 }
0x13b4   : > { %1991 = vperm.xlu2 %2707, %v1973_v13   ;;  %1986 = vperm.xlu0 %2708, %v1972_v3   ;;  %v2035_v41 = vsub.f32 1.0, %v2034_v33  ;;  %v2529_v13 = vsel %vm1849_vm12, 1.0, %v3171_v44 }
0x13b5   : > { %v2135_v3 = vsub.f32 1.0, %v2529_v13 }
0x13bc   : > { %1821 = vrot.lane.b32.xlu0 %v1819_v14, %s4016_s11  ;;  %v2533_v14 = vld [vmem:[%s3401_s8 + $0x6] sm:$0x3]  ;;  %s2556_s8 = sshll.u32 %s3148_s26, 3 }
0x13bd   : > { %s2194_s0 = scalar_lea.hbm %s4056_s22, %s2556_s8 }
0x1406   : > { %v1982_v55 = vpop.permute.xlu2 %1981 }
0x1407   : > { %v1995_v25 = vmul.f32 %v3553_v61, %v1982_v55  ;;  %v2165_v61 = vperm.slane %v1982_v55, %v3484_v42 }
0x1409   : > { %v1999_v29 = vsel %vm808_vm1, %v1995_v25, 0.0 }
0x140e   : > { %v1992_v12 = vpop.permute.xlu2 %1991 }
0x140f   : > { %v1997_v16 = vmul.f32 %v3569_v21, %v1992_v12 }
0x1411   : > { %v2008_v43 = vsel %vm808_vm1, %v1997_v16, 0.0 }
0x141e   : > { %v1977_v9 = vpop.permute.xlu0 %1976 }
0x141f   : > { %v1994_v57 = vmul.f32 %v3556_v62, %v1977_v9  ;;  %v2164_v35 = vperm.slane %v1977_v9, %v3479_v40  ;;  %v2168_v62 = vperm.slane %v1992_v12, %v3484_v42 }
0x1421   : > { %v1998_v60 = vsel %vm808_vm1, %v1994_v57, 0.0  ;;  %v2166_v2 = vsel %vm877_vm2, %v2165_v61, %v2164_v35 }
0x1422   : > { %v2000_v32 = vadd.f32 %v1999_v29, %v1998_v60 }
0x1424   : > { %v2001_v37 = vrot.slane %v2000_v32, 4 }
0x1426   : > { %v2002_v0 = vadd.f32 %v2001_v37, %v2000_v32  ;;  %v1987_v36 = vpop.permute.xlu0 %1986 }
0x1427   : > { %v1996_v30 = vmul.f32 %v3566_v10, %v1987_v36  ;;  %v2167_v38 = vperm.slane %v1987_v36, %v3479_v40  ;;  %v1818_v10 = vmul.f32 %v3828_v15, %v3824_v31  ;;  %v2036_v40 = vmul.f32 %v2794_v56, %v2035_v41 }
0x1428   : > { %v2003_v45 = vrot.slane %v2002_v0, 2  ;;  %v2045_v31 = vor.u32 1.1754944e-38, %v2044_v18 }
0x1429   : > { %v2007_v21 = vsel %vm808_vm1, %v1996_v30, 0.0  ;;  %v2169_v22 = vsel %vm877_vm2, %v2168_v62, %v2167_v38  ;;  %v2037_v11 = vadd.f32 %v2794_v56, %v2036_v40  ;;  %vm2038_vm2 = vweird.f32 %v2032_v17 }
0x142a   : > { %v2009_v46 = vadd.f32 %v2008_v43, %v2007_v21  ;;  %v2170_v48 = vsel %vm882_vm3, %v2169_v22, %v2166_v2  ;;  %v2004_v49 = vadd.f32 %v2003_v45, %v2002_v0 }
0x142b   : > { %2537 = vst.msk [vmem:[%s3419_s15 + $0x6] sm:$0x3] %vm885_vm4, %v2170_v48  ;;  %vm2040_vm4 = vmor %vm2038_vm2, %vm2039_vm10 }
0x142c   : > { %v2010_v42 = vrot.slane %v2009_v46, 4  ;;  %v2005_v54 = vrot.slane %v2004_v49, 1  ;;  %v2041_v51 = vsel %vm2040_vm4, %v2794_v56, %v2037_v11 }
0x142d   : > { %v2046_v39 = vsel %vm2043_vm11, %v2045_v31, %v2041_v51 }
0x142e   : > { %v2011_v53 = vadd.f32 %v2010_v42, %v2009_v46  ;;  %v1822_v59 = vpop.permute.xlu0 %1821  ;;  %v2006_v15 = vadd.f32 %v2005_v54, %v2004_v49 }
0x142f   : > { %v1824_v63 = vadd.f32 %v1822_v59, %v1818_v10 }
0x1430   : > { %v2012_v6 = vrot.slane %v2011_v53, 2 }
0x1431   : > { %1831 = vrot.lane.b32.xlu2 %v1824_v63, %s3173_s21 }
0x1432   : > { %v2013_v34 = vadd.f32 %v2012_v6, %v2011_v53 }
0x1434   : > { %v2014_v23 = vrot.slane %v2013_v34, 1 }
0x1436   : > { %v2015_v50 = vadd.f32 %v2014_v23, %v2013_v34 }
0x1438   : > { %v2050_v24 = vsel %vm882_vm3, %v2015_v50, %v2006_v15 }
0x1439   : > { %v2052_v26 = vmul.f32 %v2050_v24, %v2046_v39 }
0x143b   : > { %v2055_v27 = vpack.c.bf16 %v2052_v26, %v2052_v26 }
0x143d   : > { %2534 = vmatmul.msk.bf16.vlgmr.msrb.gmra.mxu2 %vm808_vm1, %v2055_v27 }
0x148b   : > { %v1832_v5 = vpop.permute.xlu2 %1831 }
0x148c   : > { %1834 = vst.msk [vmem:[#allocation3] sm:$0x3] %vm1172_vm14, %v1832_v5 }
0x1493   : > { %v1853_v1 = vld [vmem:[#allocation3] sm:$0x3] }
0x1494   : > { %2109 = vrot.lane.b32.xlu2 %v1853_v1, %s4016_s11 }
0x149c   : > { %2138 = vperm.xlu2 %2707, %v2135_v3  }
0x14c0   : > { %v2068_v4 = vpop.f32.mrf.mxu2 }
0x14c1   : > { %v2072_v47 = vadd.f32 %v2533_v14, %v2068_v4 }
0x14c3   : > { %v2086_v8 = vadd.f32 %v3847_v52, %v2072_v47 }
0x14c5   : > { %v2087_v17 = vadd.f32 %v2811_v7, %v2086_v8 }
0x14c7   : > { %2795 = vtanh.f32 %v2087_v17  ;;  %v2536_v57 = vmul.f32 -1.442695, %v2087_v17 }
0x14c8   : > { %v2070_v55 = vpop.f32.mrf.mxu2 }
0x14c9   : > { %2797 = vpow2.f32 %v2536_v57 }
0x14cd   : > { %v2796_v58 = vpop.eup %2795 }
0x14ce   : > { %2114 = vrot.lane.b32.xlu0 %v2796_v58, %s3174_s5 }
0x14cf   : > { %v2798_v56 = vpop.eup %2797 }
0x14d0   : > { %v2091_v52 = vadd.f32 1.0, %v2798_v56 }
0x14d2   : > { %2799 = vrcp.f32 %v2091_v52  ;;  %v2103_v37 = vand.u32 2147483648, %v2091_v52  ;;  %vm2097_vm3 = vweird.f32 %v2091_v52  ;;  %v2101_v16 = vand.u32 2147483647, %v2091_v52 }
0x14d4   : > { %v2104_v0 = vor.u32 1.1754944e-38, %v2103_v37  ;;  %vm2102_vm15 = vcmp.eq.f32.partialorder %v2101_v16, 8.507059e+37 }
0x14d8   : > { %v2800_v29 = vpop.eup %2799 }
0x14d9   : > { %v2093_v60 = vmul.f32 %v2800_v29, %v2091_v52  ;;  %vm2098_vm1 = vweird.f32 %v2800_v29 }
0x14da   : > { %vm2099_vm13 = vmor %vm2097_vm3, %vm2098_vm1 }
0x14db   : > { %v2094_v12 = vsub.f32 1.0, %v2093_v60 }
0x14dd   : > { %v2095_v32 = vmul.f32 %v2800_v29, %v2094_v12 }
0x14df   : > { %v2096_v33 = vadd.f32 %v2800_v29, %v2095_v32 }
0x14e1   : > { %v2100_v35 = vsel %vm2099_vm13, %v2800_v29, %v2096_v33 }
0x14ee   : > { %v2110_v25 = vpop.permute.xlu2 %2109 }
0x14f6   : > { %v2139_v9 = vpop.permute.xlu2 %2138 }
0x14f7   : > { %v2141_v44 = vmul.f32 %v2139_v9, %v3835_v20  ;;  %v2105_v20 = vsel %vm2102_vm15, %v2104_v0, %v2100_v35  ;;  %v2148_v62 = vmul.f32 %v2139_v9, %v1853_v1 }
0x14f8   : > { %v2112_v30 = vmul.f32 %v2110_v25, %v2105_v20 }
0x14f9   : > { %2143 = vrot.lane.b32.xlu2 %v2141_v44, %s3173_s21 }
0x1540   : > { %v2115_v36 = vpop.permute.xlu0 %2114 }
0x1541   : > { %v2117_v61 = vmul.f32 %v2115_v36, %v2105_v20 }
0x1543   : > { %2119 = vrot.lane.b32.xlu0 %v2117_v61, %s4016_s11 }
0x154b   : > { %2131 = vperm.xlu0 %2708, %v2529_v13  }
0x1553   : > { %2150 = vrot.lane.b32.xlu0 %v2148_v62, %s4016_s11  ;;  %s2197_s11 = sshll.u32 %s2194_s0, 4  ;;  %s2198_s11 = int_to_ptr.hbm [resolvable:$true] %s2197_s11 }
0x1554   : > { %s3036_s4 = sshra.s32 %s2198_s11, 4  ;;  %s3037_s4 = int_to_ptr.hbm [resolvable:$true] %s3036_s4 }
0x1555   : > { %p3043_p11 = scmp.lt.s32.totalorder %s3037_s4, %s4056_s22 }
0x15b5   : > { %v2120_v38 = vpop.permute.xlu0 %2119 }
0x15b6   : > { %v2122_v41 = vadd.f32 %v2120_v38, %v2112_v30 }
0x15b8   : > { %2801 = vtanh.f32 %v2122_v41 }
0x15bd   : > { %v2132_v43 = vpop.permute.xlu0 %2131 }
0x15be   : > { %v2802_v2 = vpop.eup %2801  ;;  %v2147_v21 = vmul.f32 %v2132_v43, %v2122_v41 }
0x15bf   : > { %2125 = vrot.lane.b32.xlu1 %v2802_v2, %s3174_s5  ;;  %s3038_s5 = scalar_lea.hbm %s3037_s4, 8 }
0x15c0   : > { %p3039_p1 = scmp.ne.s32.totalorder %s3037_s4, %s3038_s5  ;;  %p3044_p12 = scmp.lt.s32.totalorder %s3042_s12, %s3038_s5 }
0x15c2   : > { %p3040_p9 = pnand %p3039_p1, %p3366_p2  ;;  %p3045_p13 = por %p3044_p12, %p3043_p11 }
0x15c4   : > { %p3041_p10 = pneg %p3040_p9 }
0x15c5   : > { %v2151_v22 = vpop.permute.xlu0 %2150 }
0x15c6   : > { %v2153_v45 = vadd.f32 %v2151_v22, %v2147_v21  ;;  %p3046_p0 = pnand %p3045_p13, %p3041_p10 }
0x15c8   : > { %2160 = vrot.lane.b32.xlu0 %v2153_v45, %s3173_s21 }
0x15c9   : > { %3049 = shalt.err (!%p3046_p0)
}
0x15ca   : > { %s3175_s15 = smov 2   ;;  %s4057_s10 = smov 32   ;;  %v2144_v10 = vpop.permute.xlu2 %2143 }
0x15cb   : > { %2593 = dma.vmem_to_hbm [thread:$0]  (%p3366_p2), %s2196_s30, 128, %s2198_s11, %s2177_s3, %s4057_s10, %s4057_s10, %s3175_s15  }
0x15cc   : > { %s4058_s13 = sld [smem:[#allocation43_spill]]  ;;  %s2213_s7 = sshll.u32 %s3421_s2, 4  ;;  %s2214_s7 = int_to_ptr.vmem [resolvable:$true] %s2213_s7 }
0x15cd   : > { %s2182_s11 = scalar_lea.sflag [#allocation19], %s3398_s6 }
0x15d2   : > { %s2212_s14 = scalar_lea.hbm %s4058_s13, %s2556_s8  ;;  %s3070_s8 = scalar_lea.hbm %s4058_s13, 16 }
0x15d3   : > { %s2215_s3 = sshll.u32 %s2212_s14, 4  ;;  %s2216_s3 = int_to_ptr.hbm [resolvable:$true] %s2215_s3 }
0x15d4   : > { %s3064_s18 = sshra.s32 %s2216_s3, 4  ;;  %s3065_s18 = int_to_ptr.hbm [resolvable:$true] %s3064_s18 }
0x15d5   : > { %s3066_s0 = scalar_lea.hbm %s3065_s18, 8  ;;  %p3071_p3 = scmp.lt.s32.totalorder %s3065_s18, %s4058_s13 }
0x15d6   : > { %p3067_p4 = scmp.ne.s32.totalorder %s3065_s18, %s3066_s0  ;;  %p3072_p1 = scmp.lt.s32.totalorder %s3070_s8, %s3066_s0 }
0x15d8   : > { %p3068_p7 = pnand %p3067_p4, %p3366_p2  ;;  %p3073_p9 = por %p3072_p1, %p3071_p3 }
0x15da   : > { %p3069_p8 = pneg %p3068_p7 }
0x15dc   : > { %p3074_p10 = pnand %p3073_p9, %p3069_p8 }
0x1631   : > { %v2126_v46 = vpop.permute.xlu1 %2125 }
0x1632   : > { %v2128_v48 = vmul.f32 %v2126_v46, %v2105_v20 }
0x1634   : > { %v2134_v42 = vmul.f32 %v2132_v43, %v2128_v48 }
0x1636   : > { %v2146_v40 = vadd.f32 %v2144_v10, %v2134_v42 }
0x1638   : > { %2155 = vrot.lane.b32.xlu2 %v2146_v40, %s4057_s10 }
0x163a   : > { %v2161_v49 = vpop.permute.xlu0 %2160 }
0x163b   : > { %2163 = vst.msk [vmem:[#allocation3] sm:$0x3] %vm1172_vm14, %v2161_v49 }
0x1692   : > { %v2156_v53 = vpop.permute.xlu2 %2155 }
0x1693   : > { %2158 = vst.msk [vmem:[#allocation2] sm:$0x3] %vm1172_vm14, %v2156_v53 }
0x1694   : > { %2538 = vst.msk [vmem:[%s3421_s2 + $0x6] sm:$0x3] %vm1172_vm14, %v2156_v53 }
0x1695   : > { %3077 = shalt.err (!%p3074_p10)
}
0x1696   : > { %2594 = dma.vmem_to_hbm [thread:$0]  (%p3366_p2), %s2214_s7, 128, %s2216_s3, %s2182_s11, %s4057_s10, %s4057_s10, %s3175_s15  }
0x1697 PF: > { %s2230_s6 = sand.u32 1, %s3136_s23   ;;  %p2621_p11 = pnand %p2454_p6, %p3373_p5 }
0x1698   : > { %s2231_s2 = scalar_lea.sflag [#allocation7], %s2230_s6 }
0x1699   : > { %p2622_p12 = pneg %p2621_p11 }
0x169b   : > { %3127 = dma.done.wait (%p2622_p12), %s2231_s2, 128  }
0x169c   : > { %3129 = vsyncadd (%p2622_p12), %s2231_s2, 4294967168  ;;  %s2241_s4 = scalar_lea.sflag [#allocation19], %s2230_s6 }
0x169d   : > { %3131 = dma.done.wait (%p2622_p12), %s2241_s4, 128  }
0x169e   : > { %3133 = vsyncadd (%p2622_p12), %s2241_s4, 4294967168  ;;  %s39_s9 = sadd.s32 1, %s3156_s9   ;;  %s4059_s23 = smov %s3140_s24 }
0x169f   : > { %p36_p13 = scmp.ge.s32.totalorder %s39_s9, 4   ;;  %s4060_s24 = smov %s3144_s25 }
0x16a0   : > { %s4061_s25 = smov %s3371_s19  ;;  %s4062_s26 = smov %s3152_s27 }
0x16a1   : > { %s4063_s27 = smov %s4065_s1  ;;  %38 = sbr.rel (!%p36_p13) target bundleno = 27 (0x1b), region = 189 }
0x16a6   :  { %2247 = vsyncpa [#allocation6], 1 }
0x16a7   :  { %2249 = vsyncpa [#allocation6 + $0x1], 1 }
0x16a8   :  { %2250 = vsyncpa [#allocation9], 1 }
0x16a9   :  { %2251 = vsyncpa [#allocation13], 1 }
0x16aa   :  { %2252 = vsyncpa [#allocation16], 1 }
0x16ab   :  { %2253 = vsyncpa [#allocation7], 1 }
0x16ac   :  { %2255 = vsyncpa [#allocation7 + $0x1], 1 }
0x16ad   :  { %2256 = vsyncpa [#allocation19], 1 }
0x16ae   :  { %2258 = vsyncpa [#allocation19 + $0x1], 1 }

</bundles_post_ra>
